<compile_context>
chip_gen: v7x
topology: tpu7x:2x2x1
jax: 0.10.0
libtpu: 0.0.40
codegen_flags: <defaults>
</compile_context>

<pallas_src>
import functools

import jax
import jax.numpy as jnp
from jax import lax
from jax.experimental import pallas as pl
from jax.experimental.pallas import tpu as pltpu

VOCAB = 32
EMBED = 16
HIDDEN = 32          # 4*HIDDEN = 128 -> gate matmul output fills one lane tile
N_LAYERS = 1         # kernel below is specialized to a single LSTM layer
SEQ_LEN = 8
BATCH = 4

V_PAD = 128          # pad vocab (lane dim) to a full 128-lane tile -> unmasked stores
SUBLANE = 8          # f32 sublane tile


def _round_up(x, m):
    return ((x + m - 1) // m) * m


# ----------------------------- Pallas kernel -----------------------------

def _lstm_cell(x, h, c, wcat_ref, b_ref):
    """One LSTM cell update. wcat_ref is [E+H, 4H] = w_ih stacked over w_hh."""
    e_in = x.shape[1]
    gates = (jnp.dot(x, wcat_ref[:e_in, :], preferred_element_type=jnp.float32)
             + jnp.dot(h, wcat_ref[e_in:, :], preferred_element_type=jnp.float32)
             + b_ref[...])                       # [B, 4H], PyTorch gate order i,f,g,o
    H = h.shape[1]
    i_g = jax.nn.sigmoid(gates[:, 0 * H:1 * H])
    f_g = jax.nn.sigmoid(gates[:, 1 * H:2 * H])
    g_g = jnp.tanh(gates[:, 2 * H:3 * H])
    o_g = jax.nn.sigmoid(gates[:, 3 * H:4 * H])
    c_new = f_g * c + i_g * g_g
    h_new = o_g * jnp.tanh(c_new)
    return h_new, c_new


def _seq2seq_kernel(src_len_ref, dec_len_ref, src_emb_ref, dec_emb_ref,
                    enc_w_ref, enc_b_ref, dec_w_ref, dec_b_ref,
                    out_w_ref, out_b_ref, logits_ref):
    """Runs the full encoder pass, then all decode steps, in one kernel invocation.

    The source batch is already permuted by sorted_indices, so the encoder's final
    h/c feed the decoder directly (no gather needed).
    """
    T_src, B_pad, _ = src_emb_ref.shape
    T_dec = dec_emb_ref.shape[0]
    H = enc_w_ref.shape[1] // 4

    # ---- encoder: serial time loop, h/c carried as values (1 vreg each) ----
    def enc_step(t, hc):
        h, c = hc
        x = src_emb_ref[t]                                  # [B_pad, E]
        h_new, c_new = _lstm_cell(x, h, c, enc_w_ref, enc_b_ref)
        m = (src_len_ref[...] > t).astype(jnp.float32)      # freeze rows past src length
        return (m * h_new + (1.0 - m) * h, m * c_new + (1.0 - m) * c)

    h0 = jnp.zeros((B_pad, H), jnp.float32)
    c0 = jnp.zeros((B_pad, H), jnp.float32)
    h, c = lax.fori_loop(0, T_src, enc_step, (h0, c0), unroll=True)

    # ---- decoder: serial time loop, logits written into the resident output block ----
    def dec_step(t, hc):
        h, c = hc
        x = dec_emb_ref[t]                                  # [B_pad, E] ground-truth embedding
        h_new, c_new = _lstm_cell(x, h, c, dec_w_ref, dec_b_ref)
        m = (dec_len_ref[...] > t).astype(jnp.float32)      # rows past their decode length
        h_u = m * h_new + (1.0 - m) * h                     # frozen (matches shrinking batch)
        c_u = m * c_new + (1.0 - m) * c
        logit = (jnp.dot(h_u, out_w_ref[...], preferred_element_type=jnp.float32)
                 + out_b_ref[...])                          # [B_pad, V_PAD] lane-dense tile
        logits_ref[t] = m * logit                           # inactive rows stay zero
        return (h_u, c_u)

    lax.fori_loop(0, T_dec, dec_step, (h, c), unroll=True)


# ----------------------------- pallas_call wrapper -----------------------------

def seq2seq_fused(src_len, dec_len, src_emb, dec_emb,
                  enc_w, enc_b, dec_w, dec_b, out_w, out_b):
    """One grid-less pallas_call; everything resident in VMEM. Returns [T_dec, B_pad, V_PAD]."""
    T_dec, B_pad, _ = dec_emb.shape
    Vp = out_w.shape[1]
    vmem = lambda: pl.BlockSpec(memory_space=pltpu.MemorySpace.VMEM)
    return pl.pallas_call(
        _seq2seq_kernel,
        out_shape=jax.ShapeDtypeStruct((T_dec, B_pad, Vp), jnp.float32),
        in_specs=[vmem() for _ in range(10)],
        out_specs=vmem(),
    )(src_len, dec_len, src_emb, dec_emb, enc_w, enc_b, dec_w, dec_b, out_w, out_b)


# ----------------------------- parameter setup -----------------------------

def init_rnn_params(key, *, with_output_proj):
    assert N_LAYERS == 1, "kernel is specialized to a single LSTM layer"
    ks = jax.random.split(key, 6)
    params = {"embedding": 0.1 * jax.random.normal(ks[0], (VOCAB, EMBED), jnp.float32)}
    w_ih = 0.1 * jax.random.normal(ks[1], (EMBED, 4 * HIDDEN), jnp.float32)
    w_hh = 0.1 * jax.random.normal(ks[2], (HIDDEN, 4 * HIDDEN), jnp.float32)
    params["w_cat"] = jnp.concatenate([w_ih, w_hh], axis=0)        # [E+H, 4H]
    params["b"] = 0.1 * jax.random.normal(ks[3], (1, 4 * HIDDEN), jnp.float32)  # b_ih + b_hh
    if with_output_proj:
        out_w = 0.1 * jax.random.normal(ks[4], (HIDDEN, VOCAB), jnp.float32)
        out_b = 0.1 * jax.random.normal(ks[5], (1, VOCAB), jnp.float32)
        params["out_w"] = jnp.pad(out_w, ((0, 0), (0, V_PAD - VOCAB)))  # lane-dense (128)
        params["out_b"] = jnp.pad(out_b, ((0, 0), (0, V_PAD - VOCAB)))
    return params


# ----------------------------- jitted forward core -----------------------------

@functools.partial(jax.jit, static_argnames=("max_dec",))
def _seq2seq_core(enc_params, dec_params, src_sequences, src_lengths,
                  sorted_dest_sequences, sorted_indices, dec_len_arr, max_dec):
    B = src_sequences.shape[1]
    B_pad = max(SUBLANE, _round_up(B, SUBLANE))
    pad_b = B_pad - B

    # Pre-permute the source batch by sorted_indices: encoder rows are independent,
    # so its final states come out already in descending dest-length order.
    src_sorted = src_sequences[:, sorted_indices]
    src_len_sorted = src_lengths[sorted_indices].astype(jnp.int32)

    # Embedding lookups stay in plain JAX (gathers); kernel gets dense [T, B_pad, E].
    src_emb = enc_params["embedding"][src_sorted]                  # [T_src, B, E]
    src_emb = jnp.pad(src_emb, ((0, 0), (0, pad_b), (0, 0)))
    src_len = jnp.pad(src_len_sorted, (0, pad_b)).reshape(B_pad, 1)

    dec_tokens = sorted_dest_sequences[:max_dec]                   # ground truth (tf_ratio == 0.0)
    dec_emb = dec_params["embedding"][dec_tokens]                  # [max_dec, B, E]
    dec_emb = jnp.pad(dec_emb, ((0, 0), (0, pad_b), (0, 0)))
    dec_len = jnp.pad(dec_len_arr.astype(jnp.int32), (0, pad_b)).reshape(B_pad, 1)

    logits_pad = seq2seq_fused(src_len, dec_len, src_emb, dec_emb,
                               enc_params["w_cat"], enc_params["b"],
                               dec_params["w_cat"], dec_params["b"],
                               dec_params["out_w"], dec_params["out_b"])
    return logits_pad[:, :B, :VOCAB]                               # drop batch / vocab padding


# ----------------------------- SeqToSeqLSTM.forward -----------------------------

def seq2seq_forward(enc_params, dec_params, src_sequences, src_lengths,
                    dest_sequences, dest_lengths, tf_ratio):
    # TODO(synk): stochastic teacher forcing (np.random.rand() < tf_ratio) and the
    # per-step softmax/argmax feedback are not reproduced; this is the deterministic
    # tf_ratio == 0.0 path (always feed ground-truth tokens), where they are dead code.
    sorted_indices = jnp.argsort(-dest_lengths)                    # descending dest-length sort
    sorted_dest_lengths = dest_lengths[sorted_indices]
    sorted_dest_sequences = dest_sequences[:, sorted_indices]

    # Single host sync, before any kernel launches: the reference materializes
    # sorted_decode_lengths as a python list and sizes `logits` from it.
    sorted_decode_lengths = [int(v) - 1 for v in jax.device_get(sorted_dest_lengths)]
    max_dec = max(sorted_decode_lengths)
    dec_len_arr = jnp.asarray(sorted_decode_lengths, jnp.int32)

    logits = _seq2seq_core(enc_params, dec_params, src_sequences, src_lengths,
                           sorted_dest_sequences, sorted_indices, dec_len_arr, max_dec)
    return logits, sorted_dest_sequences, sorted_decode_lengths, sorted_indices


# ----------------------------- demo -----------------------------

if __name__ == "__main__":
    key = jax.random.PRNGKey(0)
    k_enc, k_dec, k_src, k_dst = jax.random.split(key, 4)

    enc_params = init_rnn_params(k_enc, with_output_proj=False)
    dec_params = init_rnn_params(k_dec, with_output_proj=True)

    src_sequences = jax.random.randint(k_src, (SEQ_LEN, BATCH), 0, VOCAB, dtype=jnp.int32)
    dest_sequences = jax.random.randint(k_dst, (SEQ_LEN, BATCH), 0, VOCAB, dtype=jnp.int32)
    src_lengths = jnp.array([8, 5, 7, 6], dtype=jnp.int32)
    dest_lengths = jnp.array([6, 8, 5, 7], dtype=jnp.int32)

    logits, sorted_dest_sequences, sorted_decode_lengths, sorted_indices = seq2seq_forward(
        enc_params, dec_params, src_sequences, src_lengths,
        dest_sequences, dest_lengths, tf_ratio=0.0)

    jax.block_until_ready(logits)
    jax.block_until_ready(sorted_dest_sequences)
    jax.block_until_ready(sorted_indices)

    assert logits.shape == (max(sorted_decode_lengths), BATCH, VOCAB)
    print("KERNEL_OK")
</pallas_src>

<mosaic_0001>
module attributes {stable_mosaic.version = 11 : i64} {
  func.func @_seq2seq_kernel(%arg0: memref<8x1xi32, #tpu.memory_space<vmem>>, %arg1: memref<8x1xi32, #tpu.memory_space<vmem>>, %arg2: memref<8x8x16xf32, #tpu.memory_space<vmem>>, %arg3: memref<7x8x16xf32, #tpu.memory_space<vmem>>, %arg4: memref<48x128xf32, #tpu.memory_space<vmem>>, %arg5: memref<1x128xf32, #tpu.memory_space<vmem>>, %arg6: memref<48x128xf32, #tpu.memory_space<vmem>>, %arg7: memref<1x128xf32, #tpu.memory_space<vmem>>, %arg8: memref<32x128xf32, #tpu.memory_space<vmem>>, %arg9: memref<1x128xf32, #tpu.memory_space<vmem>>, %arg10: memref<7x8x128xf32, #tpu.memory_space<vmem>>) attributes {dimension_semantics = [], scalar_prefetch = 0 : i64, scratch_operands = 0 : i64, tpu.core_type = #tpu.core_type<tc>} {
    %cst = arith.constant 0.000000e+00 : f32
    %0 = vector.broadcast %cst : f32 to vector<8x32xf32>
    %cst_0 = arith.constant 0.000000e+00 : f32
    %1 = vector.broadcast %cst_0 : f32 to vector<8x32xf32>
    %c0_i32 = arith.constant 0 : i32
    %2 = arith.index_cast %c0_i32 : i32 to index
    %c0 = arith.constant 0 : index
    %c0_1 = arith.constant 0 : index
    %3 = vector.load %arg2[%2, %c0, %c0_1] : memref<8x8x16xf32, #tpu.memory_space<vmem>>, vector<1x8x16xf32>
    %4 = vector.shape_cast %3 : vector<1x8x16xf32> to vector<8x16xf32>
    %c0_2 = arith.constant 0 : index
    %c0_3 = arith.constant 0 : index
    %5 = vector.load %arg4[%c0_2, %c0_3] : memref<48x128xf32, #tpu.memory_space<vmem>>, vector<16x128xf32>
    %cst_4 = arith.constant dense<0.000000e+00> : vector<8x128xf32>
    %6 = tpu.matmul %4, %5, %cst_4 {dimension_numbers = #tpu.dot_dimension_numbers<[1], [0], [0], [1], [0, 0, 1, 1], [], []>} : vector<8x16xf32>, vector<16x128xf32>, vector<8x128xf32> -> vector<8x128xf32>
    %c16 = arith.constant 16 : index
    %c0_5 = arith.constant 0 : index
    %7 = vector.load %arg4[%c16, %c0_5] : memref<48x128xf32, #tpu.memory_space<vmem>>, vector<32x128xf32>
    %cst_6 = arith.constant dense<0.000000e+00> : vector<8x128xf32>
    %8 = tpu.matmul %0, %7, %cst_6 {dimension_numbers = #tpu.dot_dimension_numbers<[1], [0], [0], [1], [0, 0, 1, 1], [], []>} : vector<8x32xf32>, vector<32x128xf32>, vector<8x128xf32> -> vector<8x128xf32>
    %9 = arith.addf %6, %8 : vector<8x128xf32>
    %c0_7 = arith.constant 0 : index
    %c0_8 = arith.constant 0 : index
    %10 = vector.load %arg5[%c0_7, %c0_8] : memref<1x128xf32, #tpu.memory_space<vmem>>, vector<1x128xf32>
    %11 = vector.broadcast %10 : vector<1x128xf32> to vector<8x128xf32>
    %12 = arith.addf %9, %11 : vector<8x128xf32>
    %13 = vector.extract_strided_slice %12 {offsets = [0, 0], sizes = [8, 32], strides = [1, 1]} : vector<8x128xf32> to vector<8x32xf32>
    %14 = arith.negf %13 : vector<8x32xf32>
    %15 = math.exp %14 : vector<8x32xf32>
    %cst_9 = arith.constant 1.000000e+00 : f32
    %16 = vector.broadcast %cst_9 : f32 to vector<8x32xf32>
    %17 = arith.addf %16, %15 : vector<8x32xf32>
    %18 = arith.divf %16, %17 : vector<8x32xf32>
    %19 = vector.extract_strided_slice %12 {offsets = [0, 32], sizes = [8, 32], strides = [1, 1]} : vector<8x128xf32> to vector<8x32xf32>
    %20 = arith.negf %19 : vector<8x32xf32>
    %21 = math.exp %20 : vector<8x32xf32>
    %cst_10 = arith.constant 1.000000e+00 : f32
    %22 = vector.broadcast %cst_10 : f32 to vector<8x32xf32>
    %23 = arith.addf %22, %21 : vector<8x32xf32>
    %24 = arith.divf %22, %23 : vector<8x32xf32>
    %25 = vector.extract_strided_slice %12 {offsets = [0, 64], sizes = [8, 32], strides = [1, 1]} : vector<8x128xf32> to vector<8x32xf32>
    %26 = math.tanh %25 : vector<8x32xf32>
    %27 = vector.extract_strided_slice %12 {offsets = [0, 96], sizes = [8, 32], strides = [1, 1]} : vector<8x128xf32> to vector<8x32xf32>
    %28 = arith.negf %27 : vector<8x32xf32>
    %29 = math.exp %28 : vector<8x32xf32>
    %cst_11 = arith.constant 1.000000e+00 : f32
    %30 = vector.broadcast %cst_11 : f32 to vector<8x32xf32>
    %31 = arith.addf %30, %29 : vector<8x32xf32>
    %32 = arith.divf %30, %31 : vector<8x32xf32>
    %33 = arith.mulf %24, %1 : vector<8x32xf32>
    %34 = arith.mulf %18, %26 : vector<8x32xf32>
    %35 = arith.addf %33, %34 : vector<8x32xf32>
    %36 = math.tanh %35 : vector<8x32xf32>
    %37 = arith.mulf %32, %36 : vector<8x32xf32>
    %c0_12 = arith.constant 0 : index
    %c0_13 = arith.constant 0 : index
    %38 = vector.load %arg0[%c0_12, %c0_13] : memref<8x1xi32, #tpu.memory_space<vmem>>, vector<8x1xi32>
    %39 = vector.broadcast %c0_i32 : i32 to vector<8x1xi32>
    %40 = arith.cmpi sgt, %38, %39 : vector<8x1xi32>
    %41 = arith.extui %40 : vector<8x1xi1> to vector<8x1xi32>
    %42 = arith.sitofp %41 : vector<8x1xi32> to vector<8x1xf32>
    %43 = vector.broadcast %42 : vector<8x1xf32> to vector<8x32xf32>
    %44 = arith.mulf %43, %37 : vector<8x32xf32>
    %cst_14 = arith.constant 1.000000e+00 : f32
    %45 = vector.broadcast %cst_14 : f32 to vector<8x1xf32>
    %46 = arith.subf %45, %42 : vector<8x1xf32>
    %47 = vector.broadcast %46 : vector<8x1xf32> to vector<8x32xf32>
    %48 = arith.mulf %47, %0 : vector<8x32xf32>
    %49 = arith.addf %44, %48 : vector<8x32xf32>
    %50 = vector.broadcast %42 : vector<8x1xf32> to vector<8x32xf32>
    %51 = arith.mulf %50, %35 : vector<8x32xf32>
    %cst_15 = arith.constant 1.000000e+00 : f32
    %52 = vector.broadcast %cst_15 : f32 to vector<8x1xf32>
    %53 = arith.subf %52, %42 : vector<8x1xf32>
    %54 = vector.broadcast %53 : vector<8x1xf32> to vector<8x32xf32>
    %55 = arith.mulf %54, %1 : vector<8x32xf32>
    %56 = arith.addf %51, %55 : vector<8x32xf32>
    %c1_i32 = arith.constant 1 : i32
    %57 = arith.index_cast %c1_i32 : i32 to index
    %c0_16 = arith.constant 0 : index
    %c0_17 = arith.constant 0 : index
    %58 = vector.load %arg2[%57, %c0_16, %c0_17] : memref<8x8x16xf32, #tpu.memory_space<vmem>>, vector<1x8x16xf32>
    %59 = vector.shape_cast %58 : vector<1x8x16xf32> to vector<8x16xf32>
    %c0_18 = arith.constant 0 : index
    %c0_19 = arith.constant 0 : index
    %60 = vector.load %arg4[%c0_18, %c0_19] : memref<48x128xf32, #tpu.memory_space<vmem>>, vector<16x128xf32>
    %cst_20 = arith.constant dense<0.000000e+00> : vector<8x128xf32>
    %61 = tpu.matmul %59, %60, %cst_20 {dimension_numbers = #tpu.dot_dimension_numbers<[1], [0], [0], [1], [0, 0, 1, 1], [], []>} : vector<8x16xf32>, vector<16x128xf32>, vector<8x128xf32> -> vector<8x128xf32>
    %c16_21 = arith.constant 16 : index
    %c0_22 = arith.constant 0 : index
    %62 = vector.load %arg4[%c16_21, %c0_22] : memref<48x128xf32, #tpu.memory_space<vmem>>, vector<32x128xf32>
    %cst_23 = arith.constant dense<0.000000e+00> : vector<8x128xf32>
    %63 = tpu.matmul %49, %62, %cst_23 {dimension_numbers = #tpu.dot_dimension_numbers<[1], [0], [0], [1], [0, 0, 1, 1], [], []>} : vector<8x32xf32>, vector<32x128xf32>, vector<8x128xf32> -> vector<8x128xf32>
    %64 = arith.addf %61, %63 : vector<8x128xf32>
    %c0_24 = arith.constant 0 : index
    %c0_25 = arith.constant 0 : index
    %65 = vector.load %arg5[%c0_24, %c0_25] : memref<1x128xf32, #tpu.memory_space<vmem>>, vector<1x128xf32>
    %66 = vector.broadcast %65 : vector<1x128xf32> to vector<8x128xf32>
    %67 = arith.addf %64, %66 : vector<8x128xf32>
    %68 = vector.extract_strided_slice %67 {offsets = [0, 0], sizes = [8, 32], strides = [1, 1]} : vector<8x128xf32> to vector<8x32xf32>
    %69 = arith.negf %68 : vector<8x32xf32>
    %70 = math.exp %69 : vector<8x32xf32>
    %cst_26 = arith.constant 1.000000e+00 : f32
    %71 = vector.broadcast %cst_26 : f32 to vector<8x32xf32>
    %72 = arith.addf %71, %70 : vector<8x32xf32>
    %73 = arith.divf %71, %72 : vector<8x32xf32>
    %74 = vector.extract_strided_slice %67 {offsets = [0, 32], sizes = [8, 32], strides = [1, 1]} : vector<8x128xf32> to vector<8x32xf32>
    %75 = arith.negf %74 : vector<8x32xf32>
    %76 = math.exp %75 : vector<8x32xf32>
    %cst_27 = arith.constant 1.000000e+00 : f32
    %77 = vector.broadcast %cst_27 : f32 to vector<8x32xf32>
    %78 = arith.addf %77, %76 : vector<8x32xf32>
    %79 = arith.divf %77, %78 : vector<8x32xf32>
    %80 = vector.extract_strided_slice %67 {offsets = [0, 64], sizes = [8, 32], strides = [1, 1]} : vector<8x128xf32> to vector<8x32xf32>
    %81 = math.tanh %80 : vector<8x32xf32>
    %82 = vector.extract_strided_slice %67 {offsets = [0, 96], sizes = [8, 32], strides = [1, 1]} : vector<8x128xf32> to vector<8x32xf32>
    %83 = arith.negf %82 : vector<8x32xf32>
    %84 = math.exp %83 : vector<8x32xf32>
    %cst_28 = arith.constant 1.000000e+00 : f32
    %85 = vector.broadcast %cst_28 : f32 to vector<8x32xf32>
    %86 = arith.addf %85, %84 : vector<8x32xf32>
    %87 = arith.divf %85, %86 : vector<8x32xf32>
    %88 = arith.mulf %79, %56 : vector<8x32xf32>
    %89 = arith.mulf %73, %81 : vector<8x32xf32>
    %90 = arith.addf %88, %89 : vector<8x32xf32>
    %91 = math.tanh %90 : vector<8x32xf32>
    %92 = arith.mulf %87, %91 : vector<8x32xf32>
    %c0_29 = arith.constant 0 : index
    %c0_30 = arith.constant 0 : index
    %93 = vector.load %arg0[%c0_29, %c0_30] : memref<8x1xi32, #tpu.memory_space<vmem>>, vector<8x1xi32>
    %94 = vector.broadcast %c1_i32 : i32 to vector<8x1xi32>
    %95 = arith.cmpi sgt, %93, %94 : vector<8x1xi32>
    %96 = arith.extui %95 : vector<8x1xi1> to vector<8x1xi32>
    %97 = arith.sitofp %96 : vector<8x1xi32> to vector<8x1xf32>
    %98 = vector.broadcast %97 : vector<8x1xf32> to vector<8x32xf32>
    %99 = arith.mulf %98, %92 : vector<8x32xf32>
    %cst_31 = arith.constant 1.000000e+00 : f32
    %100 = vector.broadcast %cst_31 : f32 to vector<8x1xf32>
    %101 = arith.subf %100, %97 : vector<8x1xf32>
    %102 = vector.broadcast %101 : vector<8x1xf32> to vector<8x32xf32>
    %103 = arith.mulf %102, %49 : vector<8x32xf32>
    %104 = arith.addf %99, %103 : vector<8x32xf32>
    %105 = vector.broadcast %97 : vector<8x1xf32> to vector<8x32xf32>
    %106 = arith.mulf %105, %90 : vector<8x32xf32>
    %cst_32 = arith.constant 1.000000e+00 : f32
    %107 = vector.broadcast %cst_32 : f32 to vector<8x1xf32>
    %108 = arith.subf %107, %97 : vector<8x1xf32>
    %109 = vector.broadcast %108 : vector<8x1xf32> to vector<8x32xf32>
    %110 = arith.mulf %109, %56 : vector<8x32xf32>
    %111 = arith.addf %106, %110 : vector<8x32xf32>
    %c2_i32 = arith.constant 2 : i32
    %112 = arith.index_cast %c2_i32 : i32 to index
    %c0_33 = arith.constant 0 : index
    %c0_34 = arith.constant 0 : index
    %113 = vector.load %arg2[%112, %c0_33, %c0_34] : memref<8x8x16xf32, #tpu.memory_space<vmem>>, vector<1x8x16xf32>
    %114 = vector.shape_cast %113 : vector<1x8x16xf32> to vector<8x16xf32>
    %c0_35 = arith.constant 0 : index
    %c0_36 = arith.constant 0 : index
    %115 = vector.load %arg4[%c0_35, %c0_36] : memref<48x128xf32, #tpu.memory_space<vmem>>, vector<16x128xf32>
    %cst_37 = arith.constant dense<0.000000e+00> : vector<8x128xf32>
    %116 = tpu.matmul %114, %115, %cst_37 {dimension_numbers = #tpu.dot_dimension_numbers<[1], [0], [0], [1], [0, 0, 1, 1], [], []>} : vector<8x16xf32>, vector<16x128xf32>, vector<8x128xf32> -> vector<8x128xf32>
    %c16_38 = arith.constant 16 : index
    %c0_39 = arith.constant 0 : index
    %117 = vector.load %arg4[%c16_38, %c0_39] : memref<48x128xf32, #tpu.memory_space<vmem>>, vector<32x128xf32>
    %cst_40 = arith.constant dense<0.000000e+00> : vector<8x128xf32>
    %118 = tpu.matmul %104, %117, %cst_40 {dimension_numbers = #tpu.dot_dimension_numbers<[1], [0], [0], [1], [0, 0, 1, 1], [], []>} : vector<8x32xf32>, vector<32x128xf32>, vector<8x128xf32> -> vector<8x128xf32>
    %119 = arith.addf %116, %118 : vector<8x128xf32>
    %c0_41 = arith.constant 0 : index
    %c0_42 = arith.constant 0 : index
    %120 = vector.load %arg5[%c0_41, %c0_42] : memref<1x128xf32, #tpu.memory_space<vmem>>, vector<1x128xf32>
    %121 = vector.broadcast %120 : vector<1x128xf32> to vector<8x128xf32>
    %122 = arith.addf %119, %121 : vector<8x128xf32>
    %123 = vector.extract_strided_slice %122 {offsets = [0, 0], sizes = [8, 32], strides = [1, 1]} : vector<8x128xf32> to vector<8x32xf32>
    %124 = arith.negf %123 : vector<8x32xf32>
    %125 = math.exp %124 : vector<8x32xf32>
    %cst_43 = arith.constant 1.000000e+00 : f32
    %126 = vector.broadcast %cst_43 : f32 to vector<8x32xf32>
    %127 = arith.addf %126, %125 : vector<8x32xf32>
    %128 = arith.divf %126, %127 : vector<8x32xf32>
    %129 = vector.extract_strided_slice %122 {offsets = [0, 32], sizes = [8, 32], strides = [1, 1]} : vector<8x128xf32> to vector<8x32xf32>
    %130 = arith.negf %129 : vector<8x32xf32>
    %131 = math.exp %130 : vector<8x32xf32>
    %cst_44 = arith.constant 1.000000e+00 : f32
    %132 = vector.broadcast %cst_44 : f32 to vector<8x32xf32>
    %133 = arith.addf %132, %131 : vector<8x32xf32>
    %134 = arith.divf %132, %133 : vector<8x32xf32>
    %135 = vector.extract_strided_slice %122 {offsets = [0, 64], sizes = [8, 32], strides = [1, 1]} : vector<8x128xf32> to vector<8x32xf32>
    %136 = math.tanh %135 : vector<8x32xf32>
    %137 = vector.extract_strided_slice %122 {offsets = [0, 96], sizes = [8, 32], strides = [1, 1]} : vector<8x128xf32> to vector<8x32xf32>
    %138 = arith.negf %137 : vector<8x32xf32>
    %139 = math.exp %138 : vector<8x32xf32>
    %cst_45 = arith.constant 1.000000e+00 : f32
    %140 = vector.broadcast %cst_45 : f32 to vector<8x32xf32>
    %141 = arith.addf %140, %139 : vector<8x32xf32>
    %142 = arith.divf %140, %141 : vector<8x32xf32>
    %143 = arith.mulf %134, %111 : vector<8x32xf32>
    %144 = arith.mulf %128, %136 : vector<8x32xf32>
    %145 = arith.addf %143, %144 : vector<8x32xf32>
    %146 = math.tanh %145 : vector<8x32xf32>
    %147 = arith.mulf %142, %146 : vector<8x32xf32>
    %c0_46 = arith.constant 0 : index
    %c0_47 = arith.constant 0 : index
    %148 = vector.load %arg0[%c0_46, %c0_47] : memref<8x1xi32, #tpu.memory_space<vmem>>, vector<8x1xi32>
    %149 = vector.broadcast %c2_i32 : i32 to vector<8x1xi32>
    %150 = arith.cmpi sgt, %148, %149 : vector<8x1xi32>
    %151 = arith.extui %150 : vector<8x1xi1> to vector<8x1xi32>
    %152 = arith.sitofp %151 : vector<8x1xi32> to vector<8x1xf32>
    %153 = vector.broadcast %152 : vector<8x1xf32> to vector<8x32xf32>
    %154 = arith.mulf %153, %147 : vector<8x32xf32>
    %cst_48 = arith.constant 1.000000e+00 : f32
    %155 = vector.broadcast %cst_48 : f32 to vector<8x1xf32>
    %156 = arith.subf %155, %152 : vector<8x1xf32>
    %157 = vector.broadcast %156 : vector<8x1xf32> to vector<8x32xf32>
    %158 = arith.mulf %157, %104 : vector<8x32xf32>
    %159 = arith.addf %154, %158 : vector<8x32xf32>
    %160 = vector.broadcast %152 : vector<8x1xf32> to vector<8x32xf32>
    %161 = arith.mulf %160, %145 : vector<8x32xf32>
    %cst_49 = arith.constant 1.000000e+00 : f32
    %162 = vector.broadcast %cst_49 : f32 to vector<8x1xf32>
    %163 = arith.subf %162, %152 : vector<8x1xf32>
    %164 = vector.broadcast %163 : vector<8x1xf32> to vector<8x32xf32>
    %165 = arith.mulf %164, %111 : vector<8x32xf32>
    %166 = arith.addf %161, %165 : vector<8x32xf32>
    %c3_i32 = arith.constant 3 : i32
    %167 = arith.index_cast %c3_i32 : i32 to index
    %c0_50 = arith.constant 0 : index
    %c0_51 = arith.constant 0 : index
    %168 = vector.load %arg2[%167, %c0_50, %c0_51] : memref<8x8x16xf32, #tpu.memory_space<vmem>>, vector<1x8x16xf32>
    %169 = vector.shape_cast %168 : vector<1x8x16xf32> to vector<8x16xf32>
    %c0_52 = arith.constant 0 : index
    %c0_53 = arith.constant 0 : index
    %170 = vector.load %arg4[%c0_52, %c0_53] : memref<48x128xf32, #tpu.memory_space<vmem>>, vector<16x128xf32>
    %cst_54 = arith.constant dense<0.000000e+00> : vector<8x128xf32>
    %171 = tpu.matmul %169, %170, %cst_54 {dimension_numbers = #tpu.dot_dimension_numbers<[1], [0], [0], [1], [0, 0, 1, 1], [], []>} : vector<8x16xf32>, vector<16x128xf32>, vector<8x128xf32> -> vector<8x128xf32>
    %c16_55 = arith.constant 16 : index
    %c0_56 = arith.constant 0 : index
    %172 = vector.load %arg4[%c16_55, %c0_56] : memref<48x128xf32, #tpu.memory_space<vmem>>, vector<32x128xf32>
    %cst_57 = arith.constant dense<0.000000e+00> : vector<8x128xf32>
    %173 = tpu.matmul %159, %172, %cst_57 {dimension_numbers = #tpu.dot_dimension_numbers<[1], [0], [0], [1], [0, 0, 1, 1], [], []>} : vector<8x32xf32>, vector<32x128xf32>, vector<8x128xf32> -> vector<8x128xf32>
    %174 = arith.addf %171, %173 : vector<8x128xf32>
    %c0_58 = arith.constant 0 : index
    %c0_59 = arith.constant 0 : index
    %175 = vector.load %arg5[%c0_58, %c0_59] : memref<1x128xf32, #tpu.memory_space<vmem>>, vector<1x128xf32>
    %176 = vector.broadcast %175 : vector<1x128xf32> to vector<8x128xf32>
    %177 = arith.addf %174, %176 : vector<8x128xf32>
    %178 = vector.extract_strided_slice %177 {offsets = [0, 0], sizes = [8, 32], strides = [1, 1]} : vector<8x128xf32> to vector<8x32xf32>
    %179 = arith.negf %178 : vector<8x32xf32>
    %180 = math.exp %179 : vector<8x32xf32>
    %cst_60 = arith.constant 1.000000e+00 : f32
    %181 = vector.broadcast %cst_60 : f32 to vector<8x32xf32>
    %182 = arith.addf %181, %180 : vector<8x32xf32>
    %183 = arith.divf %181, %182 : vector<8x32xf32>
    %184 = vector.extract_strided_slice %177 {offsets = [0, 32], sizes = [8, 32], strides = [1, 1]} : vector<8x128xf32> to vector<8x32xf32>
    %185 = arith.negf %184 : vector<8x32xf32>
    %186 = math.exp %185 : vector<8x32xf32>
    %cst_61 = arith.constant 1.000000e+00 : f32
    %187 = vector.broadcast %cst_61 : f32 to vector<8x32xf32>
    %188 = arith.addf %187, %186 : vector<8x32xf32>
    %189 = arith.divf %187, %188 : vector<8x32xf32>
    %190 = vector.extract_strided_slice %177 {offsets = [0, 64], sizes = [8, 32], strides = [1, 1]} : vector<8x128xf32> to vector<8x32xf32>
    %191 = math.tanh %190 : vector<8x32xf32>
    %192 = vector.extract_strided_slice %177 {offsets = [0, 96], sizes = [8, 32], strides = [1, 1]} : vector<8x128xf32> to vector<8x32xf32>
    %193 = arith.negf %192 : vector<8x32xf32>
    %194 = math.exp %193 : vector<8x32xf32>
    %cst_62 = arith.constant 1.000000e+00 : f32
    %195 = vector.broadcast %cst_62 : f32 to vector<8x32xf32>
    %196 = arith.addf %195, %194 : vector<8x32xf32>
    %197 = arith.divf %195, %196 : vector<8x32xf32>
    %198 = arith.mulf %189, %166 : vector<8x32xf32>
    %199 = arith.mulf %183, %191 : vector<8x32xf32>
    %200 = arith.addf %198, %199 : vector<8x32xf32>
    %201 = math.tanh %200 : vector<8x32xf32>
    %202 = arith.mulf %197, %201 : vector<8x32xf32>
    %c0_63 = arith.constant 0 : index
    %c0_64 = arith.constant 0 : index
    %203 = vector.load %arg0[%c0_63, %c0_64] : memref<8x1xi32, #tpu.memory_space<vmem>>, vector<8x1xi32>
    %204 = vector.broadcast %c3_i32 : i32 to vector<8x1xi32>
    %205 = arith.cmpi sgt, %203, %204 : vector<8x1xi32>
    %206 = arith.extui %205 : vector<8x1xi1> to vector<8x1xi32>
    %207 = arith.sitofp %206 : vector<8x1xi32> to vector<8x1xf32>
    %208 = vector.broadcast %207 : vector<8x1xf32> to vector<8x32xf32>
    %209 = arith.mulf %208, %202 : vector<8x32xf32>
    %cst_65 = arith.constant 1.000000e+00 : f32
    %210 = vector.broadcast %cst_65 : f32 to vector<8x1xf32>
    %211 = arith.subf %210, %207 : vector<8x1xf32>
    %212 = vector.broadcast %211 : vector<8x1xf32> to vector<8x32xf32>
    %213 = arith.mulf %212, %159 : vector<8x32xf32>
    %214 = arith.addf %209, %213 : vector<8x32xf32>
    %215 = vector.broadcast %207 : vector<8x1xf32> to vector<8x32xf32>
    %216 = arith.mulf %215, %200 : vector<8x32xf32>
    %cst_66 = arith.constant 1.000000e+00 : f32
    %217 = vector.broadcast %cst_66 : f32 to vector<8x1xf32>
    %218 = arith.subf %217, %207 : vector<8x1xf32>
    %219 = vector.broadcast %218 : vector<8x1xf32> to vector<8x32xf32>
    %220 = arith.mulf %219, %166 : vector<8x32xf32>
    %221 = arith.addf %216, %220 : vector<8x32xf32>
    %c4_i32 = arith.constant 4 : i32
    %222 = arith.index_cast %c4_i32 : i32 to index
    %c0_67 = arith.constant 0 : index
    %c0_68 = arith.constant 0 : index
    %223 = vector.load %arg2[%222, %c0_67, %c0_68] : memref<8x8x16xf32, #tpu.memory_space<vmem>>, vector<1x8x16xf32>
    %224 = vector.shape_cast %223 : vector<1x8x16xf32> to vector<8x16xf32>
    %c0_69 = arith.constant 0 : index
    %c0_70 = arith.constant 0 : index
    %225 = vector.load %arg4[%c0_69, %c0_70] : memref<48x128xf32, #tpu.memory_space<vmem>>, vector<16x128xf32>
    %cst_71 = arith.constant dense<0.000000e+00> : vector<8x128xf32>
    %226 = tpu.matmul %224, %225, %cst_71 {dimension_numbers = #tpu.dot_dimension_numbers<[1], [0], [0], [1], [0, 0, 1, 1], [], []>} : vector<8x16xf32>, vector<16x128xf32>, vector<8x128xf32> -> vector<8x128xf32>
    %c16_72 = arith.constant 16 : index
    %c0_73 = arith.constant 0 : index
    %227 = vector.load %arg4[%c16_72, %c0_73] : memref<48x128xf32, #tpu.memory_space<vmem>>, vector<32x128xf32>
    %cst_74 = arith.constant dense<0.000000e+00> : vector<8x128xf32>
    %228 = tpu.matmul %214, %227, %cst_74 {dimension_numbers = #tpu.dot_dimension_numbers<[1], [0], [0], [1], [0, 0, 1, 1], [], []>} : vector<8x32xf32>, vector<32x128xf32>, vector<8x128xf32> -> vector<8x128xf32>
    %229 = arith.addf %226, %228 : vector<8x128xf32>
    %c0_75 = arith.constant 0 : index
    %c0_76 = arith.constant 0 : index
    %230 = vector.load %arg5[%c0_75, %c0_76] : memref<1x128xf32, #tpu.memory_space<vmem>>, vector<1x128xf32>
    %231 = vector.broadcast %230 : vector<1x128xf32> to vector<8x128xf32>
    %232 = arith.addf %229, %231 : vector<8x128xf32>
    %233 = vector.extract_strided_slice %232 {offsets = [0, 0], sizes = [8, 32], strides = [1, 1]} : vector<8x128xf32> to vector<8x32xf32>
    %234 = arith.negf %233 : vector<8x32xf32>
    %235 = math.exp %234 : vector<8x32xf32>
    %cst_77 = arith.constant 1.000000e+00 : f32
    %236 = vector.broadcast %cst_77 : f32 to vector<8x32xf32>
    %237 = arith.addf %236, %235 : vector<8x32xf32>
    %238 = arith.divf %236, %237 : vector<8x32xf32>
    %239 = vector.extract_strided_slice %232 {offsets = [0, 32], sizes = [8, 32], strides = [1, 1]} : vector<8x128xf32> to vector<8x32xf32>
    %240 = arith.negf %239 : vector<8x32xf32>
    %241 = math.exp %240 : vector<8x32xf32>
    %cst_78 = arith.constant 1.000000e+00 : f32
    %242 = vector.broadcast %cst_78 : f32 to vector<8x32xf32>
    %243 = arith.addf %242, %241 : vector<8x32xf32>
    %244 = arith.divf %242, %243 : vector<8x32xf32>
    %245 = vector.extract_strided_slice %232 {offsets = [0, 64], sizes = [8, 32], strides = [1, 1]} : vector<8x128xf32> to vector<8x32xf32>
    %246 = math.tanh %245 : vector<8x32xf32>
    %247 = vector.extract_strided_slice %232 {offsets = [0, 96], sizes = [8, 32], strides = [1, 1]} : vector<8x128xf32> to vector<8x32xf32>
    %248 = arith.negf %247 : vector<8x32xf32>
    %249 = math.exp %248 : vector<8x32xf32>
    %cst_79 = arith.constant 1.000000e+00 : f32
    %250 = vector.broadcast %cst_79 : f32 to vector<8x32xf32>
    %251 = arith.addf %250, %249 : vector<8x32xf32>
    %252 = arith.divf %250, %251 : vector<8x32xf32>
    %253 = arith.mulf %244, %221 : vector<8x32xf32>
    %254 = arith.mulf %238, %246 : vector<8x32xf32>
    %255 = arith.addf %253, %254 : vector<8x32xf32>
    %256 = math.tanh %255 : vector<8x32xf32>
    %257 = arith.mulf %252, %256 : vector<8x32xf32>
    %c0_80 = arith.constant 0 : index
    %c0_81 = arith.constant 0 : index
    %258 = vector.load %arg0[%c0_80, %c0_81] : memref<8x1xi32, #tpu.memory_space<vmem>>, vector<8x1xi32>
    %259 = vector.broadcast %c4_i32 : i32 to vector<8x1xi32>
    %260 = arith.cmpi sgt, %258, %259 : vector<8x1xi32>
    %261 = arith.extui %260 : vector<8x1xi1> to vector<8x1xi32>
    %262 = arith.sitofp %261 : vector<8x1xi32> to vector<8x1xf32>
    %263 = vector.broadcast %262 : vector<8x1xf32> to vector<8x32xf32>
    %264 = arith.mulf %263, %257 : vector<8x32xf32>
    %cst_82 = arith.constant 1.000000e+00 : f32
    %265 = vector.broadcast %cst_82 : f32 to vector<8x1xf32>
    %266 = arith.subf %265, %262 : vector<8x1xf32>
    %267 = vector.broadcast %266 : vector<8x1xf32> to vector<8x32xf32>
    %268 = arith.mulf %267, %214 : vector<8x32xf32>
    %269 = arith.addf %264, %268 : vector<8x32xf32>
    %270 = vector.broadcast %262 : vector<8x1xf32> to vector<8x32xf32>
    %271 = arith.mulf %270, %255 : vector<8x32xf32>
    %cst_83 = arith.constant 1.000000e+00 : f32
    %272 = vector.broadcast %cst_83 : f32 to vector<8x1xf32>
    %273 = arith.subf %272, %262 : vector<8x1xf32>
    %274 = vector.broadcast %273 : vector<8x1xf32> to vector<8x32xf32>
    %275 = arith.mulf %274, %221 : vector<8x32xf32>
    %276 = arith.addf %271, %275 : vector<8x32xf32>
    %c5_i32 = arith.constant 5 : i32
    %277 = arith.index_cast %c5_i32 : i32 to index
    %c0_84 = arith.constant 0 : index
    %c0_85 = arith.constant 0 : index
    %278 = vector.load %arg2[%277, %c0_84, %c0_85] : memref<8x8x16xf32, #tpu.memory_space<vmem>>, vector<1x8x16xf32>
    %279 = vector.shape_cast %278 : vector<1x8x16xf32> to vector<8x16xf32>
    %c0_86 = arith.constant 0 : index
    %c0_87 = arith.constant 0 : index
    %280 = vector.load %arg4[%c0_86, %c0_87] : memref<48x128xf32, #tpu.memory_space<vmem>>, vector<16x128xf32>
    %cst_88 = arith.constant dense<0.000000e+00> : vector<8x128xf32>
    %281 = tpu.matmul %279, %280, %cst_88 {dimension_numbers = #tpu.dot_dimension_numbers<[1], [0], [0], [1], [0, 0, 1, 1], [], []>} : vector<8x16xf32>, vector<16x128xf32>, vector<8x128xf32> -> vector<8x128xf32>
    %c16_89 = arith.constant 16 : index
    %c0_90 = arith.constant 0 : index
    %282 = vector.load %arg4[%c16_89, %c0_90] : memref<48x128xf32, #tpu.memory_space<vmem>>, vector<32x128xf32>
    %cst_91 = arith.constant dense<0.000000e+00> : vector<8x128xf32>
    %283 = tpu.matmul %269, %282, %cst_91 {dimension_numbers = #tpu.dot_dimension_numbers<[1], [0], [0], [1], [0, 0, 1, 1], [], []>} : vector<8x32xf32>, vector<32x128xf32>, vector<8x128xf32> -> vector<8x128xf32>
    %284 = arith.addf %281, %283 : vector<8x128xf32>
    %c0_92 = arith.constant 0 : index
    %c0_93 = arith.constant 0 : index
    %285 = vector.load %arg5[%c0_92, %c0_93] : memref<1x128xf32, #tpu.memory_space<vmem>>, vector<1x128xf32>
    %286 = vector.broadcast %285 : vector<1x128xf32> to vector<8x128xf32>
    %287 = arith.addf %284, %286 : vector<8x128xf32>
    %288 = vector.extract_strided_slice %287 {offsets = [0, 0], sizes = [8, 32], strides = [1, 1]} : vector<8x128xf32> to vector<8x32xf32>
    %289 = arith.negf %288 : vector<8x32xf32>
    %290 = math.exp %289 : vector<8x32xf32>
    %cst_94 = arith.constant 1.000000e+00 : f32
    %291 = vector.broadcast %cst_94 : f32 to vector<8x32xf32>
    %292 = arith.addf %291, %290 : vector<8x32xf32>
    %293 = arith.divf %291, %292 : vector<8x32xf32>
    %294 = vector.extract_strided_slice %287 {offsets = [0, 32], sizes = [8, 32], strides = [1, 1]} : vector<8x128xf32> to vector<8x32xf32>
    %295 = arith.negf %294 : vector<8x32xf32>
    %296 = math.exp %295 : vector<8x32xf32>
    %cst_95 = arith.constant 1.000000e+00 : f32
    %297 = vector.broadcast %cst_95 : f32 to vector<8x32xf32>
    %298 = arith.addf %297, %296 : vector<8x32xf32>
    %299 = arith.divf %297, %298 : vector<8x32xf32>
    %300 = vector.extract_strided_slice %287 {offsets = [0, 64], sizes = [8, 32], strides = [1, 1]} : vector<8x128xf32> to vector<8x32xf32>
    %301 = math.tanh %300 : vector<8x32xf32>
    %302 = vector.extract_strided_slice %287 {offsets = [0, 96], sizes = [8, 32], strides = [1, 1]} : vector<8x128xf32> to vector<8x32xf32>
    %303 = arith.negf %302 : vector<8x32xf32>
    %304 = math.exp %303 : vector<8x32xf32>
    %cst_96 = arith.constant 1.000000e+00 : f32
    %305 = vector.broadcast %cst_96 : f32 to vector<8x32xf32>
    %306 = arith.addf %305, %304 : vector<8x32xf32>
    %307 = arith.divf %305, %306 : vector<8x32xf32>
    %308 = arith.mulf %299, %276 : vector<8x32xf32>
    %309 = arith.mulf %293, %301 : vector<8x32xf32>
    %310 = arith.addf %308, %309 : vector<8x32xf32>
    %311 = math.tanh %310 : vector<8x32xf32>
    %312 = arith.mulf %307, %311 : vector<8x32xf32>
    %c0_97 = arith.constant 0 : index
    %c0_98 = arith.constant 0 : index
    %313 = vector.load %arg0[%c0_97, %c0_98] : memref<8x1xi32, #tpu.memory_space<vmem>>, vector<8x1xi32>
    %314 = vector.broadcast %c5_i32 : i32 to vector<8x1xi32>
    %315 = arith.cmpi sgt, %313, %314 : vector<8x1xi32>
    %316 = arith.extui %315 : vector<8x1xi1> to vector<8x1xi32>
    %317 = arith.sitofp %316 : vector<8x1xi32> to vector<8x1xf32>
    %318 = vector.broadcast %317 : vector<8x1xf32> to vector<8x32xf32>
    %319 = arith.mulf %318, %312 : vector<8x32xf32>
    %cst_99 = arith.constant 1.000000e+00 : f32
    %320 = vector.broadcast %cst_99 : f32 to vector<8x1xf32>
    %321 = arith.subf %320, %317 : vector<8x1xf32>
    %322 = vector.broadcast %321 : vector<8x1xf32> to vector<8x32xf32>
    %323 = arith.mulf %322, %269 : vector<8x32xf32>
    %324 = arith.addf %319, %323 : vector<8x32xf32>
    %325 = vector.broadcast %317 : vector<8x1xf32> to vector<8x32xf32>
    %326 = arith.mulf %325, %310 : vector<8x32xf32>
    %cst_100 = arith.constant 1.000000e+00 : f32
    %327 = vector.broadcast %cst_100 : f32 to vector<8x1xf32>
    %328 = arith.subf %327, %317 : vector<8x1xf32>
    %329 = vector.broadcast %328 : vector<8x1xf32> to vector<8x32xf32>
    %330 = arith.mulf %329, %276 : vector<8x32xf32>
    %331 = arith.addf %326, %330 : vector<8x32xf32>
    %c6_i32 = arith.constant 6 : i32
    %332 = arith.index_cast %c6_i32 : i32 to index
    %c0_101 = arith.constant 0 : index
    %c0_102 = arith.constant 0 : index
    %333 = vector.load %arg2[%332, %c0_101, %c0_102] : memref<8x8x16xf32, #tpu.memory_space<vmem>>, vector<1x8x16xf32>
    %334 = vector.shape_cast %333 : vector<1x8x16xf32> to vector<8x16xf32>
    %c0_103 = arith.constant 0 : index
    %c0_104 = arith.constant 0 : index
    %335 = vector.load %arg4[%c0_103, %c0_104] : memref<48x128xf32, #tpu.memory_space<vmem>>, vector<16x128xf32>
    %cst_105 = arith.constant dense<0.000000e+00> : vector<8x128xf32>
    %336 = tpu.matmul %334, %335, %cst_105 {dimension_numbers = #tpu.dot_dimension_numbers<[1], [0], [0], [1], [0, 0, 1, 1], [], []>} : vector<8x16xf32>, vector<16x128xf32>, vector<8x128xf32> -> vector<8x128xf32>
    %c16_106 = arith.constant 16 : index
    %c0_107 = arith.constant 0 : index
    %337 = vector.load %arg4[%c16_106, %c0_107] : memref<48x128xf32, #tpu.memory_space<vmem>>, vector<32x128xf32>
    %cst_108 = arith.constant dense<0.000000e+00> : vector<8x128xf32>
    %338 = tpu.matmul %324, %337, %cst_108 {dimension_numbers = #tpu.dot_dimension_numbers<[1], [0], [0], [1], [0, 0, 1, 1], [], []>} : vector<8x32xf32>, vector<32x128xf32>, vector<8x128xf32> -> vector<8x128xf32>
    %339 = arith.addf %336, %338 : vector<8x128xf32>
    %c0_109 = arith.constant 0 : index
    %c0_110 = arith.constant 0 : index
    %340 = vector.load %arg5[%c0_109, %c0_110] : memref<1x128xf32, #tpu.memory_space<vmem>>, vector<1x128xf32>
    %341 = vector.broadcast %340 : vector<1x128xf32> to vector<8x128xf32>
    %342 = arith.addf %339, %341 : vector<8x128xf32>
    %343 = vector.extract_strided_slice %342 {offsets = [0, 0], sizes = [8, 32], strides = [1, 1]} : vector<8x128xf32> to vector<8x32xf32>
    %344 = arith.negf %343 : vector<8x32xf32>
    %345 = math.exp %344 : vector<8x32xf32>
    %cst_111 = arith.constant 1.000000e+00 : f32
    %346 = vector.broadcast %cst_111 : f32 to vector<8x32xf32>
    %347 = arith.addf %346, %345 : vector<8x32xf32>
    %348 = arith.divf %346, %347 : vector<8x32xf32>
    %349 = vector.extract_strided_slice %342 {offsets = [0, 32], sizes = [8, 32], strides = [1, 1]} : vector<8x128xf32> to vector<8x32xf32>
    %350 = arith.negf %349 : vector<8x32xf32>
    %351 = math.exp %350 : vector<8x32xf32>
    %cst_112 = arith.constant 1.000000e+00 : f32
    %352 = vector.broadcast %cst_112 : f32 to vector<8x32xf32>
    %353 = arith.addf %352, %351 : vector<8x32xf32>
    %354 = arith.divf %352, %353 : vector<8x32xf32>
    %355 = vector.extract_strided_slice %342 {offsets = [0, 64], sizes = [8, 32], strides = [1, 1]} : vector<8x128xf32> to vector<8x32xf32>
    %356 = math.tanh %355 : vector<8x32xf32>
    %357 = vector.extract_strided_slice %342 {offsets = [0, 96], sizes = [8, 32], strides = [1, 1]} : vector<8x128xf32> to vector<8x32xf32>
    %358 = arith.negf %357 : vector<8x32xf32>
    %359 = math.exp %358 : vector<8x32xf32>
    %cst_113 = arith.constant 1.000000e+00 : f32
    %360 = vector.broadcast %cst_113 : f32 to vector<8x32xf32>
    %361 = arith.addf %360, %359 : vector<8x32xf32>
    %362 = arith.divf %360, %361 : vector<8x32xf32>
    %363 = arith.mulf %354, %331 : vector<8x32xf32>
    %364 = arith.mulf %348, %356 : vector<8x32xf32>
    %365 = arith.addf %363, %364 : vector<8x32xf32>
    %366 = math.tanh %365 : vector<8x32xf32>
    %367 = arith.mulf %362, %366 : vector<8x32xf32>
    %c0_114 = arith.constant 0 : index
    %c0_115 = arith.constant 0 : index
    %368 = vector.load %arg0[%c0_114, %c0_115] : memref<8x1xi32, #tpu.memory_space<vmem>>, vector<8x1xi32>
    %369 = vector.broadcast %c6_i32 : i32 to vector<8x1xi32>
    %370 = arith.cmpi sgt, %368, %369 : vector<8x1xi32>
    %371 = arith.extui %370 : vector<8x1xi1> to vector<8x1xi32>
    %372 = arith.sitofp %371 : vector<8x1xi32> to vector<8x1xf32>
    %373 = vector.broadcast %372 : vector<8x1xf32> to vector<8x32xf32>
    %374 = arith.mulf %373, %367 : vector<8x32xf32>
    %cst_116 = arith.constant 1.000000e+00 : f32
    %375 = vector.broadcast %cst_116 : f32 to vector<8x1xf32>
    %376 = arith.subf %375, %372 : vector<8x1xf32>
    %377 = vector.broadcast %376 : vector<8x1xf32> to vector<8x32xf32>
    %378 = arith.mulf %377, %324 : vector<8x32xf32>
    %379 = arith.addf %374, %378 : vector<8x32xf32>
    %380 = vector.broadcast %372 : vector<8x1xf32> to vector<8x32xf32>
    %381 = arith.mulf %380, %365 : vector<8x32xf32>
    %cst_117 = arith.constant 1.000000e+00 : f32
    %382 = vector.broadcast %cst_117 : f32 to vector<8x1xf32>
    %383 = arith.subf %382, %372 : vector<8x1xf32>
    %384 = vector.broadcast %383 : vector<8x1xf32> to vector<8x32xf32>
    %385 = arith.mulf %384, %331 : vector<8x32xf32>
    %386 = arith.addf %381, %385 : vector<8x32xf32>
    %c7_i32 = arith.constant 7 : i32
    %387 = arith.index_cast %c7_i32 : i32 to index
    %c0_118 = arith.constant 0 : index
    %c0_119 = arith.constant 0 : index
    %388 = vector.load %arg2[%387, %c0_118, %c0_119] : memref<8x8x16xf32, #tpu.memory_space<vmem>>, vector<1x8x16xf32>
    %389 = vector.shape_cast %388 : vector<1x8x16xf32> to vector<8x16xf32>
    %c0_120 = arith.constant 0 : index
    %c0_121 = arith.constant 0 : index
    %390 = vector.load %arg4[%c0_120, %c0_121] : memref<48x128xf32, #tpu.memory_space<vmem>>, vector<16x128xf32>
    %cst_122 = arith.constant dense<0.000000e+00> : vector<8x128xf32>
    %391 = tpu.matmul %389, %390, %cst_122 {dimension_numbers = #tpu.dot_dimension_numbers<[1], [0], [0], [1], [0, 0, 1, 1], [], []>} : vector<8x16xf32>, vector<16x128xf32>, vector<8x128xf32> -> vector<8x128xf32>
    %c16_123 = arith.constant 16 : index
    %c0_124 = arith.constant 0 : index
    %392 = vector.load %arg4[%c16_123, %c0_124] : memref<48x128xf32, #tpu.memory_space<vmem>>, vector<32x128xf32>
    %cst_125 = arith.constant dense<0.000000e+00> : vector<8x128xf32>
    %393 = tpu.matmul %379, %392, %cst_125 {dimension_numbers = #tpu.dot_dimension_numbers<[1], [0], [0], [1], [0, 0, 1, 1], [], []>} : vector<8x32xf32>, vector<32x128xf32>, vector<8x128xf32> -> vector<8x128xf32>
    %394 = arith.addf %391, %393 : vector<8x128xf32>
    %c0_126 = arith.constant 0 : index
    %c0_127 = arith.constant 0 : index
    %395 = vector.load %arg5[%c0_126, %c0_127] : memref<1x128xf32, #tpu.memory_space<vmem>>, vector<1x128xf32>
    %396 = vector.broadcast %395 : vector<1x128xf32> to vector<8x128xf32>
    %397 = arith.addf %394, %396 : vector<8x128xf32>
    %398 = vector.extract_strided_slice %397 {offsets = [0, 0], sizes = [8, 32], strides = [1, 1]} : vector<8x128xf32> to vector<8x32xf32>
    %399 = arith.negf %398 : vector<8x32xf32>
    %400 = math.exp %399 : vector<8x32xf32>
    %cst_128 = arith.constant 1.000000e+00 : f32
    %401 = vector.broadcast %cst_128 : f32 to vector<8x32xf32>
    %402 = arith.addf %401, %400 : vector<8x32xf32>
    %403 = arith.divf %401, %402 : vector<8x32xf32>
    %404 = vector.extract_strided_slice %397 {offsets = [0, 32], sizes = [8, 32], strides = [1, 1]} : vector<8x128xf32> to vector<8x32xf32>
    %405 = arith.negf %404 : vector<8x32xf32>
    %406 = math.exp %405 : vector<8x32xf32>
    %cst_129 = arith.constant 1.000000e+00 : f32
    %407 = vector.broadcast %cst_129 : f32 to vector<8x32xf32>
    %408 = arith.addf %407, %406 : vector<8x32xf32>
    %409 = arith.divf %407, %408 : vector<8x32xf32>
    %410 = vector.extract_strided_slice %397 {offsets = [0, 64], sizes = [8, 32], strides = [1, 1]} : vector<8x128xf32> to vector<8x32xf32>
    %411 = math.tanh %410 : vector<8x32xf32>
    %412 = vector.extract_strided_slice %397 {offsets = [0, 96], sizes = [8, 32], strides = [1, 1]} : vector<8x128xf32> to vector<8x32xf32>
    %413 = arith.negf %412 : vector<8x32xf32>
    %414 = math.exp %413 : vector<8x32xf32>
    %cst_130 = arith.constant 1.000000e+00 : f32
    %415 = vector.broadcast %cst_130 : f32 to vector<8x32xf32>
    %416 = arith.addf %415, %414 : vector<8x32xf32>
    %417 = arith.divf %415, %416 : vector<8x32xf32>
    %418 = arith.mulf %409, %386 : vector<8x32xf32>
    %419 = arith.mulf %403, %411 : vector<8x32xf32>
    %420 = arith.addf %418, %419 : vector<8x32xf32>
    %421 = math.tanh %420 : vector<8x32xf32>
    %422 = arith.mulf %417, %421 : vector<8x32xf32>
    %c0_131 = arith.constant 0 : index
    %c0_132 = arith.constant 0 : index
    %423 = vector.load %arg0[%c0_131, %c0_132] : memref<8x1xi32, #tpu.memory_space<vmem>>, vector<8x1xi32>
    %424 = vector.broadcast %c7_i32 : i32 to vector<8x1xi32>
    %425 = arith.cmpi sgt, %423, %424 : vector<8x1xi32>
    %426 = arith.extui %425 : vector<8x1xi1> to vector<8x1xi32>
    %427 = arith.sitofp %426 : vector<8x1xi32> to vector<8x1xf32>
    %428 = vector.broadcast %427 : vector<8x1xf32> to vector<8x32xf32>
    %429 = arith.mulf %428, %422 : vector<8x32xf32>
    %cst_133 = arith.constant 1.000000e+00 : f32
    %430 = vector.broadcast %cst_133 : f32 to vector<8x1xf32>
    %431 = arith.subf %430, %427 : vector<8x1xf32>
    %432 = vector.broadcast %431 : vector<8x1xf32> to vector<8x32xf32>
    %433 = arith.mulf %432, %379 : vector<8x32xf32>
    %434 = arith.addf %429, %433 : vector<8x32xf32>
    %435 = vector.broadcast %427 : vector<8x1xf32> to vector<8x32xf32>
    %436 = arith.mulf %435, %420 : vector<8x32xf32>
    %cst_134 = arith.constant 1.000000e+00 : f32
    %437 = vector.broadcast %cst_134 : f32 to vector<8x1xf32>
    %438 = arith.subf %437, %427 : vector<8x1xf32>
    %439 = vector.broadcast %438 : vector<8x1xf32> to vector<8x32xf32>
    %440 = arith.mulf %439, %386 : vector<8x32xf32>
    %441 = arith.addf %436, %440 : vector<8x32xf32>
    %c8_i32 = arith.constant 8 : i32
    %c0_i32_135 = arith.constant 0 : i32
    %442 = arith.index_cast %c0_i32_135 : i32 to index
    %c0_136 = arith.constant 0 : index
    %c0_137 = arith.constant 0 : index
    %443 = vector.load %arg3[%442, %c0_136, %c0_137] : memref<7x8x16xf32, #tpu.memory_space<vmem>>, vector<1x8x16xf32>
    %444 = vector.shape_cast %443 : vector<1x8x16xf32> to vector<8x16xf32>
    %c0_138 = arith.constant 0 : index
    %c0_139 = arith.constant 0 : index
    %445 = vector.load %arg6[%c0_138, %c0_139] : memref<48x128xf32, #tpu.memory_space<vmem>>, vector<16x128xf32>
    %cst_140 = arith.constant dense<0.000000e+00> : vector<8x128xf32>
    %446 = tpu.matmul %444, %445, %cst_140 {dimension_numbers = #tpu.dot_dimension_numbers<[1], [0], [0], [1], [0, 0, 1, 1], [], []>} : vector<8x16xf32>, vector<16x128xf32>, vector<8x128xf32> -> vector<8x128xf32>
    %c16_141 = arith.constant 16 : index
    %c0_142 = arith.constant 0 : index
    %447 = vector.load %arg6[%c16_141, %c0_142] : memref<48x128xf32, #tpu.memory_space<vmem>>, vector<32x128xf32>
    %cst_143 = arith.constant dense<0.000000e+00> : vector<8x128xf32>
    %448 = tpu.matmul %434, %447, %cst_143 {dimension_numbers = #tpu.dot_dimension_numbers<[1], [0], [0], [1], [0, 0, 1, 1], [], []>} : vector<8x32xf32>, vector<32x128xf32>, vector<8x128xf32> -> vector<8x128xf32>
    %449 = arith.addf %446, %448 : vector<8x128xf32>
    %c0_144 = arith.constant 0 : index
    %c0_145 = arith.constant 0 : index
    %450 = vector.load %arg7[%c0_144, %c0_145] : memref<1x128xf32, #tpu.memory_space<vmem>>, vector<1x128xf32>
    %451 = vector.broadcast %450 : vector<1x128xf32> to vector<8x128xf32>
    %452 = arith.addf %449, %451 : vector<8x128xf32>
    %453 = vector.extract_strided_slice %452 {offsets = [0, 0], sizes = [8, 32], strides = [1, 1]} : vector<8x128xf32> to vector<8x32xf32>
    %454 = arith.negf %453 : vector<8x32xf32>
    %455 = math.exp %454 : vector<8x32xf32>
    %cst_146 = arith.constant 1.000000e+00 : f32
    %456 = vector.broadcast %cst_146 : f32 to vector<8x32xf32>
    %457 = arith.addf %456, %455 : vector<8x32xf32>
    %458 = arith.divf %456, %457 : vector<8x32xf32>
    %459 = vector.extract_strided_slice %452 {offsets = [0, 32], sizes = [8, 32], strides = [1, 1]} : vector<8x128xf32> to vector<8x32xf32>
    %460 = arith.negf %459 : vector<8x32xf32>
    %461 = math.exp %460 : vector<8x32xf32>
    %cst_147 = arith.constant 1.000000e+00 : f32
    %462 = vector.broadcast %cst_147 : f32 to vector<8x32xf32>
    %463 = arith.addf %462, %461 : vector<8x32xf32>
    %464 = arith.divf %462, %463 : vector<8x32xf32>
    %465 = vector.extract_strided_slice %452 {offsets = [0, 64], sizes = [8, 32], strides = [1, 1]} : vector<8x128xf32> to vector<8x32xf32>
    %466 = math.tanh %465 : vector<8x32xf32>
    %467 = vector.extract_strided_slice %452 {offsets = [0, 96], sizes = [8, 32], strides = [1, 1]} : vector<8x128xf32> to vector<8x32xf32>
    %468 = arith.negf %467 : vector<8x32xf32>
    %469 = math.exp %468 : vector<8x32xf32>
    %cst_148 = arith.constant 1.000000e+00 : f32
    %470 = vector.broadcast %cst_148 : f32 to vector<8x32xf32>
    %471 = arith.addf %470, %469 : vector<8x32xf32>
    %472 = arith.divf %470, %471 : vector<8x32xf32>
    %473 = arith.mulf %464, %441 : vector<8x32xf32>
    %474 = arith.mulf %458, %466 : vector<8x32xf32>
    %475 = arith.addf %473, %474 : vector<8x32xf32>
    %476 = math.tanh %475 : vector<8x32xf32>
    %477 = arith.mulf %472, %476 : vector<8x32xf32>
    %c0_149 = arith.constant 0 : index
    %c0_150 = arith.constant 0 : index
    %478 = vector.load %arg1[%c0_149, %c0_150] : memref<8x1xi32, #tpu.memory_space<vmem>>, vector<8x1xi32>
    %479 = vector.broadcast %c0_i32_135 : i32 to vector<8x1xi32>
    %480 = arith.cmpi sgt, %478, %479 : vector<8x1xi32>
    %481 = arith.extui %480 : vector<8x1xi1> to vector<8x1xi32>
    %482 = arith.sitofp %481 : vector<8x1xi32> to vector<8x1xf32>
    %483 = vector.broadcast %482 : vector<8x1xf32> to vector<8x32xf32>
    %484 = arith.mulf %483, %477 : vector<8x32xf32>
    %cst_151 = arith.constant 1.000000e+00 : f32
    %485 = vector.broadcast %cst_151 : f32 to vector<8x1xf32>
    %486 = arith.subf %485, %482 : vector<8x1xf32>
    %487 = vector.broadcast %486 : vector<8x1xf32> to vector<8x32xf32>
    %488 = arith.mulf %487, %434 : vector<8x32xf32>
    %489 = arith.addf %484, %488 : vector<8x32xf32>
    %490 = vector.broadcast %482 : vector<8x1xf32> to vector<8x32xf32>
    %491 = arith.mulf %490, %475 : vector<8x32xf32>
    %cst_152 = arith.constant 1.000000e+00 : f32
    %492 = vector.broadcast %cst_152 : f32 to vector<8x1xf32>
    %493 = arith.subf %492, %482 : vector<8x1xf32>
    %494 = vector.broadcast %493 : vector<8x1xf32> to vector<8x32xf32>
    %495 = arith.mulf %494, %441 : vector<8x32xf32>
    %496 = arith.addf %491, %495 : vector<8x32xf32>
    %c0_153 = arith.constant 0 : index
    %c0_154 = arith.constant 0 : index
    %497 = vector.load %arg8[%c0_153, %c0_154] : memref<32x128xf32, #tpu.memory_space<vmem>>, vector<32x128xf32>
    %cst_155 = arith.constant dense<0.000000e+00> : vector<8x128xf32>
    %498 = tpu.matmul %489, %497, %cst_155 {dimension_numbers = #tpu.dot_dimension_numbers<[1], [0], [0], [1], [0, 0, 1, 1], [], []>} : vector<8x32xf32>, vector<32x128xf32>, vector<8x128xf32> -> vector<8x128xf32>
    %c0_156 = arith.constant 0 : index
    %c0_157 = arith.constant 0 : index
    %499 = vector.load %arg9[%c0_156, %c0_157] : memref<1x128xf32, #tpu.memory_space<vmem>>, vector<1x128xf32>
    %500 = vector.broadcast %499 : vector<1x128xf32> to vector<8x128xf32>
    %501 = arith.addf %498, %500 : vector<8x128xf32>
    %502 = vector.broadcast %482 : vector<8x1xf32> to vector<8x128xf32>
    %503 = arith.mulf %502, %501 : vector<8x128xf32>
    %504 = arith.index_cast %c0_i32_135 : i32 to index
    %c0_158 = arith.constant 0 : index
    %c0_159 = arith.constant 0 : index
    %505 = vector.load %arg10[%504, %c0_158, %c0_159] : memref<7x8x128xf32, #tpu.memory_space<vmem>>, vector<1x8x128xf32>
    %506 = vector.shape_cast %505 : vector<1x8x128xf32> to vector<8x128xf32>
    %507 = vector.shape_cast %503 : vector<8x128xf32> to vector<1x8x128xf32>
    tpu.vector_store %arg10[%504, %c0_158, %c0_159], %507 {strides = array<i32>} : memref<7x8x128xf32, #tpu.memory_space<vmem>>, vector<1x8x128xf32>,
    %c1_i32_160 = arith.constant 1 : i32
    %508 = arith.index_cast %c1_i32_160 : i32 to index
    %c0_161 = arith.constant 0 : index
    %c0_162 = arith.constant 0 : index
    %509 = vector.load %arg3[%508, %c0_161, %c0_162] : memref<7x8x16xf32, #tpu.memory_space<vmem>>, vector<1x8x16xf32>
    %510 = vector.shape_cast %509 : vector<1x8x16xf32> to vector<8x16xf32>
    %c0_163 = arith.constant 0 : index
    %c0_164 = arith.constant 0 : index
    %511 = vector.load %arg6[%c0_163, %c0_164] : memref<48x128xf32, #tpu.memory_space<vmem>>, vector<16x128xf32>
    %cst_165 = arith.constant dense<0.000000e+00> : vector<8x128xf32>
    %512 = tpu.matmul %510, %511, %cst_165 {dimension_numbers = #tpu.dot_dimension_numbers<[1], [0], [0], [1], [0, 0, 1, 1], [], []>} : vector<8x16xf32>, vector<16x128xf32>, vector<8x128xf32> -> vector<8x128xf32>
    %c16_166 = arith.constant 16 : index
    %c0_167 = arith.constant 0 : index
    %513 = vector.load %arg6[%c16_166, %c0_167] : memref<48x128xf32, #tpu.memory_space<vmem>>, vector<32x128xf32>
    %cst_168 = arith.constant dense<0.000000e+00> : vector<8x128xf32>
    %514 = tpu.matmul %489, %513, %cst_168 {dimension_numbers = #tpu.dot_dimension_numbers<[1], [0], [0], [1], [0, 0, 1, 1], [], []>} : vector<8x32xf32>, vector<32x128xf32>, vector<8x128xf32> -> vector<8x128xf32>
    %515 = arith.addf %512, %514 : vector<8x128xf32>
    %c0_169 = arith.constant 0 : index
    %c0_170 = arith.constant 0 : index
    %516 = vector.load %arg7[%c0_169, %c0_170] : memref<1x128xf32, #tpu.memory_space<vmem>>, vector<1x128xf32>
    %517 = vector.broadcast %516 : vector<1x128xf32> to vector<8x128xf32>
    %518 = arith.addf %515, %517 : vector<8x128xf32>
    %519 = vector.extract_strided_slice %518 {offsets = [0, 0], sizes = [8, 32], strides = [1, 1]} : vector<8x128xf32> to vector<8x32xf32>
    %520 = arith.negf %519 : vector<8x32xf32>
    %521 = math.exp %520 : vector<8x32xf32>
    %cst_171 = arith.constant 1.000000e+00 : f32
    %522 = vector.broadcast %cst_171 : f32 to vector<8x32xf32>
    %523 = arith.addf %522, %521 : vector<8x32xf32>
    %524 = arith.divf %522, %523 : vector<8x32xf32>
    %525 = vector.extract_strided_slice %518 {offsets = [0, 32], sizes = [8, 32], strides = [1, 1]} : vector<8x128xf32> to vector<8x32xf32>
    %526 = arith.negf %525 : vector<8x32xf32>
    %527 = math.exp %526 : vector<8x32xf32>
    %cst_172 = arith.constant 1.000000e+00 : f32
    %528 = vector.broadcast %cst_172 : f32 to vector<8x32xf32>
    %529 = arith.addf %528, %527 : vector<8x32xf32>
    %530 = arith.divf %528, %529 : vector<8x32xf32>
    %531 = vector.extract_strided_slice %518 {offsets = [0, 64], sizes = [8, 32], strides = [1, 1]} : vector<8x128xf32> to vector<8x32xf32>
    %532 = math.tanh %531 : vector<8x32xf32>
    %533 = vector.extract_strided_slice %518 {offsets = [0, 96], sizes = [8, 32], strides = [1, 1]} : vector<8x128xf32> to vector<8x32xf32>
    %534 = arith.negf %533 : vector<8x32xf32>
    %535 = math.exp %534 : vector<8x32xf32>
    %cst_173 = arith.constant 1.000000e+00 : f32
    %536 = vector.broadcast %cst_173 : f32 to vector<8x32xf32>
    %537 = arith.addf %536, %535 : vector<8x32xf32>
    %538 = arith.divf %536, %537 : vector<8x32xf32>
    %539 = arith.mulf %530, %496 : vector<8x32xf32>
    %540 = arith.mulf %524, %532 : vector<8x32xf32>
    %541 = arith.addf %539, %540 : vector<8x32xf32>
    %542 = math.tanh %541 : vector<8x32xf32>
    %543 = arith.mulf %538, %542 : vector<8x32xf32>
    %c0_174 = arith.constant 0 : index
    %c0_175 = arith.constant 0 : index
    %544 = vector.load %arg1[%c0_174, %c0_175] : memref<8x1xi32, #tpu.memory_space<vmem>>, vector<8x1xi32>
    %545 = vector.broadcast %c1_i32_160 : i32 to vector<8x1xi32>
    %546 = arith.cmpi sgt, %544, %545 : vector<8x1xi32>
    %547 = arith.extui %546 : vector<8x1xi1> to vector<8x1xi32>
    %548 = arith.sitofp %547 : vector<8x1xi32> to vector<8x1xf32>
    %549 = vector.broadcast %548 : vector<8x1xf32> to vector<8x32xf32>
    %550 = arith.mulf %549, %543 : vector<8x32xf32>
    %cst_176 = arith.constant 1.000000e+00 : f32
    %551 = vector.broadcast %cst_176 : f32 to vector<8x1xf32>
    %552 = arith.subf %551, %548 : vector<8x1xf32>
    %553 = vector.broadcast %552 : vector<8x1xf32> to vector<8x32xf32>
    %554 = arith.mulf %553, %489 : vector<8x32xf32>
    %555 = arith.addf %550, %554 : vector<8x32xf32>
    %556 = vector.broadcast %548 : vector<8x1xf32> to vector<8x32xf32>
    %557 = arith.mulf %556, %541 : vector<8x32xf32>
    %cst_177 = arith.constant 1.000000e+00 : f32
    %558 = vector.broadcast %cst_177 : f32 to vector<8x1xf32>
    %559 = arith.subf %558, %548 : vector<8x1xf32>
    %560 = vector.broadcast %559 : vector<8x1xf32> to vector<8x32xf32>
    %561 = arith.mulf %560, %496 : vector<8x32xf32>
    %562 = arith.addf %557, %561 : vector<8x32xf32>
    %c0_178 = arith.constant 0 : index
    %c0_179 = arith.constant 0 : index
    %563 = vector.load %arg8[%c0_178, %c0_179] : memref<32x128xf32, #tpu.memory_space<vmem>>, vector<32x128xf32>
    %cst_180 = arith.constant dense<0.000000e+00> : vector<8x128xf32>
    %564 = tpu.matmul %555, %563, %cst_180 {dimension_numbers = #tpu.dot_dimension_numbers<[1], [0], [0], [1], [0, 0, 1, 1], [], []>} : vector<8x32xf32>, vector<32x128xf32>, vector<8x128xf32> -> vector<8x128xf32>
    %c0_181 = arith.constant 0 : index
    %c0_182 = arith.constant 0 : index
    %565 = vector.load %arg9[%c0_181, %c0_182] : memref<1x128xf32, #tpu.memory_space<vmem>>, vector<1x128xf32>
    %566 = vector.broadcast %565 : vector<1x128xf32> to vector<8x128xf32>
    %567 = arith.addf %564, %566 : vector<8x128xf32>
    %568 = vector.broadcast %548 : vector<8x1xf32> to vector<8x128xf32>
    %569 = arith.mulf %568, %567 : vector<8x128xf32>
    %570 = arith.index_cast %c1_i32_160 : i32 to index
    %c0_183 = arith.constant 0 : index
    %c0_184 = arith.constant 0 : index
    %571 = vector.load %arg10[%570, %c0_183, %c0_184] : memref<7x8x128xf32, #tpu.memory_space<vmem>>, vector<1x8x128xf32>
    %572 = vector.shape_cast %571 : vector<1x8x128xf32> to vector<8x128xf32>
    %573 = vector.shape_cast %569 : vector<8x128xf32> to vector<1x8x128xf32>
    tpu.vector_store %arg10[%570, %c0_183, %c0_184], %573 {strides = array<i32>} : memref<7x8x128xf32, #tpu.memory_space<vmem>>, vector<1x8x128xf32>,
    %c2_i32_185 = arith.constant 2 : i32
    %574 = arith.index_cast %c2_i32_185 : i32 to index
    %c0_186 = arith.constant 0 : index
    %c0_187 = arith.constant 0 : index
    %575 = vector.load %arg3[%574, %c0_186, %c0_187] : memref<7x8x16xf32, #tpu.memory_space<vmem>>, vector<1x8x16xf32>
    %576 = vector.shape_cast %575 : vector<1x8x16xf32> to vector<8x16xf32>
    %c0_188 = arith.constant 0 : index
    %c0_189 = arith.constant 0 : index
    %577 = vector.load %arg6[%c0_188, %c0_189] : memref<48x128xf32, #tpu.memory_space<vmem>>, vector<16x128xf32>
    %cst_190 = arith.constant dense<0.000000e+00> : vector<8x128xf32>
    %578 = tpu.matmul %576, %577, %cst_190 {dimension_numbers = #tpu.dot_dimension_numbers<[1], [0], [0], [1], [0, 0, 1, 1], [], []>} : vector<8x16xf32>, vector<16x128xf32>, vector<8x128xf32> -> vector<8x128xf32>
    %c16_191 = arith.constant 16 : index
    %c0_192 = arith.constant 0 : index
    %579 = vector.load %arg6[%c16_191, %c0_192] : memref<48x128xf32, #tpu.memory_space<vmem>>, vector<32x128xf32>
    %cst_193 = arith.constant dense<0.000000e+00> : vector<8x128xf32>
    %580 = tpu.matmul %555, %579, %cst_193 {dimension_numbers = #tpu.dot_dimension_numbers<[1], [0], [0], [1], [0, 0, 1, 1], [], []>} : vector<8x32xf32>, vector<32x128xf32>, vector<8x128xf32> -> vector<8x128xf32>
    %581 = arith.addf %578, %580 : vector<8x128xf32>
    %c0_194 = arith.constant 0 : index
    %c0_195 = arith.constant 0 : index
    %582 = vector.load %arg7[%c0_194, %c0_195] : memref<1x128xf32, #tpu.memory_space<vmem>>, vector<1x128xf32>
    %583 = vector.broadcast %582 : vector<1x128xf32> to vector<8x128xf32>
    %584 = arith.addf %581, %583 : vector<8x128xf32>
    %585 = vector.extract_strided_slice %584 {offsets = [0, 0], sizes = [8, 32], strides = [1, 1]} : vector<8x128xf32> to vector<8x32xf32>
    %586 = arith.negf %585 : vector<8x32xf32>
    %587 = math.exp %586 : vector<8x32xf32>
    %cst_196 = arith.constant 1.000000e+00 : f32
    %588 = vector.broadcast %cst_196 : f32 to vector<8x32xf32>
    %589 = arith.addf %588, %587 : vector<8x32xf32>
    %590 = arith.divf %588, %589 : vector<8x32xf32>
    %591 = vector.extract_strided_slice %584 {offsets = [0, 32], sizes = [8, 32], strides = [1, 1]} : vector<8x128xf32> to vector<8x32xf32>
    %592 = arith.negf %591 : vector<8x32xf32>
    %593 = math.exp %592 : vector<8x32xf32>
    %cst_197 = arith.constant 1.000000e+00 : f32
    %594 = vector.broadcast %cst_197 : f32 to vector<8x32xf32>
    %595 = arith.addf %594, %593 : vector<8x32xf32>
    %596 = arith.divf %594, %595 : vector<8x32xf32>
    %597 = vector.extract_strided_slice %584 {offsets = [0, 64], sizes = [8, 32], strides = [1, 1]} : vector<8x128xf32> to vector<8x32xf32>
    %598 = math.tanh %597 : vector<8x32xf32>
    %599 = vector.extract_strided_slice %584 {offsets = [0, 96], sizes = [8, 32], strides = [1, 1]} : vector<8x128xf32> to vector<8x32xf32>
    %600 = arith.negf %599 : vector<8x32xf32>
    %601 = math.exp %600 : vector<8x32xf32>
    %cst_198 = arith.constant 1.000000e+00 : f32
    %602 = vector.broadcast %cst_198 : f32 to vector<8x32xf32>
    %603 = arith.addf %602, %601 : vector<8x32xf32>
    %604 = arith.divf %602, %603 : vector<8x32xf32>
    %605 = arith.mulf %596, %562 : vector<8x32xf32>
    %606 = arith.mulf %590, %598 : vector<8x32xf32>
    %607 = arith.addf %605, %606 : vector<8x32xf32>
    %608 = math.tanh %607 : vector<8x32xf32>
    %609 = arith.mulf %604, %608 : vector<8x32xf32>
    %c0_199 = arith.constant 0 : index
    %c0_200 = arith.constant 0 : index
    %610 = vector.load %arg1[%c0_199, %c0_200] : memref<8x1xi32, #tpu.memory_space<vmem>>, vector<8x1xi32>
    %611 = vector.broadcast %c2_i32_185 : i32 to vector<8x1xi32>
    %612 = arith.cmpi sgt, %610, %611 : vector<8x1xi32>
    %613 = arith.extui %612 : vector<8x1xi1> to vector<8x1xi32>
    %614 = arith.sitofp %613 : vector<8x1xi32> to vector<8x1xf32>
    %615 = vector.broadcast %614 : vector<8x1xf32> to vector<8x32xf32>
    %616 = arith.mulf %615, %609 : vector<8x32xf32>
    %cst_201 = arith.constant 1.000000e+00 : f32
    %617 = vector.broadcast %cst_201 : f32 to vector<8x1xf32>
    %618 = arith.subf %617, %614 : vector<8x1xf32>
    %619 = vector.broadcast %618 : vector<8x1xf32> to vector<8x32xf32>
    %620 = arith.mulf %619, %555 : vector<8x32xf32>
    %621 = arith.addf %616, %620 : vector<8x32xf32>
    %622 = vector.broadcast %614 : vector<8x1xf32> to vector<8x32xf32>
    %623 = arith.mulf %622, %607 : vector<8x32xf32>
    %cst_202 = arith.constant 1.000000e+00 : f32
    %624 = vector.broadcast %cst_202 : f32 to vector<8x1xf32>
    %625 = arith.subf %624, %614 : vector<8x1xf32>
    %626 = vector.broadcast %625 : vector<8x1xf32> to vector<8x32xf32>
    %627 = arith.mulf %626, %562 : vector<8x32xf32>
    %628 = arith.addf %623, %627 : vector<8x32xf32>
    %c0_203 = arith.constant 0 : index
    %c0_204 = arith.constant 0 : index
    %629 = vector.load %arg8[%c0_203, %c0_204] : memref<32x128xf32, #tpu.memory_space<vmem>>, vector<32x128xf32>
    %cst_205 = arith.constant dense<0.000000e+00> : vector<8x128xf32>
    %630 = tpu.matmul %621, %629, %cst_205 {dimension_numbers = #tpu.dot_dimension_numbers<[1], [0], [0], [1], [0, 0, 1, 1], [], []>} : vector<8x32xf32>, vector<32x128xf32>, vector<8x128xf32> -> vector<8x128xf32>
    %c0_206 = arith.constant 0 : index
    %c0_207 = arith.constant 0 : index
    %631 = vector.load %arg9[%c0_206, %c0_207] : memref<1x128xf32, #tpu.memory_space<vmem>>, vector<1x128xf32>
    %632 = vector.broadcast %631 : vector<1x128xf32> to vector<8x128xf32>
    %633 = arith.addf %630, %632 : vector<8x128xf32>
    %634 = vector.broadcast %614 : vector<8x1xf32> to vector<8x128xf32>
    %635 = arith.mulf %634, %633 : vector<8x128xf32>
    %636 = arith.index_cast %c2_i32_185 : i32 to index
    %c0_208 = arith.constant 0 : index
    %c0_209 = arith.constant 0 : index
    %637 = vector.load %arg10[%636, %c0_208, %c0_209] : memref<7x8x128xf32, #tpu.memory_space<vmem>>, vector<1x8x128xf32>
    %638 = vector.shape_cast %637 : vector<1x8x128xf32> to vector<8x128xf32>
    %639 = vector.shape_cast %635 : vector<8x128xf32> to vector<1x8x128xf32>
    tpu.vector_store %arg10[%636, %c0_208, %c0_209], %639 {strides = array<i32>} : memref<7x8x128xf32, #tpu.memory_space<vmem>>, vector<1x8x128xf32>,
    %c3_i32_210 = arith.constant 3 : i32
    %640 = arith.index_cast %c3_i32_210 : i32 to index
    %c0_211 = arith.constant 0 : index
    %c0_212 = arith.constant 0 : index
    %641 = vector.load %arg3[%640, %c0_211, %c0_212] : memref<7x8x16xf32, #tpu.memory_space<vmem>>, vector<1x8x16xf32>
    %642 = vector.shape_cast %641 : vector<1x8x16xf32> to vector<8x16xf32>
    %c0_213 = arith.constant 0 : index
    %c0_214 = arith.constant 0 : index
    %643 = vector.load %arg6[%c0_213, %c0_214] : memref<48x128xf32, #tpu.memory_space<vmem>>, vector<16x128xf32>
    %cst_215 = arith.constant dense<0.000000e+00> : vector<8x128xf32>
    %644 = tpu.matmul %642, %643, %cst_215 {dimension_numbers = #tpu.dot_dimension_numbers<[1], [0], [0], [1], [0, 0, 1, 1], [], []>} : vector<8x16xf32>, vector<16x128xf32>, vector<8x128xf32> -> vector<8x128xf32>
    %c16_216 = arith.constant 16 : index
    %c0_217 = arith.constant 0 : index
    %645 = vector.load %arg6[%c16_216, %c0_217] : memref<48x128xf32, #tpu.memory_space<vmem>>, vector<32x128xf32>
    %cst_218 = arith.constant dense<0.000000e+00> : vector<8x128xf32>
    %646 = tpu.matmul %621, %645, %cst_218 {dimension_numbers = #tpu.dot_dimension_numbers<[1], [0], [0], [1], [0, 0, 1, 1], [], []>} : vector<8x32xf32>, vector<32x128xf32>, vector<8x128xf32> -> vector<8x128xf32>
    %647 = arith.addf %644, %646 : vector<8x128xf32>
    %c0_219 = arith.constant 0 : index
    %c0_220 = arith.constant 0 : index
    %648 = vector.load %arg7[%c0_219, %c0_220] : memref<1x128xf32, #tpu.memory_space<vmem>>, vector<1x128xf32>
    %649 = vector.broadcast %648 : vector<1x128xf32> to vector<8x128xf32>
    %650 = arith.addf %647, %649 : vector<8x128xf32>
    %651 = vector.extract_strided_slice %650 {offsets = [0, 0], sizes = [8, 32], strides = [1, 1]} : vector<8x128xf32> to vector<8x32xf32>
    %652 = arith.negf %651 : vector<8x32xf32>
    %653 = math.exp %652 : vector<8x32xf32>
    %cst_221 = arith.constant 1.000000e+00 : f32
    %654 = vector.broadcast %cst_221 : f32 to vector<8x32xf32>
    %655 = arith.addf %654, %653 : vector<8x32xf32>
    %656 = arith.divf %654, %655 : vector<8x32xf32>
    %657 = vector.extract_strided_slice %650 {offsets = [0, 32], sizes = [8, 32], strides = [1, 1]} : vector<8x128xf32> to vector<8x32xf32>
    %658 = arith.negf %657 : vector<8x32xf32>
    %659 = math.exp %658 : vector<8x32xf32>
    %cst_222 = arith.constant 1.000000e+00 : f32
    %660 = vector.broadcast %cst_222 : f32 to vector<8x32xf32>
    %661 = arith.addf %660, %659 : vector<8x32xf32>
    %662 = arith.divf %660, %661 : vector<8x32xf32>
    %663 = vector.extract_strided_slice %650 {offsets = [0, 64], sizes = [8, 32], strides = [1, 1]} : vector<8x128xf32> to vector<8x32xf32>
    %664 = math.tanh %663 : vector<8x32xf32>
    %665 = vector.extract_strided_slice %650 {offsets = [0, 96], sizes = [8, 32], strides = [1, 1]} : vector<8x128xf32> to vector<8x32xf32>
    %666 = arith.negf %665 : vector<8x32xf32>
    %667 = math.exp %666 : vector<8x32xf32>
    %cst_223 = arith.constant 1.000000e+00 : f32
    %668 = vector.broadcast %cst_223 : f32 to vector<8x32xf32>
    %669 = arith.addf %668, %667 : vector<8x32xf32>
    %670 = arith.divf %668, %669 : vector<8x32xf32>
    %671 = arith.mulf %662, %628 : vector<8x32xf32>
    %672 = arith.mulf %656, %664 : vector<8x32xf32>
    %673 = arith.addf %671, %672 : vector<8x32xf32>
    %674 = math.tanh %673 : vector<8x32xf32>
    %675 = arith.mulf %670, %674 : vector<8x32xf32>
    %c0_224 = arith.constant 0 : index
    %c0_225 = arith.constant 0 : index
    %676 = vector.load %arg1[%c0_224, %c0_225] : memref<8x1xi32, #tpu.memory_space<vmem>>, vector<8x1xi32>
    %677 = vector.broadcast %c3_i32_210 : i32 to vector<8x1xi32>
    %678 = arith.cmpi sgt, %676, %677 : vector<8x1xi32>
    %679 = arith.extui %678 : vector<8x1xi1> to vector<8x1xi32>
    %680 = arith.sitofp %679 : vector<8x1xi32> to vector<8x1xf32>
    %681 = vector.broadcast %680 : vector<8x1xf32> to vector<8x32xf32>
    %682 = arith.mulf %681, %675 : vector<8x32xf32>
    %cst_226 = arith.constant 1.000000e+00 : f32
    %683 = vector.broadcast %cst_226 : f32 to vector<8x1xf32>
    %684 = arith.subf %683, %680 : vector<8x1xf32>
    %685 = vector.broadcast %684 : vector<8x1xf32> to vector<8x32xf32>
    %686 = arith.mulf %685, %621 : vector<8x32xf32>
    %687 = arith.addf %682, %686 : vector<8x32xf32>
    %688 = vector.broadcast %680 : vector<8x1xf32> to vector<8x32xf32>
    %689 = arith.mulf %688, %673 : vector<8x32xf32>
    %cst_227 = arith.constant 1.000000e+00 : f32
    %690 = vector.broadcast %cst_227 : f32 to vector<8x1xf32>
    %691 = arith.subf %690, %680 : vector<8x1xf32>
    %692 = vector.broadcast %691 : vector<8x1xf32> to vector<8x32xf32>
    %693 = arith.mulf %692, %628 : vector<8x32xf32>
    %694 = arith.addf %689, %693 : vector<8x32xf32>
    %c0_228 = arith.constant 0 : index
    %c0_229 = arith.constant 0 : index
    %695 = vector.load %arg8[%c0_228, %c0_229] : memref<32x128xf32, #tpu.memory_space<vmem>>, vector<32x128xf32>
    %cst_230 = arith.constant dense<0.000000e+00> : vector<8x128xf32>
    %696 = tpu.matmul %687, %695, %cst_230 {dimension_numbers = #tpu.dot_dimension_numbers<[1], [0], [0], [1], [0, 0, 1, 1], [], []>} : vector<8x32xf32>, vector<32x128xf32>, vector<8x128xf32> -> vector<8x128xf32>
    %c0_231 = arith.constant 0 : index
    %c0_232 = arith.constant 0 : index
    %697 = vector.load %arg9[%c0_231, %c0_232] : memref<1x128xf32, #tpu.memory_space<vmem>>, vector<1x128xf32>
    %698 = vector.broadcast %697 : vector<1x128xf32> to vector<8x128xf32>
    %699 = arith.addf %696, %698 : vector<8x128xf32>
    %700 = vector.broadcast %680 : vector<8x1xf32> to vector<8x128xf32>
    %701 = arith.mulf %700, %699 : vector<8x128xf32>
    %702 = arith.index_cast %c3_i32_210 : i32 to index
    %c0_233 = arith.constant 0 : index
    %c0_234 = arith.constant 0 : index
    %703 = vector.load %arg10[%702, %c0_233, %c0_234] : memref<7x8x128xf32, #tpu.memory_space<vmem>>, vector<1x8x128xf32>
    %704 = vector.shape_cast %703 : vector<1x8x128xf32> to vector<8x128xf32>
    %705 = vector.shape_cast %701 : vector<8x128xf32> to vector<1x8x128xf32>
    tpu.vector_store %arg10[%702, %c0_233, %c0_234], %705 {strides = array<i32>} : memref<7x8x128xf32, #tpu.memory_space<vmem>>, vector<1x8x128xf32>,
    %c4_i32_235 = arith.constant 4 : i32
    %706 = arith.index_cast %c4_i32_235 : i32 to index
    %c0_236 = arith.constant 0 : index
    %c0_237 = arith.constant 0 : index
    %707 = vector.load %arg3[%706, %c0_236, %c0_237] : memref<7x8x16xf32, #tpu.memory_space<vmem>>, vector<1x8x16xf32>
    %708 = vector.shape_cast %707 : vector<1x8x16xf32> to vector<8x16xf32>
    %c0_238 = arith.constant 0 : index
    %c0_239 = arith.constant 0 : index
    %709 = vector.load %arg6[%c0_238, %c0_239] : memref<48x128xf32, #tpu.memory_space<vmem>>, vector<16x128xf32>
    %cst_240 = arith.constant dense<0.000000e+00> : vector<8x128xf32>
    %710 = tpu.matmul %708, %709, %cst_240 {dimension_numbers = #tpu.dot_dimension_numbers<[1], [0], [0], [1], [0, 0, 1, 1], [], []>} : vector<8x16xf32>, vector<16x128xf32>, vector<8x128xf32> -> vector<8x128xf32>
    %c16_241 = arith.constant 16 : index
    %c0_242 = arith.constant 0 : index
    %711 = vector.load %arg6[%c16_241, %c0_242] : memref<48x128xf32, #tpu.memory_space<vmem>>, vector<32x128xf32>
    %cst_243 = arith.constant dense<0.000000e+00> : vector<8x128xf32>
    %712 = tpu.matmul %687, %711, %cst_243 {dimension_numbers = #tpu.dot_dimension_numbers<[1], [0], [0], [1], [0, 0, 1, 1], [], []>} : vector<8x32xf32>, vector<32x128xf32>, vector<8x128xf32> -> vector<8x128xf32>
    %713 = arith.addf %710, %712 : vector<8x128xf32>
    %c0_244 = arith.constant 0 : index
    %c0_245 = arith.constant 0 : index
    %714 = vector.load %arg7[%c0_244, %c0_245] : memref<1x128xf32, #tpu.memory_space<vmem>>, vector<1x128xf32>
    %715 = vector.broadcast %714 : vector<1x128xf32> to vector<8x128xf32>
    %716 = arith.addf %713, %715 : vector<8x128xf32>
    %717 = vector.extract_strided_slice %716 {offsets = [0, 0], sizes = [8, 32], strides = [1, 1]} : vector<8x128xf32> to vector<8x32xf32>
    %718 = arith.negf %717 : vector<8x32xf32>
    %719 = math.exp %718 : vector<8x32xf32>
    %cst_246 = arith.constant 1.000000e+00 : f32
    %720 = vector.broadcast %cst_246 : f32 to vector<8x32xf32>
    %721 = arith.addf %720, %719 : vector<8x32xf32>
    %722 = arith.divf %720, %721 : vector<8x32xf32>
    %723 = vector.extract_strided_slice %716 {offsets = [0, 32], sizes = [8, 32], strides = [1, 1]} : vector<8x128xf32> to vector<8x32xf32>
    %724 = arith.negf %723 : vector<8x32xf32>
    %725 = math.exp %724 : vector<8x32xf32>
    %cst_247 = arith.constant 1.000000e+00 : f32
    %726 = vector.broadcast %cst_247 : f32 to vector<8x32xf32>
    %727 = arith.addf %726, %725 : vector<8x32xf32>
    %728 = arith.divf %726, %727 : vector<8x32xf32>
    %729 = vector.extract_strided_slice %716 {offsets = [0, 64], sizes = [8, 32], strides = [1, 1]} : vector<8x128xf32> to vector<8x32xf32>
    %730 = math.tanh %729 : vector<8x32xf32>
    %731 = vector.extract_strided_slice %716 {offsets = [0, 96], sizes = [8, 32], strides = [1, 1]} : vector<8x128xf32> to vector<8x32xf32>
    %732 = arith.negf %731 : vector<8x32xf32>
    %733 = math.exp %732 : vector<8x32xf32>
    %cst_248 = arith.constant 1.000000e+00 : f32
    %734 = vector.broadcast %cst_248 : f32 to vector<8x32xf32>
    %735 = arith.addf %734, %733 : vector<8x32xf32>
    %736 = arith.divf %734, %735 : vector<8x32xf32>
    %737 = arith.mulf %728, %694 : vector<8x32xf32>
    %738 = arith.mulf %722, %730 : vector<8x32xf32>
    %739 = arith.addf %737, %738 : vector<8x32xf32>
    %740 = math.tanh %739 : vector<8x32xf32>
    %741 = arith.mulf %736, %740 : vector<8x32xf32>
    %c0_249 = arith.constant 0 : index
    %c0_250 = arith.constant 0 : index
    %742 = vector.load %arg1[%c0_249, %c0_250] : memref<8x1xi32, #tpu.memory_space<vmem>>, vector<8x1xi32>
    %743 = vector.broadcast %c4_i32_235 : i32 to vector<8x1xi32>
    %744 = arith.cmpi sgt, %742, %743 : vector<8x1xi32>
    %745 = arith.extui %744 : vector<8x1xi1> to vector<8x1xi32>
    %746 = arith.sitofp %745 : vector<8x1xi32> to vector<8x1xf32>
    %747 = vector.broadcast %746 : vector<8x1xf32> to vector<8x32xf32>
    %748 = arith.mulf %747, %741 : vector<8x32xf32>
    %cst_251 = arith.constant 1.000000e+00 : f32
    %749 = vector.broadcast %cst_251 : f32 to vector<8x1xf32>
    %750 = arith.subf %749, %746 : vector<8x1xf32>
    %751 = vector.broadcast %750 : vector<8x1xf32> to vector<8x32xf32>
    %752 = arith.mulf %751, %687 : vector<8x32xf32>
    %753 = arith.addf %748, %752 : vector<8x32xf32>
    %754 = vector.broadcast %746 : vector<8x1xf32> to vector<8x32xf32>
    %755 = arith.mulf %754, %739 : vector<8x32xf32>
    %cst_252 = arith.constant 1.000000e+00 : f32
    %756 = vector.broadcast %cst_252 : f32 to vector<8x1xf32>
    %757 = arith.subf %756, %746 : vector<8x1xf32>
    %758 = vector.broadcast %757 : vector<8x1xf32> to vector<8x32xf32>
    %759 = arith.mulf %758, %694 : vector<8x32xf32>
    %760 = arith.addf %755, %759 : vector<8x32xf32>
    %c0_253 = arith.constant 0 : index
    %c0_254 = arith.constant 0 : index
    %761 = vector.load %arg8[%c0_253, %c0_254] : memref<32x128xf32, #tpu.memory_space<vmem>>, vector<32x128xf32>
    %cst_255 = arith.constant dense<0.000000e+00> : vector<8x128xf32>
    %762 = tpu.matmul %753, %761, %cst_255 {dimension_numbers = #tpu.dot_dimension_numbers<[1], [0], [0], [1], [0, 0, 1, 1], [], []>} : vector<8x32xf32>, vector<32x128xf32>, vector<8x128xf32> -> vector<8x128xf32>
    %c0_256 = arith.constant 0 : index
    %c0_257 = arith.constant 0 : index
    %763 = vector.load %arg9[%c0_256, %c0_257] : memref<1x128xf32, #tpu.memory_space<vmem>>, vector<1x128xf32>
    %764 = vector.broadcast %763 : vector<1x128xf32> to vector<8x128xf32>
    %765 = arith.addf %762, %764 : vector<8x128xf32>
    %766 = vector.broadcast %746 : vector<8x1xf32> to vector<8x128xf32>
    %767 = arith.mulf %766, %765 : vector<8x128xf32>
    %768 = arith.index_cast %c4_i32_235 : i32 to index
    %c0_258 = arith.constant 0 : index
    %c0_259 = arith.constant 0 : index
    %769 = vector.load %arg10[%768, %c0_258, %c0_259] : memref<7x8x128xf32, #tpu.memory_space<vmem>>, vector<1x8x128xf32>
    %770 = vector.shape_cast %769 : vector<1x8x128xf32> to vector<8x128xf32>
    %771 = vector.shape_cast %767 : vector<8x128xf32> to vector<1x8x128xf32>
    tpu.vector_store %arg10[%768, %c0_258, %c0_259], %771 {strides = array<i32>} : memref<7x8x128xf32, #tpu.memory_space<vmem>>, vector<1x8x128xf32>,
    %c5_i32_260 = arith.constant 5 : i32
    %772 = arith.index_cast %c5_i32_260 : i32 to index
    %c0_261 = arith.constant 0 : index
    %c0_262 = arith.constant 0 : index
    %773 = vector.load %arg3[%772, %c0_261, %c0_262] : memref<7x8x16xf32, #tpu.memory_space<vmem>>, vector<1x8x16xf32>
    %774 = vector.shape_cast %773 : vector<1x8x16xf32> to vector<8x16xf32>
    %c0_263 = arith.constant 0 : index
    %c0_264 = arith.constant 0 : index
    %775 = vector.load %arg6[%c0_263, %c0_264] : memref<48x128xf32, #tpu.memory_space<vmem>>, vector<16x128xf32>
    %cst_265 = arith.constant dense<0.000000e+00> : vector<8x128xf32>
    %776 = tpu.matmul %774, %775, %cst_265 {dimension_numbers = #tpu.dot_dimension_numbers<[1], [0], [0], [1], [0, 0, 1, 1], [], []>} : vector<8x16xf32>, vector<16x128xf32>, vector<8x128xf32> -> vector<8x128xf32>
    %c16_266 = arith.constant 16 : index
    %c0_267 = arith.constant 0 : index
    %777 = vector.load %arg6[%c16_266, %c0_267] : memref<48x128xf32, #tpu.memory_space<vmem>>, vector<32x128xf32>
    %cst_268 = arith.constant dense<0.000000e+00> : vector<8x128xf32>
    %778 = tpu.matmul %753, %777, %cst_268 {dimension_numbers = #tpu.dot_dimension_numbers<[1], [0], [0], [1], [0, 0, 1, 1], [], []>} : vector<8x32xf32>, vector<32x128xf32>, vector<8x128xf32> -> vector<8x128xf32>
    %779 = arith.addf %776, %778 : vector<8x128xf32>
    %c0_269 = arith.constant 0 : index
    %c0_270 = arith.constant 0 : index
    %780 = vector.load %arg7[%c0_269, %c0_270] : memref<1x128xf32, #tpu.memory_space<vmem>>, vector<1x128xf32>
    %781 = vector.broadcast %780 : vector<1x128xf32> to vector<8x128xf32>
    %782 = arith.addf %779, %781 : vector<8x128xf32>
    %783 = vector.extract_strided_slice %782 {offsets = [0, 0], sizes = [8, 32], strides = [1, 1]} : vector<8x128xf32> to vector<8x32xf32>
    %784 = arith.negf %783 : vector<8x32xf32>
    %785 = math.exp %784 : vector<8x32xf32>
    %cst_271 = arith.constant 1.000000e+00 : f32
    %786 = vector.broadcast %cst_271 : f32 to vector<8x32xf32>
    %787 = arith.addf %786, %785 : vector<8x32xf32>
    %788 = arith.divf %786, %787 : vector<8x32xf32>
    %789 = vector.extract_strided_slice %782 {offsets = [0, 32], sizes = [8, 32], strides = [1, 1]} : vector<8x128xf32> to vector<8x32xf32>
    %790 = arith.negf %789 : vector<8x32xf32>
    %791 = math.exp %790 : vector<8x32xf32>
    %cst_272 = arith.constant 1.000000e+00 : f32
    %792 = vector.broadcast %cst_272 : f32 to vector<8x32xf32>
    %793 = arith.addf %792, %791 : vector<8x32xf32>
    %794 = arith.divf %792, %793 : vector<8x32xf32>
    %795 = vector.extract_strided_slice %782 {offsets = [0, 64], sizes = [8, 32], strides = [1, 1]} : vector<8x128xf32> to vector<8x32xf32>
    %796 = math.tanh %795 : vector<8x32xf32>
    %797 = vector.extract_strided_slice %782 {offsets = [0, 96], sizes = [8, 32], strides = [1, 1]} : vector<8x128xf32> to vector<8x32xf32>
    %798 = arith.negf %797 : vector<8x32xf32>
    %799 = math.exp %798 : vector<8x32xf32>
    %cst_273 = arith.constant 1.000000e+00 : f32
    %800 = vector.broadcast %cst_273 : f32 to vector<8x32xf32>
    %801 = arith.addf %800, %799 : vector<8x32xf32>
    %802 = arith.divf %800, %801 : vector<8x32xf32>
    %803 = arith.mulf %794, %760 : vector<8x32xf32>
    %804 = arith.mulf %788, %796 : vector<8x32xf32>
    %805 = arith.addf %803, %804 : vector<8x32xf32>
    %806 = math.tanh %805 : vector<8x32xf32>
    %807 = arith.mulf %802, %806 : vector<8x32xf32>
    %c0_274 = arith.constant 0 : index
    %c0_275 = arith.constant 0 : index
    %808 = vector.load %arg1[%c0_274, %c0_275] : memref<8x1xi32, #tpu.memory_space<vmem>>, vector<8x1xi32>
    %809 = vector.broadcast %c5_i32_260 : i32 to vector<8x1xi32>
    %810 = arith.cmpi sgt, %808, %809 : vector<8x1xi32>
    %811 = arith.extui %810 : vector<8x1xi1> to vector<8x1xi32>
    %812 = arith.sitofp %811 : vector<8x1xi32> to vector<8x1xf32>
    %813 = vector.broadcast %812 : vector<8x1xf32> to vector<8x32xf32>
    %814 = arith.mulf %813, %807 : vector<8x32xf32>
    %cst_276 = arith.constant 1.000000e+00 : f32
    %815 = vector.broadcast %cst_276 : f32 to vector<8x1xf32>
    %816 = arith.subf %815, %812 : vector<8x1xf32>
    %817 = vector.broadcast %816 : vector<8x1xf32> to vector<8x32xf32>
    %818 = arith.mulf %817, %753 : vector<8x32xf32>
    %819 = arith.addf %814, %818 : vector<8x32xf32>
    %820 = vector.broadcast %812 : vector<8x1xf32> to vector<8x32xf32>
    %821 = arith.mulf %820, %805 : vector<8x32xf32>
    %cst_277 = arith.constant 1.000000e+00 : f32
    %822 = vector.broadcast %cst_277 : f32 to vector<8x1xf32>
    %823 = arith.subf %822, %812 : vector<8x1xf32>
    %824 = vector.broadcast %823 : vector<8x1xf32> to vector<8x32xf32>
    %825 = arith.mulf %824, %760 : vector<8x32xf32>
    %826 = arith.addf %821, %825 : vector<8x32xf32>
    %c0_278 = arith.constant 0 : index
    %c0_279 = arith.constant 0 : index
    %827 = vector.load %arg8[%c0_278, %c0_279] : memref<32x128xf32, #tpu.memory_space<vmem>>, vector<32x128xf32>
    %cst_280 = arith.constant dense<0.000000e+00> : vector<8x128xf32>
    %828 = tpu.matmul %819, %827, %cst_280 {dimension_numbers = #tpu.dot_dimension_numbers<[1], [0], [0], [1], [0, 0, 1, 1], [], []>} : vector<8x32xf32>, vector<32x128xf32>, vector<8x128xf32> -> vector<8x128xf32>
    %c0_281 = arith.constant 0 : index
    %c0_282 = arith.constant 0 : index
    %829 = vector.load %arg9[%c0_281, %c0_282] : memref<1x128xf32, #tpu.memory_space<vmem>>, vector<1x128xf32>
    %830 = vector.broadcast %829 : vector<1x128xf32> to vector<8x128xf32>
    %831 = arith.addf %828, %830 : vector<8x128xf32>
    %832 = vector.broadcast %812 : vector<8x1xf32> to vector<8x128xf32>
    %833 = arith.mulf %832, %831 : vector<8x128xf32>
    %834 = arith.index_cast %c5_i32_260 : i32 to index
    %c0_283 = arith.constant 0 : index
    %c0_284 = arith.constant 0 : index
    %835 = vector.load %arg10[%834, %c0_283, %c0_284] : memref<7x8x128xf32, #tpu.memory_space<vmem>>, vector<1x8x128xf32>
    %836 = vector.shape_cast %835 : vector<1x8x128xf32> to vector<8x128xf32>
    %837 = vector.shape_cast %833 : vector<8x128xf32> to vector<1x8x128xf32>
    tpu.vector_store %arg10[%834, %c0_283, %c0_284], %837 {strides = array<i32>} : memref<7x8x128xf32, #tpu.memory_space<vmem>>, vector<1x8x128xf32>,
    %c6_i32_285 = arith.constant 6 : i32
    %838 = arith.index_cast %c6_i32_285 : i32 to index
    %c0_286 = arith.constant 0 : index
    %c0_287 = arith.constant 0 : index
    %839 = vector.load %arg3[%838, %c0_286, %c0_287] : memref<7x8x16xf32, #tpu.memory_space<vmem>>, vector<1x8x16xf32>
    %840 = vector.shape_cast %839 : vector<1x8x16xf32> to vector<8x16xf32>
    %c0_288 = arith.constant 0 : index
    %c0_289 = arith.constant 0 : index
    %841 = vector.load %arg6[%c0_288, %c0_289] : memref<48x128xf32, #tpu.memory_space<vmem>>, vector<16x128xf32>
    %cst_290 = arith.constant dense<0.000000e+00> : vector<8x128xf32>
    %842 = tpu.matmul %840, %841, %cst_290 {dimension_numbers = #tpu.dot_dimension_numbers<[1], [0], [0], [1], [0, 0, 1, 1], [], []>} : vector<8x16xf32>, vector<16x128xf32>, vector<8x128xf32> -> vector<8x128xf32>
    %c16_291 = arith.constant 16 : index
    %c0_292 = arith.constant 0 : index
    %843 = vector.load %arg6[%c16_291, %c0_292] : memref<48x128xf32, #tpu.memory_space<vmem>>, vector<32x128xf32>
    %cst_293 = arith.constant dense<0.000000e+00> : vector<8x128xf32>
    %844 = tpu.matmul %819, %843, %cst_293 {dimension_numbers = #tpu.dot_dimension_numbers<[1], [0], [0], [1], [0, 0, 1, 1], [], []>} : vector<8x32xf32>, vector<32x128xf32>, vector<8x128xf32> -> vector<8x128xf32>
    %845 = arith.addf %842, %844 : vector<8x128xf32>
    %c0_294 = arith.constant 0 : index
    %c0_295 = arith.constant 0 : index
    %846 = vector.load %arg7[%c0_294, %c0_295] : memref<1x128xf32, #tpu.memory_space<vmem>>, vector<1x128xf32>
    %847 = vector.broadcast %846 : vector<1x128xf32> to vector<8x128xf32>
    %848 = arith.addf %845, %847 : vector<8x128xf32>
    %849 = vector.extract_strided_slice %848 {offsets = [0, 0], sizes = [8, 32], strides = [1, 1]} : vector<8x128xf32> to vector<8x32xf32>
    %850 = arith.negf %849 : vector<8x32xf32>
    %851 = math.exp %850 : vector<8x32xf32>
    %cst_296 = arith.constant 1.000000e+00 : f32
    %852 = vector.broadcast %cst_296 : f32 to vector<8x32xf32>
    %853 = arith.addf %852, %851 : vector<8x32xf32>
    %854 = arith.divf %852, %853 : vector<8x32xf32>
    %855 = vector.extract_strided_slice %848 {offsets = [0, 32], sizes = [8, 32], strides = [1, 1]} : vector<8x128xf32> to vector<8x32xf32>
    %856 = arith.negf %855 : vector<8x32xf32>
    %857 = math.exp %856 : vector<8x32xf32>
    %cst_297 = arith.constant 1.000000e+00 : f32
    %858 = vector.broadcast %cst_297 : f32 to vector<8x32xf32>
    %859 = arith.addf %858, %857 : vector<8x32xf32>
    %860 = arith.divf %858, %859 : vector<8x32xf32>
    %861 = vector.extract_strided_slice %848 {offsets = [0, 64], sizes = [8, 32], strides = [1, 1]} : vector<8x128xf32> to vector<8x32xf32>
    %862 = math.tanh %861 : vector<8x32xf32>
    %863 = vector.extract_strided_slice %848 {offsets = [0, 96], sizes = [8, 32], strides = [1, 1]} : vector<8x128xf32> to vector<8x32xf32>
    %864 = arith.negf %863 : vector<8x32xf32>
    %865 = math.exp %864 : vector<8x32xf32>
    %cst_298 = arith.constant 1.000000e+00 : f32
    %866 = vector.broadcast %cst_298 : f32 to vector<8x32xf32>
    %867 = arith.addf %866, %865 : vector<8x32xf32>
    %868 = arith.divf %866, %867 : vector<8x32xf32>
    %869 = arith.mulf %860, %826 : vector<8x32xf32>
    %870 = arith.mulf %854, %862 : vector<8x32xf32>
    %871 = arith.addf %869, %870 : vector<8x32xf32>
    %872 = math.tanh %871 : vector<8x32xf32>
    %873 = arith.mulf %868, %872 : vector<8x32xf32>
    %c0_299 = arith.constant 0 : index
    %c0_300 = arith.constant 0 : index
    %874 = vector.load %arg1[%c0_299, %c0_300] : memref<8x1xi32, #tpu.memory_space<vmem>>, vector<8x1xi32>
    %875 = vector.broadcast %c6_i32_285 : i32 to vector<8x1xi32>
    %876 = arith.cmpi sgt, %874, %875 : vector<8x1xi32>
    %877 = arith.extui %876 : vector<8x1xi1> to vector<8x1xi32>
    %878 = arith.sitofp %877 : vector<8x1xi32> to vector<8x1xf32>
    %879 = vector.broadcast %878 : vector<8x1xf32> to vector<8x32xf32>
    %880 = arith.mulf %879, %873 : vector<8x32xf32>
    %cst_301 = arith.constant 1.000000e+00 : f32
    %881 = vector.broadcast %cst_301 : f32 to vector<8x1xf32>
    %882 = arith.subf %881, %878 : vector<8x1xf32>
    %883 = vector.broadcast %882 : vector<8x1xf32> to vector<8x32xf32>
    %884 = arith.mulf %883, %819 : vector<8x32xf32>
    %885 = arith.addf %880, %884 : vector<8x32xf32>
    %886 = vector.broadcast %878 : vector<8x1xf32> to vector<8x32xf32>
    %887 = arith.mulf %886, %871 : vector<8x32xf32>
    %cst_302 = arith.constant 1.000000e+00 : f32
    %888 = vector.broadcast %cst_302 : f32 to vector<8x1xf32>
    %889 = arith.subf %888, %878 : vector<8x1xf32>
    %890 = vector.broadcast %889 : vector<8x1xf32> to vector<8x32xf32>
    %891 = arith.mulf %890, %826 : vector<8x32xf32>
    %892 = arith.addf %887, %891 : vector<8x32xf32>
    %c0_303 = arith.constant 0 : index
    %c0_304 = arith.constant 0 : index
    %893 = vector.load %arg8[%c0_303, %c0_304] : memref<32x128xf32, #tpu.memory_space<vmem>>, vector<32x128xf32>
    %cst_305 = arith.constant dense<0.000000e+00> : vector<8x128xf32>
    %894 = tpu.matmul %885, %893, %cst_305 {dimension_numbers = #tpu.dot_dimension_numbers<[1], [0], [0], [1], [0, 0, 1, 1], [], []>} : vector<8x32xf32>, vector<32x128xf32>, vector<8x128xf32> -> vector<8x128xf32>
    %c0_306 = arith.constant 0 : index
    %c0_307 = arith.constant 0 : index
    %895 = vector.load %arg9[%c0_306, %c0_307] : memref<1x128xf32, #tpu.memory_space<vmem>>, vector<1x128xf32>
    %896 = vector.broadcast %895 : vector<1x128xf32> to vector<8x128xf32>
    %897 = arith.addf %894, %896 : vector<8x128xf32>
    %898 = vector.broadcast %878 : vector<8x1xf32> to vector<8x128xf32>
    %899 = arith.mulf %898, %897 : vector<8x128xf32>
    %900 = arith.index_cast %c6_i32_285 : i32 to index
    %c0_308 = arith.constant 0 : index
    %c0_309 = arith.constant 0 : index
    %901 = vector.load %arg10[%900, %c0_308, %c0_309] : memref<7x8x128xf32, #tpu.memory_space<vmem>>, vector<1x8x128xf32>
    %902 = vector.shape_cast %901 : vector<1x8x128xf32> to vector<8x128xf32>
    %903 = vector.shape_cast %899 : vector<8x128xf32> to vector<1x8x128xf32>
    tpu.vector_store %arg10[%900, %c0_308, %c0_309], %903 {strides = array<i32>} : memref<7x8x128xf32, #tpu.memory_space<vmem>>, vector<1x8x128xf32>,
    %c7_i32_310 = arith.constant 7 : i32
    return
  }
}

</mosaic_0001>

<bundles_post_ra>
// kernel: _seq2seq_core.1
= control target key start
LH: loop header
LB: loop body
LE: loop exit
PB: predicated region body
PF: predicated region fallthrough
CT: control target
= control target key end

     0   :  { %v4569_v0 = vmov 0.0|0.0   ;;  %vm4570_vm0 = vmmov 0   ;;  %v4571_v8 = vmov 0.0   ;;  %vm116_vm1 = vcmask 130048   ;;  %s4574_s30 = smov 32   ;;  %s5146_s4 = inlined_call_operand.vmem [shape: f32[48,128], index: 4, kind: input, shape index: {}]   ;;  %s5147_s2 = inlined_call_operand.vmem [shape: f32[8,8,16], index: 2, kind: input, shape index: {}]   ;;  %s5148_s0 = inlined_call_operand.vmem [shape: s32[8,1], index: 0, kind: input, shape index: {}]   ;;  %s5149_s5 = inlined_call_operand.vmem [shape: f32[1,128], index: 5, kind: input, shape index: {}]   ;;  %s5150_s6 = inlined_call_operand.vmem [shape: f32[48,128], index: 6, kind: input, shape index: {}]   ;;  %s5151_s3 = inlined_call_operand.vmem [shape: f32[7,8,16], index: 3, kind: input, shape index: {}]   ;;  %s5152_s7 = inlined_call_operand.vmem [shape: f32[1,128], index: 7, kind: input, shape index: {}]   ;;  %s5153_s1 = inlined_call_operand.vmem [shape: s32[8,1], index: 1, kind: input, shape index: {}]   ;;  %s5154_s8 = inlined_call_operand.vmem [shape: f32[32,128], index: 8, kind: input, shape index: {}]   ;;  %s5155_s9 = inlined_call_operand.vmem [shape: f32[1,128], index: 9, kind: input, shape index: {}]   ;;  %s5156_s10 = inlined_call_operand.vmem [shape: f32[7,8,128], index: 10, kind: output, shape index: {}]  }
   0x1   :  { %4264 = vmatprep.subr.bf16.mxu0 %v4569_v0  ;;  %v38_v1 = vld [vmem:[%s5146_s4 + $0x10] sm:$0xff]  ;;  %v39_v2 = vld [vmem:[%s5146_s4 + $0x18] sm:$0xff]  ;;  %4270 = vmatprep.subr.bf16.mxu1 %v4569_v0  ;;  %v36_v3 = vld [vmem:[%s5146_s4] sm:$0xff]  ;;  %v4572_v12 = vmov 0   ;;  %vm42_vm3 = vcmask 261120  }
   0x2   :  { %v4641_v4 = vpack.c.bf16 %v39_v2, %v38_v1  ;;  %v37_v5 = vld [vmem:[%s5146_s4 + $0x8] sm:$0xff]  ;;  %v40_v6 = vld [vmem:[%s5146_s4 + $0x20] sm:$0xff]  ;;  %3932 = vmatprep.mubr.msk.f32.mxu1 %vm4570_vm0, %v4571_v8  ;;  %3925 = vmatprep.mubr.msk.f32.mxu0 %vm4570_vm0, %v4571_v8  ;;  %v3671_v63 = vld [vmem:[%s5147_s2 + $0x10] sm:$0xff] }
   0x3   :  { %v41_v7 = vld [vmem:[%s5146_s4 + $0x28] sm:$0xff]  ;;  %v4656_v9 = vpack.c.bf16 %v37_v5, %v36_v3  ;;  %v35_v11 = vld [vmem:[%s5147_s2] sm:$0xff]  ;;  %4447 = vset.pattern.permute.xlu1 %v4572_v12  ;;  %4448 = vset.pattern.permute.xlu0 %v4572_v12 }
   0x4   :  { %4266 = vmatpush3.bf16.msra.mxu0 %v4641_v4  ;;  %v4659_v10 = vpack.c.bf16 %v41_v7, %v40_v6  ;;  %v4684_v13 = vld [vmem:[%s5148_s0] sm:$0xff]  ;;  %s4573_s0 = smov 64   ;;  %v3666_v33 = vld [vmem:[%s5147_s2 + $0x8] sm:$0xff] }
   0x5   :  { %4267 = vmatprep.subr.bf16.mxu0 %v4569_v0  ;;  %4272 = vmatpush3.bf16.msra.mxu1 %v4656_v9  ;;  %vm223_vm2 = vcmp.gt.s32.totalorder %v4684_v13, 0  ;;  %v4691_v19 = vld [vmem:[%s5149_s5] ss:$0 sm:$0xff]  ;;  %vm417_vm4 = vcmp.gt.s32.totalorder %v4684_v13, 1  ;;  %vm612_vm5 = vcmp.gt.s32.totalorder %v4684_v13, 2  ;;  %vm807_vm6 = vcmp.gt.s32.totalorder %v4684_v13, 3 }
   0x6   :  { %4273 = vmatprep.subr.bf16.mxu1 %v4569_v0  ;;  %v3665_v14 = vsel %vm223_vm2, 1.0, %v4571_v8  ;;  %v3670_v50 = vsel %vm417_vm4, 1.0, %v4571_v8  ;;  %vm1002_vm7 = vcmp.gt.s32.totalorder %v4684_v13, 4  ;;  %vm1197_vm8 = vcmp.gt.s32.totalorder %v4684_v13, 5 }
   0x7   :  { %228 = vperm.xlu1 %4447, %v3665_v14   ;;  %v232_v15 = vsub.f32 1.0, %v3665_v14  ;;  %v426_v57 = vsub.f32 1.0, %v3670_v50  ;;  %vm1392_vm9 = vcmp.gt.s32.totalorder %v4684_v13, 6  ;;  %vm1587_vm10 = vcmp.gt.s32.totalorder %v4684_v13, 7 }
   0x8   :  { %4269 = vmatpush3.bf16.msra.mxu0 %v4659_v10  ;;  %3933 = vmatmul.mubr.msk.f32.vlgmr.msra.gmra.mrb[0].mxu1 %vm116_vm1, %v35_v11 }
   0x9   :  { %4275 = vmatpush3.bf16.msra.mxu1 %v4641_v4  ;;  %4279 = vmatprep.subr.bf16.mxu0 %v4569_v0 }
   0xa   :  { %4276 = vmatprep.subr.bf16.mxu1 %v4569_v0  ;;  %3943 = vmatprep.mubr.msk.f32.mxu1 %vm4570_vm0, %v4571_v8 }
   0xb   :  { %3926 = vmatmul.mubr.f32.vlgmr.msra.gmra.mrb[0].mxu0 %v4571_v8  ;;  %235 = vperm.xlu1 %4447, %v232_v15  }
   0xc   :  { %4281 = vmatpush3.bf16.msra.mxu0 %v4656_v9  ;;  %3950 = vmatprep.mubr.msk.f32.mxu0 %vm4570_vm0, %v4571_v8 }
   0xd   :  { %4278 = vmatpush3.bf16.msra.mxu1 %v4659_v10  ;;  %4282 = vmatprep.subr.bf16.mxu0 %v4569_v0 }
   0xe   :  { %4288 = vmatprep.subr.bf16.mxu1 %v4569_v0 }
   0xf   :  { %3951 = vmatmul.mubr.msk.f32.vlgmr.msra.gmra.mrb[2].mxu0 %vm116_vm1, %v3666_v33 }
  0x10   :  { %4284 = vmatpush3.bf16.msra.mxu0 %v4641_v4  ;;  %3961 = vmatprep.mubr.msk.f32.mxu0 %vm4570_vm0, %v4571_v8 }
  0x11   :  { %4285 = vmatprep.subr.bf16.mxu0 %v4569_v0 }
  0x14   :  { %4287 = vmatpush3.bf16.msra.mxu0 %v4659_v10 }
  0x15   :  { %4297 = vmatprep.subr.bf16.mxu0 %v4569_v0 }
  0x86   :  { %v229_v35 = vpop.permute.xlu1 %228 }
  0x8a   :  { %v236_v36 = vpop.permute.xlu1 %235 }
  0x8b   :  { %v238_v39 = vmul.f32 0.0, %v236_v36 }
  0xdb   :  { %v186_v16 = vpop.f32.mrb[0].mxu1 }
  0xdc   :  { %v3934_v17 = vpop.f32.mrb[1].mxu1 }
  0xde   :  { %v112_v18 = vpop.f32.mrb[0].mxu0 }
  0xdf   :  { %v187_v20 = vadd.f32 %v186_v16, %v112_v18  ;;  %v3927_v21 = vpop.f32.mrb[1].mxu0 }
  0xe1   :  { %v197_v22 = vadd.f32 %v4691_v19, %v187_v20 }
  0xe2   :  { %v388_v42 = vpop.f32.mrb[2].mxu0 }
  0xe3   :  { %4449 = vtanh.f32 %v197_v22  ;;  %v3664_v24 = vmul.f32 -1.442695, %v197_v22  ;;  %v3952_v43 = vpop.f32.mrb[3].mxu0 }
  0xe5   :  { %4451 = vpow2.f32 %v3664_v24 }
  0xed   :  { %v4450_v23 = vpop.eup %4449 }
  0xee   :  { %207 = vrot.lane.b32.xlu0 %v4450_v23, %s4573_s0  ;;  %v3675_v23 = vsel %vm612_vm5, 1.0, %v4571_v8 }
  0xef   :  { %v4452_v25 = vpop.eup %4451 }
  0xf0   :  { %v201_v26 = vadd.f32 1.0, %v4452_v25 }
  0xf2   :  { %4453 = vrcp.f32 %v201_v26 }
  0xfc   :  { %v4454_v27 = vpop.eup %4453 }
  0xfd   :  { %v205_v30 = vmul.f32 0.0, %v4454_v27 }
 0x160   :  { %v208_v28 = vpop.permute.xlu0 %207 }
 0x161   :  { %v210_v29 = vmul.f32 %v4454_v27, %v208_v28 }
 0x163   :  { %212 = vrot.lane.b32.xlu0 %v210_v29, %s4574_s30 }
 0x1d5   :  { %v213_v31 = vpop.permute.xlu0 %212 }
 0x1d6   :  { %v215_v32 = vadd.f32 %v213_v31, %v205_v30  ;;  %v621_v30 = vsub.f32 1.0, %v3675_v23 }
 0x1d8   :  { %4455 = vtanh.f32 %v215_v32  ;;  %v240_v58 = vmul.f32 %v229_v35, %v215_v32 }
 0x1da   :  { %v241_v59 = vadd.f32 %v240_v58, %v238_v39 }
 0x1e2   :  { %v4456_v34 = vpop.eup %4455 }
 0x1e3   :  { %218 = vrot.lane.b32.xlu0 %v4456_v34, %s4573_s0 }
 0x255   :  { %v219_v37 = vpop.permute.xlu0 %218 }
 0x256   :  { %v221_v38 = vmul.f32 %v4454_v27, %v219_v37  ;;  %v3676_v37 = vld [vmem:[%s5147_s2 + $0x18] sm:$0xff] }
 0x258   :  { %v231_v40 = vmul.f32 %v229_v35, %v221_v38 }
 0x25a   :  { %v239_v41 = vadd.f32 %v238_v39, %v231_v40 }
 0x25c   :  { %245 = vrot.lane.b32.xlu1 %v239_v41, %s4574_s30 }
 0x2ce   :  { %v246_v44 = vpop.permute.xlu1 %245 }
 0x2cf   :  { %3944 = vmatmul.mubr.msk.f32.vlgmr.msra.gmra.mrb[2].mxu1 %vm42_vm3, %v246_v44 }
 0x2d0   :  { %4290 = vmatpush3.bf16.msra.mxu1 %v4656_v9  ;;  %3968 = vmatprep.mubr.msk.f32.mxu1 %vm4570_vm0, %v4571_v8 }
 0x2d1   :  { %4291 = vmatprep.subr.bf16.mxu1 %v4569_v0 }
 0x2d3   :  { %3969 = vmatmul.mubr.msk.f32.vlgmr.msra.gmra.mrb[4].mxu1 %vm116_vm1, %v3671_v63 }
 0x2d4   :  { %4293 = vmatpush3.bf16.msra.mxu1 %v4641_v4  ;;  %3979 = vmatprep.mubr.msk.f32.mxu1 %vm4570_vm0, %v4571_v8 }
 0x2d5   :  { %4294 = vmatprep.subr.bf16.mxu1 %v4569_v0 }
 0x2d8   :  { %4296 = vmatpush3.bf16.msra.mxu1 %v4659_v10 }
 0x2d9   :  { %4306 = vmatprep.subr.bf16.mxu1 %v4569_v0 }
 0x3a2   :  { %v315_v45 = vpop.f32.mrb[2].mxu1 }
 0x3a3   :  { %v389_v46 = vadd.f32 %v388_v42, %v315_v45  ;;  %v3945_v47 = vpop.f32.mrb[3].mxu1 }
 0x3a5   :  { %v392_v48 = vadd.f32 %v4691_v19, %v389_v46 }
 0x3a6   :  { %v583_v14 = vpop.f32.mrb[4].mxu1 }
 0x3a7   :  { %4457 = vtanh.f32 %v392_v48  ;;  %v3669_v51 = vmul.f32 -1.442695, %v392_v48  ;;  %v3970_v15 = vpop.f32.mrb[5].mxu1 }
 0x3a9   :  { %4459 = vpow2.f32 %v3669_v51 }
 0x3b1   :  { %v4458_v49 = vpop.eup %4457 }
 0x3b2   :  { %402 = vrot.lane.b32.xlu0 %v4458_v49, %s4573_s0 }
 0x3b3   :  { %v4460_v52 = vpop.eup %4459 }
 0x3b4   :  { %v396_v53 = vadd.f32 1.0, %v4460_v52 }
 0x3b6   :  { %422 = vperm.xlu0 %4448, %v3670_v50   ;;  %4461 = vrcp.f32 %v396_v53 }
 0x3c0   :  { %v4462_v54 = vpop.eup %4461 }
 0x3c1   :  { %v400_v60 = vmul.f32 %v4462_v54, %v241_v59 }
 0x424   :  { %v403_v55 = vpop.permute.xlu0 %402 }
 0x425   :  { %v405_v56 = vmul.f32 %v4462_v54, %v403_v55 }
 0x427   :  { %407 = vrot.lane.b32.xlu1 %v405_v56, %s4574_s30 }
 0x42b   :  { %429 = vperm.xlu1 %4447, %v426_v57  }
 0x435   :  { %v423_v6 = vpop.permute.xlu0 %422 }
 0x499   :  { %v408_v61 = vpop.permute.xlu1 %407 }
 0x49a   :  { %v410_v62 = vadd.f32 %v408_v61, %v400_v60 }
 0x49c   :  { %4463 = vtanh.f32 %v410_v62  ;;  %v434_v32 = vmul.f32 %v423_v6, %v410_v62 }
 0x4a6   :  { %v4464_v1 = vpop.eup %4463 }
 0x4a7   :  { %413 = vrot.lane.b32.xlu1 %v4464_v1, %s4573_s0 }
 0x4aa   :  { %v430_v2 = vpop.permute.xlu1 %429 }
 0x4ab   :  { %v432_v7 = vmul.f32 %v430_v2, %v239_v41  ;;  %v435_v31 = vmul.f32 %v430_v2, %v241_v59 }
 0x4ad   :  { %v436_v33 = vadd.f32 %v435_v31, %v434_v32 }
 0x519   :  { %v414_v3 = vpop.permute.xlu1 %413 }
 0x51a   :  { %v416_v5 = vmul.f32 %v4462_v54, %v414_v3  ;;  %v3680_v54 = vsel %vm807_vm6, 1.0, %v4571_v8 }
 0x51b   :  { %v816_v61 = vsub.f32 1.0, %v3680_v54 }
 0x51c   :  { %v425_v11 = vmul.f32 %v423_v6, %v416_v5  ;;  %v3681_v6 = vld [vmem:[%s5147_s2 + $0x20] sm:$0xff] }
 0x51e   :  { %v433_v12 = vadd.f32 %v432_v7, %v425_v11 }
 0x520   :  { %440 = vrot.lane.b32.xlu0 %v433_v12, %s4574_s30 }
 0x592   :  { %v441_v16 = vpop.permute.xlu0 %440 }
 0x593   :  { %3962 = vmatmul.mubr.msk.f32.vlgmr.msra.gmra.mrb[4].mxu0 %vm42_vm3, %v441_v16 }
 0x594   :  { %4299 = vmatpush3.bf16.msra.mxu0 %v4656_v9  ;;  %3986 = vmatprep.mubr.msk.f32.mxu0 %vm4570_vm0, %v4571_v8 }
 0x595   :  { %4300 = vmatprep.subr.bf16.mxu0 %v4569_v0 }
 0x597   :  { %3987 = vmatmul.mubr.msk.f32.vlgmr.msra.gmra.mrb[6].mxu0 %vm116_vm1, %v3676_v37 }
 0x598   :  { %4302 = vmatpush3.bf16.msra.mxu0 %v4641_v4  ;;  %3997 = vmatprep.mubr.msk.f32.mxu0 %vm4570_vm0, %v4571_v8 }
 0x599   :  { %4303 = vmatprep.subr.bf16.mxu0 %v4569_v0 }
 0x59c   :  { %4305 = vmatpush3.bf16.msra.mxu0 %v4659_v10 }
 0x59d   :  { %4315 = vmatprep.subr.bf16.mxu0 %v4569_v0 }
 0x666   :  { %v510_v17 = vpop.f32.mrb[4].mxu0 }
 0x667   :  { %v584_v18 = vadd.f32 %v583_v14, %v510_v17  ;;  %v3963_v20 = vpop.f32.mrb[5].mxu0 }
 0x669   :  { %v587_v21 = vadd.f32 %v4691_v19, %v584_v18 }
 0x66a   :  { %v778_v46 = vpop.f32.mrb[6].mxu0 }
 0x66b   :  { %4465 = vtanh.f32 %v587_v21  ;;  %v3674_v24 = vmul.f32 -1.442695, %v587_v21  ;;  %v3988_v47 = vpop.f32.mrb[7].mxu0 }
 0x66d   :  { %4467 = vpow2.f32 %v3674_v24 }
 0x675   :  { %v4466_v22 = vpop.eup %4465 }
 0x676   :  { %597 = vrot.lane.b32.xlu1 %v4466_v22, %s4573_s0 }
 0x677   :  { %v4468_v25 = vpop.eup %4467 }
 0x678   :  { %v591_v26 = vadd.f32 1.0, %v4468_v25 }
 0x67a   :  { %617 = vperm.xlu1 %4447, %v3675_v23   ;;  %4469 = vrcp.f32 %v591_v26 }
 0x684   :  { %v4470_v27 = vpop.eup %4469 }
 0x685   :  { %v595_v34 = vmul.f32 %v4470_v27, %v436_v33 }
 0x6e8   :  { %v598_v28 = vpop.permute.xlu1 %597 }
 0x6e9   :  { %v600_v29 = vmul.f32 %v4470_v27, %v598_v28  ;;  %v3685_v28 = vsel %vm1002_vm7, 1.0, %v4571_v8 }
 0x6eb   :  { %602 = vrot.lane.b32.xlu0 %v600_v29, %s4574_s30 }
 0x6ef   :  { %624 = vperm.xlu0 %4448, %v621_v30  }
 0x6f9   :  { %v618_v39 = vpop.permute.xlu1 %617 }
 0x75d   :  { %v603_v35 = vpop.permute.xlu0 %602 }
 0x75e   :  { %v605_v36 = vadd.f32 %v603_v35, %v595_v34  ;;  %v1011_v35 = vsub.f32 1.0, %v3685_v28 }
 0x760   :  { %4471 = vtanh.f32 %v605_v36  ;;  %v629_v63 = vmul.f32 %v618_v39, %v605_v36 }
 0x76a   :  { %v4472_v38 = vpop.eup %4471 }
 0x76b   :  { %608 = vrot.lane.b32.xlu1 %v4472_v38, %s4573_s0 }
 0x76e   :  { %v625_v40 = vpop.permute.xlu0 %624 }
 0x76f   :  { %v627_v43 = vmul.f32 %v625_v40, %v433_v12  ;;  %v630_v62 = vmul.f32 %v625_v40, %v436_v33 }
 0x771   :  { %v631_v1 = vadd.f32 %v630_v62, %v629_v63 }
 0x7dd   :  { %v609_v41 = vpop.permute.xlu1 %608 }
 0x7de   :  { %v611_v42 = vmul.f32 %v4470_v27, %v609_v41 }
 0x7e0   :  { %v620_v44 = vmul.f32 %v618_v39, %v611_v42  ;;  %v3686_v42 = vld [vmem:[%s5147_s2 + $0x28] sm:$0xff] }
 0x7e2   :  { %v628_v45 = vadd.f32 %v627_v43, %v620_v44 }
 0x7e4   :  { %635 = vrot.lane.b32.xlu0 %v628_v45, %s4574_s30 }
 0x856   :  { %v636_v48 = vpop.permute.xlu0 %635 }
 0x857   :  { %3980 = vmatmul.mubr.msk.f32.vlgmr.msra.gmra.mrb[6].mxu1 %vm42_vm3, %v636_v48 }
 0x858   :  { %4308 = vmatpush3.bf16.msra.mxu1 %v4656_v9  ;;  %4004 = vmatprep.mubr.msk.f32.mxu1 %vm4570_vm0, %v4571_v8 }
 0x859   :  { %4309 = vmatprep.subr.bf16.mxu1 %v4569_v0 }
 0x85b   :  { %4005 = vmatmul.mubr.msk.f32.vlgmr.msra.gmra.mrb[8].mxu1 %vm116_vm1, %v3681_v6 }
 0x85c   :  { %4311 = vmatpush3.bf16.msra.mxu1 %v4641_v4  ;;  %4015 = vmatprep.mubr.msk.f32.mxu1 %vm4570_vm0, %v4571_v8 }
 0x85d   :  { %4312 = vmatprep.subr.bf16.mxu1 %v4569_v0 }
 0x860   :  { %4314 = vmatpush3.bf16.msra.mxu1 %v4659_v10 }
 0x861   :  { %4324 = vmatprep.subr.bf16.mxu1 %v4569_v0 }
 0x92a   :  { %v705_v49 = vpop.f32.mrb[6].mxu1 }
 0x92b   :  { %v779_v50 = vadd.f32 %v778_v46, %v705_v49  ;;  %v3981_v51 = vpop.f32.mrb[7].mxu1 }
 0x92d   :  { %v782_v52 = vadd.f32 %v4691_v19, %v779_v50 }
 0x92e   :  { %v973_v20 = vpop.f32.mrb[8].mxu1 }
 0x92f   :  { %4473 = vtanh.f32 %v782_v52  ;;  %v3679_v55 = vmul.f32 -1.442695, %v782_v52  ;;  %v4006_v21 = vpop.f32.mrb[9].mxu1 }
 0x931   :  { %4475 = vpow2.f32 %v3679_v55 }
 0x939   :  { %v4474_v53 = vpop.eup %4473 }
 0x93a   :  { %792 = vrot.lane.b32.xlu1 %v4474_v53, %s4573_s0 }
 0x93b   :  { %v4476_v56 = vpop.eup %4475 }
 0x93c   :  { %v786_v57 = vadd.f32 1.0, %v4476_v56 }
 0x93e   :  { %812 = vperm.xlu1 %4447, %v3680_v54   ;;  %4477 = vrcp.f32 %v786_v57 }
 0x948   :  { %v4478_v58 = vpop.eup %4477 }
 0x949   :  { %v790_v2 = vmul.f32 %v4478_v58, %v631_v1 }
 0x9ac   :  { %v793_v59 = vpop.permute.xlu1 %792 }
 0x9ad   :  { %v795_v60 = vmul.f32 %v4478_v58, %v793_v59  ;;  %v3690_v59 = vsel %vm1197_vm8, 1.0, %v4571_v8 }
 0x9af   :  { %797 = vrot.lane.b32.xlu0 %v795_v60, %s4574_s30 }
 0x9b3   :  { %819 = vperm.xlu0 %4448, %v816_v61  }
 0x9bd   :  { %v813_v11 = vpop.permute.xlu1 %812 }
 0xa21   :  { %v798_v3 = vpop.permute.xlu0 %797 }
 0xa22   :  { %v800_v5 = vadd.f32 %v798_v3, %v790_v2  ;;  %v1206_v3 = vsub.f32 1.0, %v3690_v59 }
 0xa24   :  { %4479 = vtanh.f32 %v800_v5  ;;  %v824_v37 = vmul.f32 %v813_v11, %v800_v5 }
 0xa2e   :  { %v4480_v7 = vpop.eup %4479 }
 0xa2f   :  { %803 = vrot.lane.b32.xlu1 %v4480_v7, %s4573_s0 }
 0xa32   :  { %v820_v12 = vpop.permute.xlu0 %819 }
 0xa33   :  { %v822_v16 = vmul.f32 %v820_v12, %v628_v45  ;;  %v825_v36 = vmul.f32 %v820_v12, %v631_v1 }
 0xa35   :  { %v826_v38 = vadd.f32 %v825_v36, %v824_v37 }
 0xaa1   :  { %v804_v14 = vpop.permute.xlu1 %803 }
 0xaa2   :  { %v806_v15 = vmul.f32 %v4478_v58, %v804_v14 }
 0xaa4   :  { %v815_v17 = vmul.f32 %v813_v11, %v806_v15  ;;  %v3691_v15 = vld [vmem:[%s5147_s2 + $0x30] sm:$0xff] }
 0xaa6   :  { %v823_v18 = vadd.f32 %v822_v16, %v815_v17 }
 0xaa8   :  { %830 = vrot.lane.b32.xlu0 %v823_v18, %s4574_s30 }
 0xb1a   :  { %v831_v22 = vpop.permute.xlu0 %830 }
 0xb1b   :  { %3998 = vmatmul.mubr.msk.f32.vlgmr.msra.gmra.mrb[8].mxu0 %vm42_vm3, %v831_v22 }
 0xb1c   :  { %4317 = vmatpush3.bf16.msra.mxu0 %v4656_v9  ;;  %4022 = vmatprep.mubr.msk.f32.mxu0 %vm4570_vm0, %v4571_v8 }
 0xb1d   :  { %4318 = vmatprep.subr.bf16.mxu0 %v4569_v0 }
 0xb1f   :  { %4023 = vmatmul.mubr.msk.f32.vlgmr.msra.gmra.mrb[10].mxu0 %vm116_vm1, %v3686_v42 }
 0xb20   :  { %4320 = vmatpush3.bf16.msra.mxu0 %v4641_v4  ;;  %4033 = vmatprep.mubr.msk.f32.mxu0 %vm4570_vm0, %v4571_v8 }
 0xb21   :  { %4321 = vmatprep.subr.bf16.mxu0 %v4569_v0 }
 0xb24   :  { %4323 = vmatpush3.bf16.msra.mxu0 %v4659_v10 }
 0xb25   :  { %4333 = vmatprep.subr.bf16.mxu0 %v4569_v0 }
 0xbee   :  { %v900_v23 = vpop.f32.mrb[8].mxu0 }
 0xbef   :  { %v974_v24 = vadd.f32 %v973_v20, %v900_v23  ;;  %v3999_v25 = vpop.f32.mrb[9].mxu0 }
 0xbf1   :  { %v977_v26 = vadd.f32 %v4691_v19, %v974_v24 }
 0xbf2   :  { %v1168_v51 = vpop.f32.mrb[10].mxu0 }
 0xbf3   :  { %4481 = vtanh.f32 %v977_v26  ;;  %v3684_v29 = vmul.f32 -1.442695, %v977_v26  ;;  %v4024_v52 = vpop.f32.mrb[11].mxu0 }
 0xbf5   :  { %4483 = vpow2.f32 %v3684_v29 }
 0xbfd   :  { %v4482_v27 = vpop.eup %4481 }
 0xbfe   :  { %987 = vrot.lane.b32.xlu1 %v4482_v27, %s4573_s0 }
 0xbff   :  { %v4484_v30 = vpop.eup %4483 }
 0xc00   :  { %v981_v31 = vadd.f32 1.0, %v4484_v30 }
 0xc02   :  { %1007 = vperm.xlu1 %4447, %v3685_v28   ;;  %4485 = vrcp.f32 %v981_v31  ;;  %v3695_v31 = vsel %vm1392_vm9, 1.0, %v4571_v8 }
 0xc03   :  { %v1401_v37 = vsub.f32 1.0, %v3695_v31 }
 0xc0c   :  { %v4486_v32 = vpop.eup %4485 }
 0xc0d   :  { %v985_v39 = vmul.f32 %v4486_v32, %v826_v38 }
 0xc70   :  { %v988_v33 = vpop.permute.xlu1 %987 }
 0xc71   :  { %v990_v34 = vmul.f32 %v4486_v32, %v988_v33 }
 0xc73   :  { %992 = vrot.lane.b32.xlu0 %v990_v34, %s4574_s30 }
 0xc77   :  { %1014 = vperm.xlu0 %4448, %v1011_v35  }
 0xc81   :  { %v1008_v44 = vpop.permute.xlu1 %1007 }
 0xce5   :  { %v993_v40 = vpop.permute.xlu0 %992 }
 0xce6   :  { %v995_v41 = vadd.f32 %v993_v40, %v985_v39 }
 0xce8   :  { %4487 = vtanh.f32 %v995_v41  ;;  %v1019_v6 = vmul.f32 %v1008_v44, %v995_v41 }
 0xcf2   :  { %v4488_v43 = vpop.eup %4487 }
 0xcf3   :  { %998 = vrot.lane.b32.xlu1 %v4488_v43, %s4573_s0 }
 0xcf6   :  { %v1015_v45 = vpop.permute.xlu0 %1014 }
 0xcf7   :  { %v1017_v48 = vmul.f32 %v1015_v45, %v823_v18  ;;  %v1020_v5 = vmul.f32 %v1015_v45, %v826_v38 }
 0xcf9   :  { %v1021_v7 = vadd.f32 %v1020_v5, %v1019_v6 }
 0xd65   :  { %v999_v46 = vpop.permute.xlu1 %998 }
 0xd66   :  { %v1001_v47 = vmul.f32 %v4486_v32, %v999_v46 }
 0xd68   :  { %v1010_v49 = vmul.f32 %v1008_v44, %v1001_v47  ;;  %v3696_v44 = vld [vmem:[%s5147_s2 + $0x38] sm:$0xff] }
 0xd6a   :  { %v1018_v50 = vadd.f32 %v1017_v48, %v1010_v49 }
 0xd6c   :  { %1025 = vrot.lane.b32.xlu0 %v1018_v50, %s4574_s30 }
 0xdde   :  { %v1026_v53 = vpop.permute.xlu0 %1025 }
 0xddf   :  { %4016 = vmatmul.mubr.msk.f32.vlgmr.msra.gmra.mrb[10].mxu1 %vm42_vm3, %v1026_v53 }
 0xde0   :  { %4326 = vmatpush3.bf16.msra.mxu1 %v4656_v9  ;;  %4040 = vmatprep.mubr.msk.f32.mxu1 %vm4570_vm0, %v4571_v8 }
 0xde1   :  { %4327 = vmatprep.subr.bf16.mxu1 %v4569_v0 }
 0xde3   :  { %4041 = vmatmul.mubr.msk.f32.vlgmr.msra.gmra.mrb[12].mxu1 %vm116_vm1, %v3691_v15  ;;  %v1610_v15 = vld [vmem:[%s5150_s6 + $0x10] sm:$0xff] }
 0xde4   :  { %4329 = vmatpush3.bf16.msra.mxu1 %v4641_v4  ;;  %4051 = vmatprep.mubr.msk.f32.mxu1 %vm4570_vm0, %v4571_v8 }
 0xde5   :  { %4330 = vmatprep.subr.bf16.mxu1 %v4569_v0 }
 0xde8   :  { %4332 = vmatpush3.bf16.msra.mxu1 %v4659_v10 }
 0xde9   :  { %4342 = vmatprep.subr.bf16.mxu1 %v4569_v0 }
 0xeb2   :  { %v1095_v54 = vpop.f32.mrb[10].mxu1 }
 0xeb3   :  { %v1169_v55 = vadd.f32 %v1168_v51, %v1095_v54  ;;  %v4017_v56 = vpop.f32.mrb[11].mxu1 }
 0xeb5   :  { %v1172_v57 = vadd.f32 %v4691_v19, %v1169_v55 }
 0xeb6   :  { %v1363_v4 = vpop.f32.mrb[12].mxu1 }
 0xeb7   :  { %4489 = vtanh.f32 %v1172_v57  ;;  %v3689_v60 = vmul.f32 -1.442695, %v1172_v57  ;;  %v4042_v25 = vpop.f32.mrb[13].mxu1 }
 0xeb9   :  { %4491 = vpow2.f32 %v3689_v60 }
 0xec1   :  { %v4490_v58 = vpop.eup %4489 }
 0xec2   :  { %1182 = vrot.lane.b32.xlu1 %v4490_v58, %s4573_s0 }
 0xec3   :  { %v4492_v61 = vpop.eup %4491 }
 0xec4   :  { %v1176_v62 = vadd.f32 1.0, %v4492_v61  ;;  %v3700_v61 = vsel %vm1587_vm10, 1.0, %v4571_v8 }
 0xec5   :  { %v1596_v6 = vsub.f32 1.0, %v3700_v61 }
 0xec6   :  { %1202 = vperm.xlu1 %4447, %v3690_v59   ;;  %4493 = vrcp.f32 %v1176_v62 }
 0xed0   :  { %v4494_v63 = vpop.eup %4493 }
 0xed1   :  { %v1180_v11 = vmul.f32 %v4494_v63, %v1021_v7 }
 0xf34   :  { %v1183_v1 = vpop.permute.xlu1 %1182 }
 0xf35   :  { %v1185_v2 = vmul.f32 %v4494_v63, %v1183_v1 }
 0xf37   :  { %1187 = vrot.lane.b32.xlu0 %v1185_v2, %s4574_s30 }
 0xf3b   :  { %1209 = vperm.xlu0 %4448, %v1206_v3  }
 0xf45   :  { %v1203_v17 = vpop.permute.xlu1 %1202 }
 0xfa9   :  { %v1188_v12 = vpop.permute.xlu0 %1187 }
 0xfaa   :  { %v1190_v14 = vadd.f32 %v1188_v12, %v1180_v11 }
 0xfac   :  { %4495 = vtanh.f32 %v1190_v14  ;;  %v1214_v39 = vmul.f32 %v1203_v17, %v1190_v14 }
 0xfb6   :  { %v4496_v16 = vpop.eup %4495 }
 0xfb7   :  { %1193 = vrot.lane.b32.xlu1 %v4496_v16, %s4573_s0  ;;  %v1611_v16 = vld [vmem:[%s5150_s6 + $0x18] sm:$0xff] }
 0xfba   :  { %v1210_v18 = vpop.permute.xlu0 %1209 }
 0xfbb   :  { %v1212_v22 = vmul.f32 %v1210_v18, %v1018_v50  ;;  %v1215_v38 = vmul.f32 %v1210_v18, %v1021_v7  ;;  %v4859_v18 = vpack.c.bf16 %v1611_v16, %v1610_v15 }
 0xfbd   :  { %v1216_v40 = vadd.f32 %v1215_v38, %v1214_v39  ;;  %v4904_v39 = vld [vmem:[%s5153_s1] sm:$0xff] }
 0xfbe   :  { %vm1795_vm11 = vcmp.gt.s32.totalorder %v4904_v39, 0  ;;  %vm2087_vm12 = vcmp.gt.s32.totalorder %v4904_v39, 1  ;;  %vm2380_vm13 = vcmp.gt.s32.totalorder %v4904_v39, 2  ;;  %vm2673_vm14 = vcmp.gt.s32.totalorder %v4904_v39, 3 }
 0xfbf   :  { %vm2966_vm15 = vcmp.gt.s32.totalorder %v4904_v39, 4  ;;  %vm3259_vm2 = vcmp.gt.s32.totalorder %v4904_v39, 5 }
0x1029   :  { %v1194_v20 = vpop.permute.xlu1 %1193 }
0x102a   :  { %v1196_v21 = vmul.f32 %v4494_v63, %v1194_v20  ;;  %v1609_v20 = vld [vmem:[%s5150_s6 + $0x8] sm:$0xff] }
0x102c   :  { %v1205_v23 = vmul.f32 %v1203_v17, %v1196_v21  ;;  %v1608_v17 = vld [vmem:[%s5150_s6] sm:$0xff] }
0x102d   :  { %v1612_v21 = vld [vmem:[%s5150_s6 + $0x20] sm:$0xff] }
0x102e   :  { %v1213_v24 = vadd.f32 %v1212_v22, %v1205_v23  ;;  %v1613_v22 = vld [vmem:[%s5150_s6 + $0x28] sm:$0xff]  ;;  %v4870_v23 = vpack.c.bf16 %v1609_v20, %v1608_v17 }
0x1030   :  { %1220 = vrot.lane.b32.xlu0 %v1213_v24, %s4574_s30 }
0x10a2   :  { %v1221_v26 = vpop.permute.xlu0 %1220 }
0x10a3   :  { %4034 = vmatmul.mubr.msk.f32.vlgmr.msra.gmra.mrb[12].mxu0 %vm42_vm3, %v1221_v26 }
0x10a4   :  { %4335 = vmatpush3.bf16.msra.mxu0 %v4656_v9  ;;  %4058 = vmatprep.mubr.msk.f32.mxu0 %vm4570_vm0, %v4571_v8 }
0x10a5   :  { %4336 = vmatprep.subr.bf16.mxu0 %v4569_v0 }
0x10a7   :  { %4059 = vmatmul.mubr.msk.f32.vlgmr.msra.gmra.mrb[14].mxu0 %vm116_vm1, %v3696_v44 }
0x10a8   :  { %4069 = vmatprep.mubr.msk.f32.mxu0 %vm4570_vm0, %v4571_v8  ;;  %4338 = vmatpush3.bf16.msra.mxu0 %v4859_v18 }
0x10a9   :  { %4339 = vmatprep.subr.bf16.mxu0 %v4569_v0 }
0x1176   :  { %v1290_v10 = vpop.f32.mrb[12].mxu0 }
0x1177   :  { %v1364_v27 = vadd.f32 %v1363_v4, %v1290_v10  ;;  %v4035_v28 = vpop.f32.mrb[13].mxu0  ;;  %v1607_v4 = vld [vmem:[%s5151_s3] sm:$0xff] }
0x1179   :  { %v1367_v29 = vadd.f32 %v4691_v19, %v1364_v27 }
0x117a   :  { %v1558_v53 = vpop.f32.mrb[14].mxu0 }
0x117b   :  { %4497 = vtanh.f32 %v1367_v29  ;;  %v3694_v9 = vmul.f32 -1.442695, %v1367_v29  ;;  %v4060_v54 = vpop.f32.mrb[15].mxu0 }
0x117d   :  { %4499 = vpow2.f32 %v3694_v9 }
0x1185   :  { %v4498_v30 = vpop.eup %4497 }
0x1186   :  { %1377 = vrot.lane.b32.xlu1 %v4498_v30, %s4573_s0 }
0x1187   :  { %v4500_v32 = vpop.eup %4499 }
0x1188   :  { %v1371_v33 = vadd.f32 1.0, %v4500_v32 }
0x118a   :  { %1397 = vperm.xlu1 %4447, %v3695_v31   ;;  %4501 = vrcp.f32 %v1371_v33 }
0x1194   :  { %v4502_v34 = vpop.eup %4501 }
0x1195   :  { %v1375_v41 = vmul.f32 %v4502_v34, %v1216_v40 }
0x11f8   :  { %v1378_v35 = vpop.permute.xlu1 %1377 }
0x11f9   :  { %v1380_v36 = vmul.f32 %v4502_v34, %v1378_v35  ;;  %v4898_v35 = vld [vmem:[%s5152_s7] ss:$0 sm:$0xff] }
0x11fb   :  { %1382 = vrot.lane.b32.xlu0 %v1380_v36, %s4574_s30 }
0x11ff   :  { %1404 = vperm.xlu0 %4448, %v1401_v37  }
0x1209   :  { %v1398_v46 = vpop.permute.xlu1 %1397 }
0x126d   :  { %v1383_v42 = vpop.permute.xlu0 %1382 }
0x126e   :  { %v1385_v43 = vadd.f32 %v1383_v42, %v1375_v41  ;;  %v3705_v41 = vsel %vm1795_vm11, 1.0, %v4571_v8 }
0x1270   :  { %4503 = vtanh.f32 %v1385_v43  ;;  %v1409_v13 = vmul.f32 %v1398_v46, %v1385_v43 }
0x127a   :  { %v4504_v45 = vpop.eup %4503 }
0x127b   :  { %1388 = vrot.lane.b32.xlu1 %v4504_v45, %s4573_s0 }
0x127e   :  { %v1405_v47 = vpop.permute.xlu0 %1404 }
0x127f   :  { %v1407_v50 = vmul.f32 %v1405_v47, %v1213_v24  ;;  %v4873_v24 = vpack.c.bf16 %v1613_v22, %v1612_v21 }
0x1281   :  { %4341 = vmatpush3.bf16.msra.mxu0 %v4873_v24 }
0x1282   :  { %4351 = vmatprep.subr.bf16.mxu0 %v4569_v0 }
0x12ed   :  { %v1389_v48 = vpop.permute.xlu1 %1388 }
0x12ee   :  { %v1391_v49 = vmul.f32 %v4502_v34, %v1389_v48  ;;  %v1804_v48 = vsub.f32 1.0, %v3705_v41 }
0x12f0   :  { %v1400_v51 = vmul.f32 %v1398_v46, %v1391_v49 }
0x12f2   :  { %v1408_v52 = vadd.f32 %v1407_v50, %v1400_v51 }
0x12f4   :  { %1415 = vrot.lane.b32.xlu0 %v1408_v52, %s4574_s30 }
0x1366   :  { %v1416_v55 = vpop.permute.xlu0 %1415 }
0x1367   :  { %4052 = vmatmul.mubr.msk.f32.vlgmr.msra.gmra.mrb[14].mxu1 %vm42_vm3, %v1416_v55  ;;  %v1815_v55 = vld [vmem:[%s5154_s8] sm:$0xff] }
0x1368   :  { %4076 = vmatprep.mubr.msk.f32.mxu1 %vm4570_vm0, %v4571_v8  ;;  %4344 = vmatpush3.bf16.msra.mxu1 %v4870_v23 }
0x1369   :  { %4345 = vmatprep.subr.bf16.mxu1 %v4569_v0 }
0x136b   :  { %4077 = vmatmul.mubr.msk.f32.vlgmr.msra.gmra.mrb[16].mxu1 %vm116_vm1, %v1607_v4 }
0x136c   :  { %4087 = vmatprep.mubr.msk.f32.mxu1 %vm4570_vm0, %v4571_v8 }
0x143a   :  { %v1485_v56 = vpop.f32.mrb[14].mxu1 }
0x143b   :  { %v1559_v57 = vadd.f32 %v1558_v53, %v1485_v56  ;;  %v4053_v58 = vpop.f32.mrb[15].mxu1  ;;  %v1816_v56 = vld [vmem:[%s5154_s8 + $0x8] sm:$0xff] }
0x143c   :  { %v4927_v58 = vpack.c.bf16 %v1816_v56, %v1815_v55 }
0x143d   :  { %v1562_v59 = vadd.f32 %v4691_v19, %v1559_v57  ;;  %v1410_v19 = vmul.f32 %v1405_v47, %v1216_v40  ;;  %v1817_v57 = vld [vmem:[%s5154_s8 + $0x10] sm:$0xff] }
0x143e   :  { %v1758_v9 = vpop.f32.mrb[16].mxu1  ;;  %4347 = vmatpush3.bf16.msra.mxu1 %v4927_v58 }
0x143f   :  { %4505 = vtanh.f32 %v1562_v59  ;;  %v3699_v62 = vmul.f32 -1.442695, %v1562_v59  ;;  %v4844_v7 = vadd.f32 %v1410_v19, %v1409_v13  ;;  %v4078_v32 = vpop.f32.mrb[17].mxu1  ;;  %v1818_v59 = vld [vmem:[%s5154_s8 + $0x18] sm:$0xff]  ;;  %4348 = vmatprep.subr.bf16.mxu1 %v4569_v0  ;;  %v3708_v13 = vld [vmem:[%s5151_s3 + $0x8] sm:$0xff] }
0x1441   :  { %4507 = vpow2.f32 %v3699_v62 }
0x1449   :  { %v4506_v60 = vpop.eup %4505 }
0x144a   :  { %1572 = vrot.lane.b32.xlu1 %v4506_v60, %s4573_s0  ;;  %v4933_v60 = vpack.c.bf16 %v1818_v59, %v1817_v57 }
0x144b   :  { %v4508_v63 = vpop.eup %4507 }
0x144c   :  { %v1566_v1 = vadd.f32 1.0, %v4508_v63  ;;  %4350 = vmatpush3.bf16.msra.mxu1 %v4933_v60 }
0x144d   :  { %4357 = vmatprep.subr.bf16.mxu1 %v4569_v0 }
0x144e   :  { %1592 = vperm.xlu1 %4447, %v3700_v61   ;;  %4509 = vrcp.f32 %v1566_v1 }
0x1458   :  { %v4510_v2 = vpop.eup %4509 }
0x1459   :  { %v1570_v11 = vmul.f32 %v4510_v2, %v4844_v7 }
0x14bc   :  { %v1573_v3 = vpop.permute.xlu1 %1572 }
0x14bd   :  { %v1575_v5 = vmul.f32 %v4510_v2, %v1573_v3 }
0x14bf   :  { %1577 = vrot.lane.b32.xlu0 %v1575_v5, %s4574_s30 }
0x14c3   :  { %1599 = vperm.xlu0 %4448, %v1596_v6  }
0x14cd   :  { %v1593_v26 = vpop.permute.xlu1 %1592 }
0x1531   :  { %v1578_v12 = vpop.permute.xlu0 %1577 }
0x1532   :  { %v4847_v14 = vadd.f32 %v1578_v12, %v1570_v11 }
0x1534   :  { %4511 = vtanh.f32 %v4847_v14  ;;  %v1604_v50 = vmul.f32 %v1593_v26, %v4847_v14 }
0x153e   :  { %v4512_v25 = vpop.eup %4511 }
0x153f   :  { %1583 = vrot.lane.b32.xlu1 %v4512_v25, %s4573_s0 }
0x1542   :  { %v1600_v10 = vpop.permute.xlu0 %1599 }
0x1543   :  { %v1602_v29 = vmul.f32 %v1600_v10, %v1408_v52  ;;  %v1605_v49 = vmul.f32 %v1600_v10, %v4844_v7  ;;  %v4968_v7 = vld [vmem:[%s5155_s9] ss:$0 sm:$0xff] }
0x1545   :  { %v4912_v51 = vadd.f32 %v1605_v49, %v1604_v50  ;;  %v3717_v49 = vld [vmem:[%s5151_s3 + $0x10] sm:$0xff] }
0x15b1   :  { %v1584_v27 = vpop.permute.xlu1 %1583 }
0x15b2   :  { %v1586_v28 = vmul.f32 %v4510_v2, %v1584_v27 }
0x15b4   :  { %v1595_v30 = vmul.f32 %v1593_v26, %v1586_v28  ;;  %v3713_v26 = vsel %vm2087_vm12, 1.0, %v4571_v8 }
0x15b6   :  { %v1603_v31 = vadd.f32 %v1602_v29, %v1595_v30 }
0x15b8   :  { %1615 = vrot.lane.b32.xlu0 %v1603_v31, %s4574_s30 }
0x162a   :  { %v1616_v33 = vpop.permute.xlu0 %1615 }
0x162b   :  { %4070 = vmatmul.mubr.msk.f32.vlgmr.msra.gmra.mrb[16].mxu0 %vm42_vm3, %v1616_v33 }
0x162c   :  { %4353 = vmatpush3.bf16.msra.mxu0 %v4859_v18  ;;  %4098 = vmatprep.mubr.msk.f32.mxu0 %vm4570_vm0, %v4571_v8 }
0x162d   :  { %4354 = vmatprep.subr.bf16.mxu0 %v4569_v0 }
0x1630   :  { %4356 = vmatpush3.bf16.msra.mxu0 %v4873_v24 }
0x1631   :  { %4360 = vmatprep.subr.bf16.mxu0 %v4569_v0 }
0x16fe   :  { %v1685_v34 = vpop.f32.mrb[16].mxu0 }
0x16ff   :  { %v1759_v36 = vadd.f32 %v1758_v9, %v1685_v34  ;;  %v4071_v37 = vpop.f32.mrb[17].mxu0  ;;  %v2096_v9 = vsub.f32 1.0, %v3713_v26 }
0x1701   :  { %v1769_v38 = vadd.f32 %v4898_v35, %v1759_v36 }
0x1703   :  { %4513 = vtanh.f32 %v1769_v38  ;;  %v3704_v42 = vmul.f32 -1.442695, %v1769_v38 }
0x1705   :  { %4515 = vpow2.f32 %v3704_v42 }
0x170d   :  { %v4514_v40 = vpop.eup %4513 }
0x170e   :  { %1779 = vrot.lane.b32.xlu1 %v4514_v40, %s4573_s0 }
0x170f   :  { %v4516_v43 = vpop.eup %4515 }
0x1710   :  { %v1773_v44 = vadd.f32 1.0, %v4516_v43 }
0x1712   :  { %1800 = vperm.xlu1 %4447, %v3705_v41   ;;  %4517 = vrcp.f32 %v1773_v44 }
0x171c   :  { %v4518_v45 = vpop.eup %4517 }
0x171d   :  { %v1777_v52 = vmul.f32 %v4518_v45, %v4912_v51 }
0x1780   :  { %v1780_v46 = vpop.permute.xlu1 %1779 }
0x1781   :  { %v1782_v47 = vmul.f32 %v4518_v45, %v1780_v46 }
0x1783   :  { %1784 = vrot.lane.b32.xlu0 %v1782_v47, %s4574_s30 }
0x1787   :  { %1807 = vperm.xlu0 %4448, %v1804_v48  }
0x1791   :  { %v1801_v62 = vpop.permute.xlu1 %1800 }
0x17f5   :  { %v1785_v53 = vpop.permute.xlu0 %1784 }
0x17f6   :  { %v4915_v54 = vadd.f32 %v1785_v53, %v1777_v52 }
0x17f8   :  { %4519 = vtanh.f32 %v4915_v54  ;;  %v1812_v33 = vmul.f32 %v1801_v62, %v4915_v54 }
0x1802   :  { %v4520_v61 = vpop.eup %4519 }
0x1803   :  { %1790 = vrot.lane.b32.xlu1 %v4520_v61, %s4573_s0 }
0x1806   :  { %v1808_v63 = vpop.permute.xlu0 %1807 }
0x1807   :  { %v1810_v3 = vmul.f32 %v1808_v63, %v1603_v31  ;;  %v1813_v32 = vmul.f32 %v1808_v63, %v4912_v51  ;;  %v3722_v63 = vsel %vm2380_vm13, 1.0, %v4571_v8 }
0x1809   :  { %v1814_v34 = vadd.f32 %v1813_v32, %v1812_v33 }
0x1875   :  { %v1791_v1 = vpop.permute.xlu1 %1790 }
0x1876   :  { %v1793_v2 = vmul.f32 %v4518_v45, %v1791_v1 }
0x1878   :  { %v1803_v5 = vmul.f32 %v1801_v62, %v1793_v2 }
0x187a   :  { %v4939_v6 = vadd.f32 %v1810_v3, %v1803_v5 }
0x187c   :  { %1827 = vrot.lane.b32.xlu0 %v4939_v6, %s4574_s30 }
0x18ee   :  { %v1828_v19 = vpop.permute.xlu0 %1827 }
0x18ef   :  { %4088 = vmatmul.mubr.msk.f32.vlgmr.msra.gmra.mrb[18].mxu1 %vm42_vm3, %v1828_v19  ;;  %4099 = vmatmul.mubr.msk.f32.vlgmr.msra.gmra.mrb[18].mxu0 %vm42_vm3, %v1828_v19 }
0x18f0   :  { %4359 = vmatpush3.bf16.msra.mxu1 %v4870_v23  ;;  %4105 = vmatprep.mubr.msk.f32.mxu1 %vm4570_vm0, %v4571_v8 }
0x18f1   :  { %4362 = vmatpush3.bf16.msra.mxu0 %v4927_v58  ;;  %4366 = vmatprep.subr.bf16.mxu1 %v4569_v0 }
0x18f2   :  { %4363 = vmatprep.subr.bf16.mxu0 %v4569_v0  ;;  %4116 = vmatprep.mubr.msk.f32.mxu0 %vm4570_vm0, %v4571_v8 }
0x18f3   :  { %4106 = vmatmul.mubr.msk.f32.vlgmr.msra.gmra.mrb[20].mxu1 %vm116_vm1, %v3708_v13  ;;  %v2389_v13 = vsub.f32 1.0, %v3722_v63 }
0x18f4   :  { %4368 = vmatpush3.bf16.msra.mxu1 %v4859_v18  ;;  %4127 = vmatprep.mubr.msk.f32.mxu1 %vm4570_vm0, %v4571_v8 }
0x18f5   :  { %4365 = vmatpush3.bf16.msra.mxu0 %v4933_v60  ;;  %4369 = vmatprep.subr.bf16.mxu1 %v4569_v0 }
0x18f6   :  { %4372 = vmatprep.subr.bf16.mxu0 %v4569_v0 }
0x18f8   :  { %4371 = vmatpush3.bf16.msra.mxu1 %v4873_v24 }
0x18f9   :  { %4375 = vmatprep.subr.bf16.mxu1 %v4569_v0 }
0x19c2   :  { %v1897_v11 = vpop.f32.mrb[18].mxu1  ;;  %v1977_v12 = vpop.f32.mrb[18].mxu0 }
0x19c3   :  { %v1898_v14 = vadd.f32 %v4968_v7, %v1897_v11  ;;  %v4089_v15 = vpop.f32.mrb[19].mxu1  ;;  %v4100_v16 = vpop.f32.mrb[19].mxu0 }
0x19c5   :  { %v1901_v17 = vmul.f32 %v1898_v14, %v1801_v62 }
0x19c6   :  { %v2050_v20 = vpop.f32.mrb[20].mxu1 }
0x19c7   :  { %1902 = vst [vmem:[%s5156_s10] sm:$0xff] %v1901_v17  ;;  %v2051_v21 = vadd.f32 %v2050_v20, %v1977_v12  ;;  %v4107_v22 = vpop.f32.mrb[21].mxu1 }
0x19c9   :  { %v2061_v4 = vadd.f32 %v4898_v35, %v2051_v21 }
0x19cb   :  { %4521 = vtanh.f32 %v2061_v4  ;;  %v3712_v10 = vmul.f32 -1.442695, %v2061_v4 }
0x19cd   :  { %4523 = vpow2.f32 %v3712_v10 }
0x19d5   :  { %v4522_v25 = vpop.eup %4521 }
0x19d6   :  { %2071 = vrot.lane.b32.xlu1 %v4522_v25, %s4573_s0 }
0x19d7   :  { %v4524_v27 = vpop.eup %4523 }
0x19d8   :  { %v2065_v28 = vadd.f32 1.0, %v4524_v27 }
0x19da   :  { %2092 = vperm.xlu1 %4447, %v3713_v26   ;;  %4525 = vrcp.f32 %v2065_v28 }
0x19e4   :  { %v4526_v29 = vpop.eup %4525 }
0x19e5   :  { %v2069_v36 = vmul.f32 %v4526_v29, %v1814_v34 }
0x1a48   :  { %v2072_v30 = vpop.permute.xlu1 %2071 }
0x1a49   :  { %v2074_v31 = vmul.f32 %v4526_v29, %v2072_v30 }
0x1a4b   :  { %2076 = vrot.lane.b32.xlu0 %v2074_v31, %s4574_s30 }
0x1a4f   :  { %2099 = vperm.xlu0 %4448, %v2096_v9  }
0x1a59   :  { %v2093_v41 = vpop.permute.xlu1 %2092 }
0x1abd   :  { %v2077_v37 = vpop.permute.xlu0 %2076 }
0x1abe   :  { %v2079_v38 = vadd.f32 %v2077_v37, %v2069_v36 }
0x1ac0   :  { %4527 = vtanh.f32 %v2079_v38  ;;  %v2104_v12 = vmul.f32 %v2093_v41, %v2079_v38 }
0x1aca   :  { %v4528_v40 = vpop.eup %4527 }
0x1acb   :  { %2082 = vrot.lane.b32.xlu1 %v4528_v40, %s4573_s0 }
0x1ace   :  { %v2100_v42 = vpop.permute.xlu0 %2099 }
0x1acf   :  { %v2102_v45 = vmul.f32 %v2100_v42, %v4939_v6  ;;  %v2105_v11 = vmul.f32 %v2100_v42, %v1814_v34  ;;  %v3731_v42 = vsel %vm2673_vm14, 1.0, %v4571_v8 }
0x1ad1   :  { %v2106_v14 = vadd.f32 %v2105_v11, %v2104_v12 }
0x1b3d   :  { %v2083_v43 = vpop.permute.xlu1 %2082 }
0x1b3e   :  { %v2085_v44 = vmul.f32 %v4526_v29, %v2083_v43  ;;  %v3726_v29 = vld [vmem:[%s5151_s3 + $0x18] sm:$0xff] }
0x1b40   :  { %v2095_v46 = vmul.f32 %v2093_v41, %v2085_v44 }
0x1b42   :  { %v2103_v47 = vadd.f32 %v2102_v45, %v2095_v46 }
0x1b44   :  { %2119 = vrot.lane.b32.xlu0 %v2103_v47, %s4574_s30 }
0x1bb6   :  { %v2120_v48 = vpop.permute.xlu0 %2119 }
0x1bb7   :  { %4117 = vmatmul.mubr.msk.f32.vlgmr.msra.gmra.mrb[20].mxu0 %vm42_vm3, %v2120_v48  ;;  %4128 = vmatmul.mubr.msk.f32.vlgmr.msra.gmra.mrb[22].mxu1 %vm42_vm3, %v2120_v48 }
0x1bb8   :  { %4374 = vmatpush3.bf16.msra.mxu0 %v4870_v23  ;;  %4134 = vmatprep.mubr.msk.f32.mxu0 %vm4570_vm0, %v4571_v8 }
0x1bb9   :  { %4377 = vmatpush3.bf16.msra.mxu1 %v4927_v58  ;;  %4381 = vmatprep.subr.bf16.mxu0 %v4569_v0 }
0x1bba   :  { %4378 = vmatprep.subr.bf16.mxu1 %v4569_v0  ;;  %4145 = vmatprep.mubr.msk.f32.mxu1 %vm4570_vm0, %v4571_v8 }
0x1bbb   :  { %4135 = vmatmul.mubr.msk.f32.vlgmr.msra.gmra.mrb[22].mxu0 %vm116_vm1, %v3717_v49  ;;  %v2682_v49 = vsub.f32 1.0, %v3731_v42 }
0x1bbc   :  { %4383 = vmatpush3.bf16.msra.mxu0 %v4859_v18  ;;  %4156 = vmatprep.mubr.msk.f32.mxu0 %vm4570_vm0, %v4571_v8 }
0x1bbd   :  { %4380 = vmatpush3.bf16.msra.mxu1 %v4933_v60  ;;  %4384 = vmatprep.subr.bf16.mxu0 %v4569_v0 }
0x1bbe   :  { %4387 = vmatprep.subr.bf16.mxu1 %v4569_v0 }
0x1bc0   :  { %4386 = vmatpush3.bf16.msra.mxu0 %v4873_v24 }
0x1bc1   :  { %4390 = vmatprep.subr.bf16.mxu0 %v4569_v0 }
0x1c8a   :  { %v2189_v50 = vpop.f32.mrb[20].mxu0  ;;  %v2270_v51 = vpop.f32.mrb[22].mxu1 }
0x1c8b   :  { %v2190_v52 = vadd.f32 %v4968_v7, %v2189_v50  ;;  %v4118_v53 = vpop.f32.mrb[21].mxu0  ;;  %v4129_v54 = vpop.f32.mrb[23].mxu1 }
0x1c8d   :  { %v2193_v55 = vmul.f32 %v2190_v52, %v2093_v41 }
0x1c8e   :  { %v2343_v56 = vpop.f32.mrb[22].mxu0 }
0x1c8f   :  { %3716 = vst [vmem:[%s5156_s10 + $0x8] sm:$0xff] %v2193_v55  ;;  %v2344_v57 = vadd.f32 %v2343_v56, %v2270_v51  ;;  %v4136_v59 = vpop.f32.mrb[23].mxu0 }
0x1c91   :  { %v2354_v61 = vadd.f32 %v4898_v35, %v2344_v57 }
0x1c93   :  { %4529 = vtanh.f32 %v2354_v61  ;;  %v3721_v1 = vmul.f32 -1.442695, %v2354_v61 }
0x1c95   :  { %4531 = vpow2.f32 %v3721_v1 }
0x1c9d   :  { %v4530_v62 = vpop.eup %4529 }
0x1c9e   :  { %2364 = vrot.lane.b32.xlu1 %v4530_v62, %s4573_s0 }
0x1c9f   :  { %v4532_v2 = vpop.eup %4531 }
0x1ca0   :  { %v2358_v3 = vadd.f32 1.0, %v4532_v2 }
0x1ca2   :  { %2385 = vperm.xlu1 %4447, %v3722_v63   ;;  %4533 = vrcp.f32 %v2358_v3 }
0x1cac   :  { %v4534_v5 = vpop.eup %4533 }
0x1cad   :  { %v2362_v15 = vmul.f32 %v4534_v5, %v2106_v14 }
0x1d10   :  { %v2365_v6 = vpop.permute.xlu1 %2364 }
0x1d11   :  { %v2367_v19 = vmul.f32 %v4534_v5, %v2365_v6 }
0x1d13   :  { %2369 = vrot.lane.b32.xlu0 %v2367_v19, %s4574_s30 }
0x1d17   :  { %2392 = vperm.xlu0 %4448, %v2389_v13  }
0x1d21   :  { %v2386_v21 = vpop.permute.xlu1 %2385 }
0x1d85   :  { %v2370_v16 = vpop.permute.xlu0 %2369 }
0x1d86   :  { %v2372_v17 = vadd.f32 %v2370_v16, %v2362_v15 }
0x1d88   :  { %4535 = vtanh.f32 %v2372_v17  ;;  %v2397_v51 = vmul.f32 %v2386_v21, %v2372_v17 }
0x1d92   :  { %v4536_v20 = vpop.eup %4535 }
0x1d93   :  { %2375 = vrot.lane.b32.xlu1 %v4536_v20, %s4573_s0 }
0x1d96   :  { %v2393_v22 = vpop.permute.xlu0 %2392 }
0x1d97   :  { %v2395_v26 = vmul.f32 %v2393_v22, %v2103_v47  ;;  %v2398_v50 = vmul.f32 %v2393_v22, %v2106_v14  ;;  %v3740_v22 = vsel %vm2966_vm15, 1.0, %v4571_v8 }
0x1d99   :  { %v2399_v52 = vadd.f32 %v2398_v50, %v2397_v51 }
0x1e05   :  { %v2376_v4 = vpop.permute.xlu1 %2375 }
0x1e06   :  { %v2378_v25 = vmul.f32 %v4534_v5, %v2376_v4  ;;  %v3735_v5 = vld [vmem:[%s5151_s3 + $0x20] sm:$0xff] }
0x1e08   :  { %v2388_v10 = vmul.f32 %v2386_v21, %v2378_v25 }
0x1e0a   :  { %v2396_v27 = vadd.f32 %v2395_v26, %v2388_v10 }
0x1e0c   :  { %2412 = vrot.lane.b32.xlu0 %v2396_v27, %s4574_s30 }
0x1e7e   :  { %v2413_v28 = vpop.permute.xlu0 %2412 }
0x1e7f   :  { %4146 = vmatmul.mubr.msk.f32.vlgmr.msra.gmra.mrb[24].mxu1 %vm42_vm3, %v2413_v28  ;;  %4157 = vmatmul.mubr.msk.f32.vlgmr.msra.gmra.mrb[24].mxu0 %vm42_vm3, %v2413_v28 }
0x1e80   :  { %4389 = vmatpush3.bf16.msra.mxu1 %v4870_v23  ;;  %4163 = vmatprep.mubr.msk.f32.mxu1 %vm4570_vm0, %v4571_v8 }
0x1e81   :  { %4392 = vmatpush3.bf16.msra.mxu0 %v4927_v58  ;;  %4396 = vmatprep.subr.bf16.mxu1 %v4569_v0 }
0x1e82   :  { %4393 = vmatprep.subr.bf16.mxu0 %v4569_v0  ;;  %4174 = vmatprep.mubr.msk.f32.mxu0 %vm4570_vm0, %v4571_v8 }
0x1e83   :  { %4164 = vmatmul.mubr.msk.f32.vlgmr.msra.gmra.mrb[26].mxu1 %vm116_vm1, %v3726_v29  ;;  %v2975_v29 = vsub.f32 1.0, %v3740_v22 }
0x1e84   :  { %4398 = vmatpush3.bf16.msra.mxu1 %v4859_v18  ;;  %4185 = vmatprep.mubr.msk.f32.mxu1 %vm4570_vm0, %v4571_v8 }
0x1e85   :  { %4395 = vmatpush3.bf16.msra.mxu0 %v4933_v60  ;;  %4399 = vmatprep.subr.bf16.mxu1 %v4569_v0 }
0x1e86   :  { %4402 = vmatprep.subr.bf16.mxu0 %v4569_v0 }
0x1e88   :  { %4401 = vmatpush3.bf16.msra.mxu1 %v4873_v24 }
0x1e89   :  { %4405 = vmatprep.subr.bf16.mxu1 %v4569_v0 }
0x1f52   :  { %v2482_v30 = vpop.f32.mrb[24].mxu1  ;;  %v2563_v31 = vpop.f32.mrb[24].mxu0 }
0x1f53   :  { %v2483_v9 = vadd.f32 %v4968_v7, %v2482_v30  ;;  %v4147_v32 = vpop.f32.mrb[25].mxu1  ;;  %v4158_v33 = vpop.f32.mrb[25].mxu0 }
0x1f55   :  { %v2486_v34 = vmul.f32 %v2483_v9, %v2386_v21 }
0x1f56   :  { %v2636_v36 = vpop.f32.mrb[26].mxu1 }
0x1f57   :  { %3725 = vst [vmem:[%s5156_s10 + $0x10] sm:$0xff] %v2486_v34  ;;  %v2637_v37 = vadd.f32 %v2636_v36, %v2563_v31  ;;  %v4165_v38 = vpop.f32.mrb[27].mxu1 }
0x1f59   :  { %v2647_v40 = vadd.f32 %v4898_v35, %v2637_v37 }
0x1f5b   :  { %4537 = vtanh.f32 %v2647_v40  ;;  %v3730_v43 = vmul.f32 -1.442695, %v2647_v40 }
0x1f5d   :  { %4539 = vpow2.f32 %v3730_v43 }
0x1f65   :  { %v4538_v41 = vpop.eup %4537 }
0x1f66   :  { %2657 = vrot.lane.b32.xlu1 %v4538_v41, %s4573_s0 }
0x1f67   :  { %v4540_v44 = vpop.eup %4539 }
0x1f68   :  { %v2651_v45 = vadd.f32 1.0, %v4540_v44 }
0x1f6a   :  { %2678 = vperm.xlu1 %4447, %v3731_v42   ;;  %4541 = vrcp.f32 %v2651_v45 }
0x1f74   :  { %v4542_v46 = vpop.eup %4541 }
0x1f75   :  { %v2655_v53 = vmul.f32 %v4542_v46, %v2399_v52 }
0x1fd8   :  { %v2658_v47 = vpop.permute.xlu1 %2657 }
0x1fd9   :  { %v2660_v48 = vmul.f32 %v4542_v46, %v2658_v47 }
0x1fdb   :  { %2662 = vrot.lane.b32.xlu0 %v2660_v48, %s4574_s30 }
0x1fdf   :  { %2685 = vperm.xlu0 %4448, %v2682_v49  }
0x1fe9   :  { %v2679_v57 = vpop.permute.xlu1 %2678 }
0x204d   :  { %v2663_v54 = vpop.permute.xlu0 %2662 }
0x204e   :  { %v2665_v55 = vadd.f32 %v2663_v54, %v2655_v53 }
0x2050   :  { %4543 = vtanh.f32 %v2665_v55  ;;  %v2690_v31 = vmul.f32 %v2679_v57, %v2665_v55 }
0x205a   :  { %v4544_v56 = vpop.eup %4543 }
0x205b   :  { %2668 = vrot.lane.b32.xlu1 %v4544_v56, %s4573_s0  ;;  %v3749_v56 = vsel %vm3259_vm2, 1.0, %v4571_v8 }
0x205e   :  { %v2686_v59 = vpop.permute.xlu0 %2685 }
0x205f   :  { %v2688_v63 = vmul.f32 %v2686_v59, %v2396_v27  ;;  %v2691_v30 = vmul.f32 %v2686_v59, %v2399_v52 }
0x2061   :  { %v2692_v9 = vadd.f32 %v2691_v30, %v2690_v31 }
0x20cd   :  { %v2669_v61 = vpop.permute.xlu1 %2668 }
0x20ce   :  { %v2671_v62 = vmul.f32 %v4542_v46, %v2669_v61  ;;  %v3744_v46 = vld [vmem:[%s5151_s3 + $0x28] sm:$0xff] }
0x20d0   :  { %v2681_v1 = vmul.f32 %v2679_v57, %v2671_v62 }
0x20d2   :  { %v2689_v2 = vadd.f32 %v2688_v63, %v2681_v1 }
0x20d4   :  { %2705 = vrot.lane.b32.xlu0 %v2689_v2, %s4574_s30 }
0x2146   :  { %v2706_v3 = vpop.permute.xlu0 %2705 }
0x2147   :  { %4175 = vmatmul.mubr.msk.f32.vlgmr.msra.gmra.mrb[26].mxu0 %vm42_vm3, %v2706_v3  ;;  %4186 = vmatmul.mubr.msk.f32.vlgmr.msra.gmra.mrb[28].mxu1 %vm42_vm3, %v2706_v3 }
0x2148   :  { %4404 = vmatpush3.bf16.msra.mxu0 %v4870_v23  ;;  %4192 = vmatprep.mubr.msk.f32.mxu0 %vm4570_vm0, %v4571_v8 }
0x2149   :  { %4407 = vmatpush3.bf16.msra.mxu1 %v4927_v58  ;;  %4411 = vmatprep.subr.bf16.mxu0 %v4569_v0 }
0x214a   :  { %4408 = vmatprep.subr.bf16.mxu1 %v4569_v0  ;;  %4203 = vmatprep.mubr.msk.f32.mxu1 %vm4570_vm0, %v4571_v8 }
0x214b   :  { %4193 = vmatmul.mubr.msk.f32.vlgmr.msra.gmra.mrb[28].mxu0 %vm116_vm1, %v3735_v5 }
0x214c   :  { %4413 = vmatpush3.bf16.msra.mxu0 %v4859_v18  ;;  %4214 = vmatprep.mubr.msk.f32.mxu0 %vm4570_vm0, %v4571_v8 }
0x214d   :  { %4410 = vmatpush3.bf16.msra.mxu1 %v4933_v60  ;;  %4414 = vmatprep.subr.bf16.mxu0 %v4569_v0 }
0x214e   :  { %4417 = vmatprep.subr.bf16.mxu1 %v4569_v0 }
0x2150   :  { %4416 = vmatpush3.bf16.msra.mxu0 %v4873_v24 }
0x2151   :  { %4420 = vmatprep.subr.bf16.mxu0 %v4569_v0 }
0x221a   :  { %v2775_v6 = vpop.f32.mrb[26].mxu0  ;;  %v2856_v19 = vpop.f32.mrb[28].mxu1 }
0x221b   :  { %v2776_v13 = vadd.f32 %v4968_v7, %v2775_v6  ;;  %v4176_v11 = vpop.f32.mrb[27].mxu0  ;;  %v4187_v12 = vpop.f32.mrb[29].mxu1 }
0x221d   :  { %v2779_v14 = vmul.f32 %v2776_v13, %v2679_v57 }
0x221e   :  { %v2929_v15 = vpop.f32.mrb[28].mxu0 }
0x221f   :  { %3734 = vst [vmem:[%s5156_s10 + $0x18] sm:$0xff] %v2779_v14  ;;  %v2930_v16 = vadd.f32 %v2929_v15, %v2856_v19  ;;  %v4194_v17 = vpop.f32.mrb[29].mxu0 }
0x2221   :  { %v2940_v20 = vadd.f32 %v4898_v35, %v2930_v16 }
0x2223   :  { %4545 = vtanh.f32 %v2940_v20  ;;  %v3739_v4 = vmul.f32 -1.442695, %v2940_v20 }
0x2225   :  { %4547 = vpow2.f32 %v3739_v4 }
0x222d   :  { %v4546_v21 = vpop.eup %4545 }
0x222e   :  { %2950 = vrot.lane.b32.xlu1 %v4546_v21, %s4573_s0 }
0x222f   :  { %v4548_v25 = vpop.eup %4547 }
0x2230   :  { %v2944_v26 = vadd.f32 1.0, %v4548_v25  ;;  %v3753_v25 = vld [vmem:[%s5151_s3 + $0x30] sm:$0xff] }
0x2232   :  { %2971 = vperm.xlu1 %4447, %v3740_v22   ;;  %4549 = vrcp.f32 %v2944_v26 }
0x223c   :  { %v4550_v10 = vpop.eup %4549 }
0x223d   :  { %v2948_v32 = vmul.f32 %v4550_v10, %v2692_v9 }
0x22a0   :  { %v2951_v27 = vpop.permute.xlu1 %2950 }
0x22a1   :  { %v2953_v28 = vmul.f32 %v4550_v10, %v2951_v27 }
0x22a3   :  { %2955 = vrot.lane.b32.xlu0 %v2953_v28, %s4574_s30 }
0x22a7   :  { %2978 = vperm.xlu0 %4448, %v2975_v29  }
0x22b1   :  { %v2972_v37 = vpop.permute.xlu1 %2971 }
0x2315   :  { %v2956_v33 = vpop.permute.xlu0 %2955 }
0x2316   :  { %v2958_v34 = vadd.f32 %v2956_v33, %v2948_v32 }
0x2318   :  { %4551 = vtanh.f32 %v2958_v34  ;;  %v2983_v5 = vmul.f32 %v2972_v37, %v2958_v34 }
0x2322   :  { %v4552_v36 = vpop.eup %4551 }
0x2323   :  { %2961 = vrot.lane.b32.xlu1 %v4552_v36, %s4573_s0 }
0x2326   :  { %v2979_v38 = vpop.permute.xlu0 %2978 }
0x2327   :  { %v2981_v42 = vmul.f32 %v2979_v38, %v2689_v2  ;;  %v3268_v2 = vsub.f32 1.0, %v3749_v56  ;;  %v2984_v3 = vmul.f32 %v2979_v38, %v2692_v9 }
0x2329   :  { %v2985_v6 = vadd.f32 %v2984_v3, %v2983_v5 }
0x2395   :  { %v2962_v40 = vpop.permute.xlu1 %2961 }
0x2396   :  { %v2964_v41 = vmul.f32 %v4550_v10, %v2962_v40 }
0x2398   :  { %v2974_v43 = vmul.f32 %v2972_v37, %v2964_v41 }
0x239a   :  { %v2982_v44 = vadd.f32 %v2981_v42, %v2974_v43 }
0x239c   :  { %2998 = vrot.lane.b32.xlu0 %v2982_v44, %s4574_s30 }
0x240e   :  { %v2999_v45 = vpop.permute.xlu0 %2998 }
0x240f   :  { %4204 = vmatmul.mubr.msk.f32.vlgmr.msra.gmra.mrb[30].mxu1 %vm42_vm3, %v2999_v45  ;;  %4215 = vmatmul.mubr.msk.f32.vlgmr.msra.gmra.mrb[30].mxu0 %vm42_vm3, %v2999_v45 }
0x2410   :  { %4419 = vmatpush3.bf16.msra.mxu1 %v4870_v23  ;;  %4221 = vmatprep.mubr.msk.f32.mxu1 %vm4570_vm0, %v4571_v8 }
0x2411   :  { %4422 = vmatpush3.bf16.msra.mxu0 %v4927_v58  ;;  %4426 = vmatprep.subr.bf16.mxu1 %v4569_v0 }
0x2412   :  { %4423 = vmatprep.subr.bf16.mxu0 %v4569_v0  ;;  %4232 = vmatprep.mubr.msk.f32.mxu0 %vm4570_vm0, %v4571_v8 }
0x2413   :  { %4222 = vmatmul.mubr.msk.f32.vlgmr.msra.gmra.mrb[32].mxu1 %vm116_vm1, %v3744_v46 }
0x2414   :  { %4428 = vmatpush3.bf16.msra.mxu1 %v4859_v18  ;;  %4243 = vmatprep.mubr.msk.f32.mxu1 %vm4570_vm0, %v4571_v8 }
0x2415   :  { %4425 = vmatpush3.bf16.msra.mxu0 %v4933_v60  ;;  %4429 = vmatprep.subr.bf16.mxu1 %v4569_v0 }
0x2416   :  { %4432 = vmatprep.subr.bf16.mxu0 %v4569_v0 }
0x2418   :  { %4431 = vmatpush3.bf16.msra.mxu1 %v4873_v24 }
0x2419   :  { %4435 = vmatprep.subr.bf16.mxu1 %v4569_v0 }
0x24e2   :  { %v3068_v47 = vpop.f32.mrb[30].mxu1  ;;  %v3149_v48 = vpop.f32.mrb[30].mxu0 }
0x24e3   :  { %v3069_v49 = vadd.f32 %v4968_v7, %v3068_v47  ;;  %v4205_v50 = vpop.f32.mrb[31].mxu1  ;;  %v4216_v51 = vpop.f32.mrb[31].mxu0 }
0x24e5   :  { %v3072_v18 = vmul.f32 %v3069_v49, %v2972_v37 }
0x24e6   :  { %v3222_v52 = vpop.f32.mrb[32].mxu1 }
0x24e7   :  { %3743 = vst [vmem:[%s5156_s10 + $0x20] sm:$0xff] %v3072_v18  ;;  %v3223_v53 = vadd.f32 %v3222_v52, %v3149_v48  ;;  %v4223_v54 = vpop.f32.mrb[33].mxu1 }
0x24e9   :  { %v3233_v55 = vadd.f32 %v4898_v35, %v3223_v53 }
0x24eb   :  { %4553 = vtanh.f32 %v3233_v55  ;;  %v3748_v57 = vmul.f32 -1.442695, %v3233_v55 }
0x24ed   :  { %4555 = vpow2.f32 %v3748_v57 }
0x24f5   :  { %v4554_v24 = vpop.eup %4553 }
0x24f6   :  { %3243 = vrot.lane.b32.xlu1 %v4554_v24, %s4573_s0 }
0x24f7   :  { %v4556_v59 = vpop.eup %4555 }
0x24f8   :  { %v3237_v61 = vadd.f32 1.0, %v4556_v59 }
0x24fa   :  { %3264 = vperm.xlu1 %4447, %v3749_v56   ;;  %4557 = vrcp.f32 %v3237_v61 }
0x2504   :  { %v4558_v62 = vpop.eup %4557 }
0x2505   :  { %v3241_v19 = vmul.f32 %v4558_v62, %v2985_v6 }
0x2568   :  { %v3244_v63 = vpop.permute.xlu1 %3243 }
0x2569   :  { %v3246_v1 = vmul.f32 %v4558_v62, %v3244_v63 }
0x256b   :  { %3248 = vrot.lane.b32.xlu0 %v3246_v1, %s4574_s30 }
0x256f   :  { %3271 = vperm.xlu0 %4448, %v3268_v2  }
0x2579   :  { %v3265_v14 = vpop.permute.xlu1 %3264 }
0x25dd   :  { %v3249_v13 = vpop.permute.xlu0 %3248 }
0x25de   :  { %v3251_v11 = vadd.f32 %v3249_v13, %v3241_v19 }
0x25e0   :  { %4559 = vtanh.f32 %v3251_v11 }
0x25ea   :  { %v4560_v12 = vpop.eup %4559 }
0x25eb   :  { %3254 = vrot.lane.b32.xlu1 %v4560_v12, %s4573_s0 }
0x25ee   :  { %v3272_v15 = vpop.permute.xlu0 %3271 }
0x25ef   :  { %v3274_v20 = vmul.f32 %v3272_v15, %v2982_v44 }
0x265d   :  { %v3255_v16 = vpop.permute.xlu1 %3254 }
0x265e   :  { %v3257_v17 = vmul.f32 %v4558_v62, %v3255_v16 }
0x2660   :  { %v3267_v21 = vmul.f32 %v3265_v14, %v3257_v17 }
0x2662   :  { %v3275_v22 = vadd.f32 %v3274_v20, %v3267_v21 }
0x2664   :  { %3291 = vrot.lane.b32.xlu0 %v3275_v22, %s4574_s30 }
0x26d6   :  { %v3292_v4 = vpop.permute.xlu0 %3291 }
0x26d7   :  { %4233 = vmatmul.mubr.msk.f32.vlgmr.msra.gmra.mrb[32].mxu0 %vm42_vm3, %v3292_v4  ;;  %4244 = vmatmul.mubr.msk.f32.vlgmr.msra.gmra.mrb[34].mxu1 %vm42_vm3, %v3292_v4 }
0x26d8   :  { %4434 = vmatpush3.bf16.msra.mxu0 %v4870_v23  ;;  %4250 = vmatprep.mubr.msk.f32.mxu0 %vm4570_vm0, %v4571_v8 }
0x26d9   :  { %4437 = vmatpush3.bf16.msra.mxu1 %v4927_v58  ;;  %4261 = vmatprep.mubr.msk.f32.mxu1 %vm4570_vm0, %v4571_v8  ;;  %vm3552_vm0 = vcmp.gt.s32.totalorder %v4904_v39, 6  ;;  %v3276_v39 = vmul.f32 %v3265_v14, %v3251_v11 }
0x26da   :  { %4438 = vmatprep.subr.bf16.mxu1 %v4569_v0  ;;  %v3758_v9 = vsel %vm3552_vm0, 1.0, %v4571_v8 }
0x26db   :  { %4251 = vmatmul.mubr.msk.f32.vlgmr.msra.gmra.mrb[34].mxu0 %vm116_vm1, %v3753_v25  ;;  %v3561_v40 = vsub.f32 1.0, %v3758_v9 }
0x26dd   :  { %4440 = vmatpush3.bf16.msra.mxu1 %v4933_v60 }
0x27aa   :  { %v3361_v26 = vpop.f32.mrb[32].mxu0  ;;  %v3442_v23 = vpop.f32.mrb[34].mxu1 }
0x27ab   :  { %v3362_v10 = vadd.f32 %v4968_v7, %v3361_v26  ;;  %v4234_v27 = vpop.f32.mrb[33].mxu0  ;;  %v4245_v28 = vpop.f32.mrb[35].mxu1 }
0x27ad   :  { %v3365_v29 = vmul.f32 %v3362_v10, %v3265_v14 }
0x27ae   :  { %v3515_v30 = vpop.f32.mrb[34].mxu0 }
0x27af   :  { %3752 = vst [vmem:[%s5156_s10 + $0x28] sm:$0xff] %v3365_v29  ;;  %v3516_v58 = vadd.f32 %v3515_v30, %v3442_v23  ;;  %v4252_v31 = vpop.f32.mrb[35].mxu0 }
0x27b1   :  { %v3526_v0 = vadd.f32 %v4898_v35, %v3516_v58  ;;  %v3277_v35 = vmul.f32 %v3272_v15, %v2985_v6 }
0x27b3   :  { %4561 = vtanh.f32 %v3526_v0  ;;  %v3757_v32 = vmul.f32 -1.442695, %v3526_v0  ;;  %v3278_v41 = vadd.f32 %v3277_v35, %v3276_v39 }
0x27b5   :  { %4563 = vpow2.f32 %v3757_v32 }
0x27bd   :  { %v4562_v60 = vpop.eup %4561 }
0x27be   :  { %3536 = vrot.lane.b32.xlu1 %v4562_v60, %s4573_s0 }
0x27bf   :  { %v4564_v33 = vpop.eup %4563 }
0x27c0   :  { %v3530_v34 = vadd.f32 1.0, %v4564_v33 }
0x27c2   :  { %3557 = vperm.xlu1 %4447, %v3758_v9   ;;  %4565 = vrcp.f32 %v3530_v34 }
0x27cc   :  { %v4566_v36 = vpop.eup %4565 }
0x27cd   :  { %v3534_v42 = vmul.f32 %v4566_v36, %v3278_v41 }
0x2830   :  { %v3537_v37 = vpop.permute.xlu1 %3536 }
0x2831   :  { %v3539_v38 = vmul.f32 %v4566_v36, %v3537_v37 }
0x2833   :  { %3541 = vrot.lane.b32.xlu0 %v3539_v38, %s4574_s30 }
0x2837   :  { %3564 = vperm.xlu0 %4448, %v3561_v40  }
0x2841   :  { %v3558_v45 = vpop.permute.xlu1 %3557 }
0x28a5   :  { %v3542_v43 = vpop.permute.xlu0 %3541 }
0x28a6   :  { %v3544_v44 = vadd.f32 %v3542_v43, %v3534_v42 }
0x28a8   :  { %4567 = vtanh.f32 %v3544_v44 }
0x28b2   :  { %v4568_v8 = vpop.eup %4567 }
0x28b3   :  { %3547 = vrot.lane.b32.xlu1 %v4568_v8, %s4573_s0 }
0x28b6   :  { %v3565_v46 = vpop.permute.xlu0 %3564 }
0x28b7   :  { %v3567_v49 = vmul.f32 %v3565_v46, %v3275_v22 }
0x2925   :  { %v3548_v47 = vpop.permute.xlu1 %3547 }
0x2926   :  { %v3550_v48 = vmul.f32 %v4566_v36, %v3548_v47 }
0x2928   :  { %v3560_v50 = vmul.f32 %v3558_v45, %v3550_v48 }
0x292a   :  { %v3568_v51 = vadd.f32 %v3567_v49, %v3560_v50 }
0x292c   :  { %3581 = vrot.lane.b32.xlu0 %v3568_v51, %s4574_s30 }
0x299e   :  { %v3582_v18 = vpop.permute.xlu0 %3581 }
0x299f   :  { %4262 = vmatmul.mubr.msk.f32.vlgmr.msra.gmra.mrb[36].mxu1 %vm42_vm3, %v3582_v18 }
0x2a72   :  { %v3651_v52 = vpop.f32.mrb[36].mxu1 }
0x2a73   :  { %v3652_v53 = vadd.f32 %v4968_v7, %v3651_v52  ;;  %v4263_v54 = vpop.f32.mrb[37].mxu1 }
0x2a75   :  { %v3655_v55 = vmul.f32 %v3652_v53, %v3558_v45 }
0x2a77   :  { %3761 = vst [vmem:[%s5156_s10 + $0x30] sm:$0xff] %v3655_v55 }

</bundles_post_ra>
